<compile_context>
chip_gen: v7x
topology: tpu7x:2x2x1
jax: 0.10.0
libtpu: 0.0.40
codegen_flags: <defaults>
</compile_context>

<pallas_src>
import numpy as np
import jax
import jax.numpy as jnp
from jax import lax
from jax.experimental import pallas as pl
from jax.experimental.pallas import tpu as pltpu

CAPACITY = 8        # TrainingParams.capacity
LATENT_DIMS = 16    # TrainingParams.latent_dims

_H = 14 * 14 * CAPACITY          # 1568 true hidden width
_N = 28 * 28                     # 784  true output width
_HP = ((_H + 127) // 128) * 128  # 1664 lane-padded hidden width
_NP = ((_N + 127) // 128) * 128  # 896  lane-padded output width


# ------------------------------ fused kernel ------------------------------
def _decoder_kernel(x_ref, wh_ref, bh_ref, wo_ref, bo_ref, o_ref):
    # Stage 1: latent -> folded (fc + view + ConvTranspose2d#2), then ReLU.
    xb = x_ref[...].astype(jnp.bfloat16)
    h = jnp.dot(xb, wh_ref[...], preferred_element_type=jnp.float32)
    h = jnp.maximum(h + bh_ref[...], 0.0)                  # (bb, 1664) f32, VMEM only
    # Stage 2: folded ConvTranspose2d#1 (bf16 MXU), bias, sigmoid (EUP).
    z = jnp.dot(h.astype(jnp.bfloat16), wo_ref[...],
                preferred_element_type=jnp.float32) + bo_ref[...]
    o_ref[...] = pl.reciprocal(1.0 + jnp.exp(-z), approx=True)


def _batch_tile(B):
    """Batch tile: fill the MXU M-dim, shard across TCs when B is large."""
    try:
        kind = jax.devices()[0].device_kind.lower()
    except Exception:
        kind = ""
    cap = 128 if "v5" in kind else 256         # v5e MXU is 128-row
    if B <= cap:
        return B                               # single program at tiny B
    half = ((B + 1) // 2 + 7) // 8 * 8         # >=2 grid steps (2 TCs on v7x)
    return min(cap, half)


def decoder_forward(x, packed):
    """x: (B, latent_dims) f32; packed: dict from pack_decoder_params."""
    B, L = x.shape
    Hp = packed["w_hid"].shape[1]              # 1664
    Np = packed["w_out"].shape[1]              # 896
    bb = _batch_tile(B)
    grid = (pl.cdiv(B, bb),)

    wbytes = int(packed["w_hid"].nbytes + packed["b_hid"].nbytes
                 + packed["w_out"].nbytes + packed["b_out"].nbytes)
    cost = pl.CostEstimate(
        flops=2 * B * (L * Hp + Hp * Np),
        transcendentals=B * Np,
        bytes_accessed=wbytes + B * (L + Np) * 4,
    )

    out = pl.pallas_call(
        _decoder_kernel,
        out_shape=jax.ShapeDtypeStruct((B, Np), jnp.float32),
        grid=grid,
        in_specs=[
            pl.BlockSpec((bb, L), lambda i: (i, 0)),
            # Grid-invariant weights/biases: fetched once, single-buffered.
            pl.BlockSpec((L, Hp), lambda i: (0, 0), pipeline_mode=pl.Buffered(1)),
            pl.BlockSpec((1, Hp), lambda i: (0, 0), pipeline_mode=pl.Buffered(1)),
            pl.BlockSpec((Hp, Np), lambda i: (0, 0), pipeline_mode=pl.Buffered(1)),
            pl.BlockSpec((1, Np), lambda i: (0, 0), pipeline_mode=pl.Buffered(1)),
        ],
        out_specs=pl.BlockSpec((bb, Np), lambda i: (i, 0)),
        compiler_params=pltpu.CompilerParams(
            dimension_semantics=("parallel",)),
        cost_estimate=cost,
    )(x, packed["w_hid"], packed["b_hid"], packed["w_out"], packed["b_out"])
    # Drop lane padding, then free metadata reshape to NCHW (C=1).
    return out[:, :_N].reshape(B, 1, 28, 28)


# --------------------------- one-time weight packing ---------------------------
def _convt_toeplitz(w, H, W):
    """Dense T with flat_out_hwc = flat_in_hwc @ T for
    ConvTranspose2d(kernel=4, stride=2, padding=1); w is PyTorch layout
    (Cin, Cout, kh, kw).  in index = (iy*W+ix)*Cin+ic, out = (oy*2W+ox)*Cout+oc,
    with oy = 2*iy - 1 + ky (contributions outside [0, 2H) are cropped)."""
    Cin, Cout, K, _ = w.shape
    OH, OW = 2 * H, 2 * W
    T = np.zeros((H * W * Cin, OH * OW * Cout), np.float64)
    for ky in range(K):
        for kx in range(K):
            tap = w[:, :, ky, kx]                       # (Cin, Cout)
            for iy in range(H):
                oy = 2 * iy - 1 + ky
                if oy < 0 or oy >= OH:
                    continue
                for ix in range(W):
                    ox = 2 * ix - 1 + kx
                    if ox < 0 or ox >= OW:
                        continue
                    r0 = (iy * W + ix) * Cin
                    c0 = (oy * OW + ox) * Cout
                    T[r0:r0 + Cin, c0:c0 + Cout] += tap
    return T


def pack_decoder_params(params):
    """Fold fc+ConvT2 into (L,1664) and ConvT1 into (1664,896), bf16. Done once."""
    c = CAPACITY
    fc_w = np.asarray(params["fc_w"], np.float64)       # (2c*49, L)
    fc_b = np.asarray(params["fc_b"], np.float64)       # (2c*49,)
    w2 = np.asarray(params["conv2_w"], np.float64)      # (2c, c, 4, 4)
    b2 = np.asarray(params["conv2_b"], np.float64)      # (c,)
    w1 = np.asarray(params["conv1_w"], np.float64)      # (c, 1, 4, 4)
    b1 = np.asarray(params["conv1_b"], np.float64)      # (1,)

    L = fc_w.shape[1]
    cin2 = 2 * c

    # fc output is viewed CHW (idx = ch*49 + iy*7 + ix); re-order rows to HWC
    # so they match the Toeplitz input layout (iy*7+ix)*Cin + ch.
    wfc_hwc = fc_w.reshape(cin2, 7, 7, L).transpose(1, 2, 0, 3).reshape(49 * cin2, L)
    bfc_hwc = fc_b.reshape(cin2, 7, 7).transpose(1, 2, 0).reshape(49 * cin2)

    T2 = _convt_toeplitz(w2, 7, 7)      # (49*16, 196*8)  = (784, 1568)
    T1 = _convt_toeplitz(w1, 14, 14)    # (196*8, 784*1)  = (1568, 784)

    w_hid = wfc_hwc.T @ T2                              # (L, 1568)
    b_hid = bfc_hwc @ T2 + np.tile(b2, 14 * 14)         # (1568,)
    w_out = T1                                          # (1568, 784)
    b_out = np.full(_N, b1[0])                          # (784,)

    # Zero-pad to lane-aligned widths (1568->1664, 784->896): padded hidden
    # columns are bias-0/ReLU-0, padded W_out rows are zero, padded output
    # columns are sliced off in the wrapper -> semantics unchanged.
    w_hid_p = np.zeros((L, _HP), np.float64);  w_hid_p[:, :_H] = w_hid
    b_hid_p = np.zeros((_HP,), np.float64);    b_hid_p[:_H] = b_hid
    w_out_p = np.zeros((_HP, _NP), np.float64); w_out_p[:_H, :_N] = w_out
    b_out_p = np.zeros((_NP,), np.float64);    b_out_p[:_N] = b_out

    return {
        "w_hid": jnp.asarray(w_hid_p, jnp.bfloat16),           # ~53 KB
        "b_hid": jnp.asarray(b_hid_p.reshape(1, -1), jnp.float32),
        "w_out": jnp.asarray(w_out_p, jnp.bfloat16),           # ~2.98 MB
        "b_out": jnp.asarray(b_out_p.reshape(1, -1), jnp.float32),
    }
    # TODO(synk): for latency-critical tiny-batch serving, exploit the ~92%
    # structural sparsity of W_out (phase-decomposed ConvT1) to cut weight DMA.


# ------------------------------ pure-JAX reference ------------------------------
def _convt_ref(x_nchw, w_torch, b, stride=2, pad=1):
    Cin, Cout, k, _ = w_torch.shape
    w_rot = jnp.transpose(w_torch, (1, 0, 2, 3))[:, :, ::-1, ::-1]  # (Cout,Cin,k,k)
    y = lax.conv_general_dilated(
        x_nchw, w_rot, window_strides=(1, 1),
        padding=[(k - 1 - pad, k - 1 - pad)] * 2,
        lhs_dilation=(stride, stride),
        dimension_numbers=('NCHW', 'OIHW', 'NCHW'))
    return y + b.reshape(1, Cout, 1, 1)


def decoder_ref(x, params):
    c = CAPACITY
    B = x.shape[0]
    h = x @ params["fc_w"].T + params["fc_b"]
    h = h.reshape(B, 2 * c, 7, 7)
    h = jnp.maximum(_convt_ref(h, params["conv2_w"], params["conv2_b"]), 0.0)
    z = _convt_ref(h, params["conv1_w"], params["conv1_b"])
    return 1.0 / (1.0 + jnp.exp(-z))


if __name__ == "__main__":
    c = CAPACITY
    keys = jax.random.split(jax.random.PRNGKey(0), 7)
    params = {
        "fc_w":    0.05 * jax.random.normal(keys[0], (c * 2 * 7 * 7, LATENT_DIMS), jnp.float32),
        "fc_b":    0.05 * jax.random.normal(keys[1], (c * 2 * 7 * 7,), jnp.float32),
        "conv2_w": 0.05 * jax.random.normal(keys[2], (c * 2, c, 4, 4), jnp.float32),
        "conv2_b": 0.05 * jax.random.normal(keys[3], (c,), jnp.float32),
        "conv1_w": 0.05 * jax.random.normal(keys[4], (c, 1, 4, 4), jnp.float32),
        "conv1_b": 0.05 * jax.random.normal(keys[5], (1,), jnp.float32),
    }
    x = jax.random.normal(keys[6], (2, LATENT_DIMS), jnp.float32)

    packed = pack_decoder_params(params)          # once, outside per-call path
    fwd = jax.jit(decoder_forward)
    out = jax.block_until_ready(fwd(x, packed))
    assert out.shape == (2, 1, 28, 28), out.shape

    ref = decoder_ref(x, params)
    # Tolerance covers bf16 weights + approx-reciprocal sigmoid.
    np.testing.assert_allclose(np.asarray(out), np.asarray(ref), rtol=2e-2, atol=2e-2)
    print("KERNEL_OK")
</pallas_src>

<mosaic_0001>
module attributes {stable_mosaic.version = 11 : i64} {
  func.func @_decoder_kernel(%arg0: i32, %arg1: memref<2x16xf32, #tpu.memory_space<vmem>>, %arg2: memref<16x1664xbf16, #tpu.memory_space<vmem>>, %arg3: memref<1x1664xf32, #tpu.memory_space<vmem>>, %arg4: memref<1664x896xbf16, #tpu.memory_space<vmem>>, %arg5: memref<1x896xf32, #tpu.memory_space<vmem>>, %arg6: memref<2x896xf32, #tpu.memory_space<vmem>>) attributes {dimension_semantics = [#tpu.dimension_semantics<parallel>], iteration_bounds = array<i64: 1>, scalar_prefetch = 0 : i64, scratch_operands = 0 : i64, tpu.core_type = #tpu.core_type<tc>, window_params = [{transform_indices = @transform_0, window_bounds = array<i64: 2, 16>}, {pipeline_mode = #tpu.pipeline_mode<synchronous>, transform_indices = @transform_1, window_bounds = array<i64: 16, 1664>}, {pipeline_mode = #tpu.pipeline_mode<synchronous>, transform_indices = @transform_2, window_bounds = array<i64: 1, 1664>}, {pipeline_mode = #tpu.pipeline_mode<synchronous>, transform_indices = @transform_3, window_bounds = array<i64: 1664, 896>}, {pipeline_mode = #tpu.pipeline_mode<synchronous>, transform_indices = @transform_4, window_bounds = array<i64: 1, 896>}, {transform_indices = @transform_5, window_bounds = array<i64: 2, 896>}]} {
    %c0 = arith.constant 0 : index
    %c0_0 = arith.constant 0 : index
    %0 = vector.load %arg1[%c0, %c0_0] : memref<2x16xf32, #tpu.memory_space<vmem>>, vector<2x16xf32>
    %1 = arith.truncf %0 : vector<2x16xf32> to vector<2x16xbf16>
    %c0_1 = arith.constant 0 : index
    %c0_2 = arith.constant 0 : index
    %2 = vector.load %arg2[%c0_1, %c0_2] : memref<16x1664xbf16, #tpu.memory_space<vmem>>, vector<16x1664xbf16>
    %cst = arith.constant dense<0.000000e+00> : vector<2x1664xf32>
    %3 = tpu.matmul %1, %2, %cst {dimension_numbers = #tpu.dot_dimension_numbers<[1], [0], [0], [1], [0, 0, 1, 1], [], []>} : vector<2x16xbf16>, vector<16x1664xbf16>, vector<2x1664xf32> -> vector<2x1664xf32>
    %c0_3 = arith.constant 0 : index
    %c0_4 = arith.constant 0 : index
    %4 = vector.load %arg3[%c0_3, %c0_4] : memref<1x1664xf32, #tpu.memory_space<vmem>>, vector<1x1664xf32>
    %5 = vector.broadcast %4 : vector<1x1664xf32> to vector<2x1664xf32>
    %6 = arith.addf %3, %5 : vector<2x1664xf32>
    %cst_5 = arith.constant 0.000000e+00 : f32
    %7 = vector.broadcast %cst_5 : f32 to vector<2x1664xf32>
    %8 = arith.maximumf %6, %7 : vector<2x1664xf32>
    %9 = arith.truncf %8 : vector<2x1664xf32> to vector<2x1664xbf16>
    %c0_6 = arith.constant 0 : index
    %c0_7 = arith.constant 0 : index
    %10 = vector.load %arg4[%c0_6, %c0_7] : memref<1664x896xbf16, #tpu.memory_space<vmem>>, vector<1664x896xbf16>
    %cst_8 = arith.constant dense<0.000000e+00> : vector<2x896xf32>
    %11 = tpu.matmul %9, %10, %cst_8 {dimension_numbers = #tpu.dot_dimension_numbers<[1], [0], [0], [1], [0, 0, 1, 1], [], []>} : vector<2x1664xbf16>, vector<1664x896xbf16>, vector<2x896xf32> -> vector<2x896xf32>
    %c0_9 = arith.constant 0 : index
    %c0_10 = arith.constant 0 : index
    %12 = vector.load %arg5[%c0_9, %c0_10] : memref<1x896xf32, #tpu.memory_space<vmem>>, vector<1x896xf32>
    %13 = vector.broadcast %12 : vector<1x896xf32> to vector<2x896xf32>
    %14 = arith.addf %11, %13 : vector<2x896xf32>
    %cst_11 = arith.constant 0.000000e+00 : f32
    %15 = vector.broadcast %cst_11 : f32 to vector<2x896xf32>
    %16 = arith.subf %15, %14 : vector<2x896xf32>
    %17 = math.exp %16 : vector<2x896xf32>
    %cst_12 = arith.constant 1.000000e+00 : f32
    %18 = vector.broadcast %cst_12 : f32 to vector<2x896xf32>
    %19 = arith.addf %18, %17 : vector<2x896xf32>
    %20 = tpu.reciprocal %19 {approx = true} : vector<2x896xf32> -> vector<2x896xf32>
    %c0_13 = arith.constant 0 : index
    %c0_14 = arith.constant 0 : index
    %21 = vector.load %arg6[%c0_13, %c0_14] : memref<2x896xf32, #tpu.memory_space<vmem>>, vector<2x896xf32>
    tpu.vector_store %arg6[%c0_13, %c0_14], %20 {strides = array<i32>} : memref<2x896xf32, #tpu.memory_space<vmem>>, vector<2x896xf32>,
    return
  }
  func.func @transform_0(%arg0: i32) -> (i32, i32) {
    %c0_i32 = arith.constant 0 : i32
    %c0_i32_0 = arith.constant 0 : i32
    return %arg0, %c0_i32 : i32, i32
  }
  func.func @transform_1(%arg0: i32) -> (i32, i32) {
    %c0_i32 = arith.constant 0 : i32
    %c0_i32_0 = arith.constant 0 : i32
    %c0_i32_1 = arith.constant 0 : i32
    return %c0_i32, %c0_i32_0 : i32, i32
  }
  func.func @transform_2(%arg0: i32) -> (i32, i32) {
    %c0_i32 = arith.constant 0 : i32
    %c0_i32_0 = arith.constant 0 : i32
    %c0_i32_1 = arith.constant 0 : i32
    return %c0_i32, %c0_i32_0 : i32, i32
  }
  func.func @transform_3(%arg0: i32) -> (i32, i32) {
    %c0_i32 = arith.constant 0 : i32
    %c0_i32_0 = arith.constant 0 : i32
    %c0_i32_1 = arith.constant 0 : i32
    return %c0_i32, %c0_i32_0 : i32, i32
  }
  func.func @transform_4(%arg0: i32) -> (i32, i32) {
    %c0_i32 = arith.constant 0 : i32
    %c0_i32_0 = arith.constant 0 : i32
    %c0_i32_1 = arith.constant 0 : i32
    return %c0_i32, %c0_i32_0 : i32, i32
  }
  func.func @transform_5(%arg0: i32) -> (i32, i32) {
    %c0_i32 = arith.constant 0 : i32
    %c0_i32_0 = arith.constant 0 : i32
    return %arg0, %c0_i32 : i32, i32
  }
}

</mosaic_0001>

<bundles_post_ra>
// kernel: decoder_forward.1
= control target key start
LH: loop header
LB: loop body
LE: loop exit
PB: predicated region body
PF: predicated region fallthrough
CT: control target
= control target key end

     0   :  { %10 = vsyncpa [#allocation3], 0  ;;  %s8933_s0 = inlined_call_operand.hbm [shape: f32[2,16], index: 0, kind: input, shape index: {}]   ;;  %s8934_s1 = inlined_call_operand.hbm [shape: bf16[16,1664], index: 1, kind: input, shape index: {}]   ;;  %s8935_s2 = inlined_call_operand.hbm [shape: f32[1,1664], index: 2, kind: input, shape index: {}]   ;;  %s8936_s3 = inlined_call_operand.hbm [shape: bf16[1664,896], index: 3, kind: input, shape index: {}]   ;;  %s8937_s4 = inlined_call_operand.hbm [shape: f32[1,896], index: 4, kind: input, shape index: {}]   ;;  %s8938_s5 = inlined_call_operand.vmem [shape: f32[2,896], index: 5, kind: output, shape index: {}]  }
   0x1   :  { %11 = vsyncpa [#allocation5], 0 }
   0x2   :  { %12 = vsyncpa [#allocation8], 0  ;;  %s8600_s18 = smov [#allocation4]   ;;  %s8484_s22 = scalar_lea.hbm %s8934_s1, 1664 }
   0x3   :  { %s28_s19 = sshll.u32 %s8600_s18, 4  ;;  %p8485_p0 = scmp.ne.s32.totalorder %s8934_s1, %s8484_s22  ;;  %s29_s19 = int_to_ptr.vmem [resolvable:$true] %s28_s19 }
   0x4   :  { %p8488_p1 = scmp.lt.u32.totalorder %s8484_s22, %s8934_s1 }
   0x6   :  { %p8490_p2 = pnand %p8488_p1, %p8485_p0 }
   0x8   :  { %8493 = shalt.err (!%p8490_p2)
}
   0x9   :  { %s8494_s27 = scalar_lea.vmem %s29_s19, 1664  ;;  %p8499_p4 = scmp.lt.s32.totalorder %s29_s19, %s29_s19 }
   0xa   :  { %p8495_p3 = scmp.ne.s32.totalorder %s29_s19, %s8494_s27  ;;  %p8500_p5 = scmp.lt.s32.totalorder %s8494_s27, %s8494_s27 }
   0xc   :  { %p8501_p6 = por %p8500_p5, %p8499_p4 }
   0xe   :  { %p8502_p7 = pnand %p8501_p6, %p8495_p3 }
  0x10   :  { %8505 = shalt.err (!%p8502_p7)
}
  0x11   :  { %s8601_s28 = smov 832   ;;  %s8602_s29 = smov 52  }
  0x12   :  { %34 = dma.hbm_to_vmem [thread:$0]  %s8934_s1, 1664, %s29_s19, [#allocation5], %s8601_s28, %s8601_s28, %s8602_s29  }
  0x13   :  { %s8603_s7 = smov [#allocation7]   ;;  %s8506_s11 = scalar_lea.hbm %s8936_s3, 93184 }
  0x14   :  { %s50_s8 = sshll.u32 %s8603_s7, 4  ;;  %p8507_p8 = scmp.ne.s32.totalorder %s8936_s3, %s8506_s11  ;;  %s51_s8 = int_to_ptr.vmem [resolvable:$true] %s50_s8 }
  0x15   :  { %p8510_p9 = scmp.lt.u32.totalorder %s8506_s11, %s8936_s3 }
  0x17   :  { %p8512_p10 = pnand %p8510_p9, %p8507_p8 }
  0x19   :  { %8515 = shalt.err (!%p8512_p10)
}
  0x1a   :  { %s8516_s16 = scalar_lea.vmem %s51_s8, 93184  ;;  %p8521_p12 = scmp.lt.s32.totalorder %s51_s8, %s51_s8 }
  0x1b   :  { %p8517_p11 = scmp.ne.s32.totalorder %s51_s8, %s8516_s16  ;;  %p8522_p13 = scmp.lt.s32.totalorder %s8516_s16, %s8516_s16 }
  0x1d   :  { %p8523_p0 = por %p8522_p13, %p8521_p12 }
  0x1f   :  { %p8524_p1 = pnand %p8523_p0, %p8517_p11 }
  0x21   :  { %8527 = shalt.err (!%p8524_p1)
}
  0x22   :  { %s8604_s1 = smov 448   ;;  %s8605_s17 = smov 28  }
  0x23   :  { %56 = dma.hbm_to_vmem [thread:$0]  %s8936_s3, 93184, %s51_s8, [#allocation8], %s8604_s1, %s8604_s1, %s8605_s17  }
  0x24   :  { %s8606_s20 = smov [#allocation2]   ;;  %s8607_s22 = smov [#allocation6]  }
  0x25   :  { %s19_s21 = sshll.u32 %s8606_s20, 4  ;;  %s41_s23 = sshll.u32 %s8607_s22, 4  ;;  %s20_s21 = int_to_ptr.vmem [resolvable:$true] %s19_s21  ;;  %s42_s23 = int_to_ptr.vmem [resolvable:$true] %s41_s23 }
  0x26   :  { %s8528_s26 = scalar_lea.hbm %s8933_s0, 32 }
  0x27   :  { %p8529_p2 = scmp.ne.s32.totalorder %s8933_s0, %s8528_s26  ;;  %p8532_p3 = scmp.lt.u32.totalorder %s8528_s26, %s8933_s0 }
  0x29   :  { %p8534_p4 = pnand %p8532_p3, %p8529_p2 }
  0x2b   :  { %8537 = shalt.err (!%p8534_p4)
}
  0x2c   :  { %s8538_s3 = scalar_lea.vmem %s20_s21, 32  ;;  %p8543_p6 = scmp.lt.s32.totalorder %s20_s21, %s20_s21 }
  0x2d   :  { %p8539_p5 = scmp.ne.s32.totalorder %s20_s21, %s8538_s3  ;;  %p8544_p7 = scmp.lt.s32.totalorder %s8538_s3, %s8538_s3 }
  0x2f   :  { %p8545_p8 = por %p8544_p7, %p8543_p6 }
  0x31   :  { %p8546_p9 = pnand %p8545_p8, %p8539_p5 }
  0x33   :  { %8549 = shalt.err (!%p8546_p9)
}
  0x34   :  { %22 = dma.hbm_to_vmem [thread:$0]  %s8933_s0, 32, %s20_s21, [#allocation3]  }
  0x35   :  { %s8550_s10 = scalar_lea.hbm %s8935_s2, 208 }
  0x36   :  { %p8551_p10 = scmp.ne.s32.totalorder %s8935_s2, %s8550_s10  ;;  %p8554_p11 = scmp.lt.u32.totalorder %s8550_s10, %s8935_s2 }
  0x38   :  { %p8556_p12 = pnand %p8554_p11, %p8551_p10 }
  0x3a   :  { %8559 = shalt.err (!%p8556_p12)
}
  0x3b   :  { %s8560_s15 = scalar_lea.vmem %s42_s23, 208  ;;  %s8564_s16 = scalar_lea.vmem %s42_s23, 224 }
  0x3c   :  { %p8561_p13 = scmp.ne.s32.totalorder %s42_s23, %s8560_s15  ;;  %p8565_p0 = scmp.lt.s32.totalorder %s42_s23, %s42_s23 }
  0x3d   :  { %p8566_p1 = scmp.lt.s32.totalorder %s8564_s16, %s8560_s15 }
  0x3f   :  { %p8567_p2 = por %p8566_p1, %p8565_p0 }
  0x41   :  { %p8568_p3 = pnand %p8567_p2, %p8561_p13 }
  0x43   :  { %8571 = shalt.err (!%p8568_p3)
}
  0x44   :  { %44 = dma.hbm_to_vmem [thread:$0]  %s8935_s2, 208, %s42_s23, [#allocation5]  }
  0x45   :  { %s8608_s17 = smov [#allocation9]   ;;  %s8572_s21 = scalar_lea.hbm %s8937_s4, 112 }
  0x46   :  { %s63_s18 = sshll.u32 %s8608_s17, 4  ;;  %p8573_p4 = scmp.ne.s32.totalorder %s8937_s4, %s8572_s21  ;;  %s64_s18 = int_to_ptr.vmem [resolvable:$true] %s63_s18 }
  0x47   :  { %p8576_p5 = scmp.lt.u32.totalorder %s8572_s21, %s8937_s4 }
  0x49   :  { %p8578_p6 = pnand %p8576_p5, %p8573_p4 }
  0x4b   :  { %8581 = shalt.err (!%p8578_p6)
}
  0x4c   :  { %s8582_s27 = scalar_lea.vmem %s64_s18, 112  ;;  %s8586_s2 = scalar_lea.vmem %s64_s18, 128 }
  0x4d   :  { %p8583_p7 = scmp.ne.s32.totalorder %s64_s18, %s8582_s27  ;;  %p8587_p8 = scmp.lt.s32.totalorder %s64_s18, %s64_s18 }
  0x4e   :  { %p8588_p9 = scmp.lt.s32.totalorder %s8586_s2, %s8582_s27 }
  0x50   :  { %p8589_p10 = por %p8588_p9, %p8587_p8 }
  0x52   :  { %p8590_p11 = pnand %p8589_p10, %p8583_p7 }
  0x54   :  { %8593 = shalt.err (!%p8590_p11)
}
  0x55   :  { %66 = dma.hbm_to_vmem [thread:$0]  %s8937_s4, 112, %s64_s18, [#allocation8]  }
  0x56   :  { %8594 = dma.done.wait [#allocation3], 32  }
  0x57   :  { %8595 = vsyncadd [#allocation3], 4294967264 }
  0x58   :  { %8596 = dma.done.wait [#allocation5], 1872  }
  0x59   :  { %8597 = vsyncadd [#allocation5], 4294965424 }
  0x5a   :  { %8598 = dma.done.wait [#allocation8], 93296  }
  0x5b   :  { %8599 = vsyncadd [#allocation8], 4294874000  ;;  %v8609_v0 = vmov 0   ;;  %v7394_v1 = vld [vmem:[#allocation4 + $0x4] ss:$52 sps:$4 sm:$0xff]   ;;  %vm234_vm0 = vcmask 130048  }
  0x5c   :  { %270 = vmatprep.mubr.bf16.mxu0 %v8609_v0  ;;  %311 = vmatprep.mubr.bf16.mxu1 %v8609_v0  ;;  %v7396_v2 = vld [vmem:[#allocation4 + $0xc] ss:$52 sps:$4 sm:$0xff]   ;;  %v7399_v4 = vld [vmem:[#allocation4 + $0x8] ss:$52 sps:$4 sm:$0xff]   ;;  %v7400_v7 = vld [vmem:[#allocation4 + $0x10] ss:$52 sps:$4 sm:$0xff]  }
  0x5d   :  { %238 = vmatprep.subr.bf16.mxu0 %v7394_v1  ;;  %v7398_v3 = vld [vmem:[#allocation4] ss:$52 sps:$4 sm:$0xff]   ;;  %v83_v5 = vld [vmem:[#allocation2] sm:$0x3]  ;;  %279 = vmatprep.subr.bf16.mxu1 %v7396_v2  ;;  %v7405_v9 = vld [vmem:[#allocation4 + $0x24] ss:$52 sps:$4 sm:$0xff]  }
  0x5e   :  { %v84_v6 = vpack.c.bf16 %v83_v5, %v83_v5  ;;  %239 = vmatpush1.bf16.msra.mxu0 %v7398_v3  ;;  %280 = vmatpush1.bf16.msra.mxu1 %v7399_v4  ;;  %v7402_v8 = vld [vmem:[#allocation4 + $0x14] ss:$52 sps:$4 sm:$0xff]   ;;  %v7407_v10 = vld [vmem:[#allocation4 + $0x18] ss:$52 sps:$4 sm:$0xff]   ;;  %v7409_v11 = vld [vmem:[#allocation4 + $0x1c] ss:$52 sps:$4 sm:$0xff]  }
  0x5f   :  { %320 = vmatprep.subr.bf16.mxu0 %v7402_v8  ;;  %361 = vmatprep.subr.bf16.mxu1 %v7409_v11  ;;  %v7412_v12 = vld [vmem:[#allocation4 + $0x2c] ss:$52 sps:$4 sm:$0xff]   ;;  %v7410_v14 = vld [vmem:[#allocation4 + $0x28] ss:$52 sps:$4 sm:$0xff]   ;;  %v8610_v16 = vmov 0.0   ;;  %vm8611_vm1 = vmmov 0  }
  0x60   :  { %v7403_v13 = vld [vmem:[#allocation4 + $0x20] ss:$52 sps:$4 sm:$0xff]   ;;  %v7406_v17 = vld [vmem:[#allocation4 + $0x30] ss:$52 sps:$4 sm:$0xff]  }
  0x61   :  { %6403 = vmatmul.mubr.msk.bf16.vlgmr.msra.gmra.mrb[0].mxu0 %vm234_vm0, %v84_v6  ;;  %6404 = vmatmul.mubr.msk.bf16.vlgmr.msra.gmra.mrb[0].mxu1 %vm234_vm0, %v84_v6  ;;  %v7418_v15 = vld [vmem:[#allocation7 + $0x384] ss:$28 sps:$4 sm:$0xff]   ;;  %v7424_v20 = vld [vmem:[#allocation7 + $0x3bc] ss:$28 sps:$4 sm:$0xff]   ;;  %v7430_v22 = vld [vmem:[#allocation7 + $0x3f4] ss:$28 sps:$4 sm:$0xff]  }
  0x62   :  { %321 = vmatpush1.bf16.msra.mxu0 %v7400_v7  ;;  %352 = vmatprep.mubr.bf16.mxu0 %v8609_v0  ;;  %v7415_v18 = vld [vmem:[#allocation7 + $0x4] ss:$28 sps:$4 sm:$0xff]   ;;  %v7422_v21 = vld [vmem:[#allocation7 + $0x3b8] ss:$28 sps:$4 sm:$0xff]   ;;  %v7428_v25 = vld [vmem:[#allocation7 + $0x3f0] ss:$28 sps:$4 sm:$0xff]  }
  0x63   :  { %402 = vmatprep.subr.bf16.mxu0 %v7405_v9  ;;  %362 = vmatpush1.bf16.msra.mxu1 %v7407_v10  ;;  %v7416_v19 = vld [vmem:[#allocation7 + $0x380] ss:$28 sps:$4 sm:$0xff]   ;;  %v7436_v26 = vld [vmem:[#allocation7 + $0x42c] ss:$28 sps:$4 sm:$0xff]   ;;  %v7419_v27 = vld [vmem:[#allocation7 + $0x38] ss:$28 sps:$4 sm:$0xff]  }
  0x64   :  { %393 = vmatprep.mubr.bf16.mxu1 %v8609_v0  ;;  %443 = vmatprep.subr.bf16.mxu1 %v7412_v12  ;;  %v7413_v23 = vld [vmem:[#allocation7] ss:$28 sps:$4 sm:$0xff]   ;;  %v7427_v28 = vld [vmem:[#allocation7 + $0x74] ss:$28 sps:$4 sm:$0xff]   ;;  %v7434_v29 = vld [vmem:[#allocation7 + $0x428] ss:$28 sps:$4 sm:$0xff]  }
  0x65   :  { %v7421_v24 = vld [vmem:[#allocation7 + $0x3c] ss:$28 sps:$4 sm:$0xff]   ;;  %v7442_v30 = vld [vmem:[#allocation7 + $0x464] ss:$28 sps:$4 sm:$0xff]   ;;  %v7425_v31 = vld [vmem:[#allocation7 + $0x70] ss:$28 sps:$4 sm:$0xff]  }
  0x66   :  { %v7433_v32 = vld [vmem:[#allocation7 + $0xac] ss:$28 sps:$4 sm:$0xff]   ;;  %v7440_v33 = vld [vmem:[#allocation7 + $0x460] ss:$28 sps:$4 sm:$0xff]   ;;  %v7446_v37 = vld [vmem:[#allocation7 + $0x498] ss:$28 sps:$4 sm:$0xff]  }
  0x67   :  { %v7448_v34 = vld [vmem:[#allocation7 + $0x49c] ss:$28 sps:$4 sm:$0xff]   ;;  %v7431_v35 = vld [vmem:[#allocation7 + $0xa8] ss:$28 sps:$4 sm:$0xff]   ;;  %v7454_v38 = vld [vmem:[#allocation7 + $0x4d4] ss:$28 sps:$4 sm:$0xff]  }
  0x68   :  { %v7439_v36 = vld [vmem:[#allocation7 + $0xe4] ss:$28 sps:$4 sm:$0xff]   ;;  %v7445_v40 = vld [vmem:[#allocation7 + $0x11c] ss:$28 sps:$4 sm:$0xff]   ;;  %v7452_v41 = vld [vmem:[#allocation7 + $0x4d0] ss:$28 sps:$4 sm:$0xff]  }
  0x69   :  { %6405 = vmatmul.mubr.msk.bf16.vlgmr.msra.gmra.mrb[4].mxu0 %vm234_vm0, %v84_v6  ;;  %6406 = vmatmul.mubr.msk.bf16.vlgmr.msra.gmra.mrb[4].mxu1 %vm234_vm0, %v84_v6  ;;  %v7437_v39 = vld [vmem:[#allocation7 + $0xe0] ss:$28 sps:$4 sm:$0xff]   ;;  %v7443_v42 = vld [vmem:[#allocation7 + $0x118] ss:$28 sps:$4 sm:$0xff]   ;;  %v7460_v43 = vld [vmem:[#allocation7 + $0x50c] ss:$28 sps:$4 sm:$0xff]  }
  0x6a   :  { %403 = vmatpush1.bf16.msra.mxu0 %v7403_v13  ;;  %434 = vmatprep.mubr.bf16.mxu0 %v8609_v0  ;;  %v7451_v44 = vld [vmem:[#allocation7 + $0x154] ss:$28 sps:$4 sm:$0xff]   ;;  %v7458_v45 = vld [vmem:[#allocation7 + $0x508] ss:$28 sps:$4 sm:$0xff]   ;;  %v7464_v49 = vld [vmem:[#allocation7 + $0x540] ss:$28 sps:$4 sm:$0xff]  }
  0x6b   :  { %7281 = vmatprep.subr.bf16.mxu0 %v8610_v16  ;;  %444 = vmatpush1.bf16.msra.mxu1 %v7410_v14  ;;  %v7466_v46 = vld [vmem:[#allocation7 + $0x544] ss:$28 sps:$4 sm:$0xff]   ;;  %v7449_v47 = vld [vmem:[#allocation7 + $0x150] ss:$28 sps:$4 sm:$0xff]   ;;  %v7472_v50 = vld [vmem:[#allocation7 + $0x57c] ss:$28 sps:$4 sm:$0xff]  }
  0x6c   :  { %475 = vmatprep.mubr.bf16.mxu1 %v8609_v0  ;;  %5204 = vmatprep.subr.bf16.mxu1 %v7418_v15  ;;  %v7457_v48 = vld [vmem:[#allocation7 + $0x18c] ss:$28 sps:$4 sm:$0xff]   ;;  %v7463_v52 = vld [vmem:[#allocation7 + $0x1c4] ss:$28 sps:$4 sm:$0xff]   ;;  %v7470_v53 = vld [vmem:[#allocation7 + $0x578] ss:$28 sps:$4 sm:$0xff]  }
  0x6d   :  { %v7455_v51 = vld [vmem:[#allocation7 + $0x188] ss:$28 sps:$4 sm:$0xff]   ;;  %v7478_v54 = vld [vmem:[#allocation7 + $0x5b4] ss:$28 sps:$4 sm:$0xff]   ;;  %v7461_v55 = vld [vmem:[#allocation7 + $0x1c0] ss:$28 sps:$4 sm:$0xff]  }
  0x6e   :  { %v7469_v56 = vld [vmem:[#allocation7 + $0x1fc] ss:$28 sps:$4 sm:$0xff]   ;;  %v7476_v57 = vld [vmem:[#allocation7 + $0x5b0] ss:$28 sps:$4 sm:$0xff]   ;;  %v7482_v61 = vld [vmem:[#allocation7 + $0x5e8] ss:$28 sps:$4 sm:$0xff]  }
  0x6f   :  { %v7484_v58 = vld [vmem:[#allocation7 + $0x5ec] ss:$28 sps:$4 sm:$0xff]   ;;  %v7467_v59 = vld [vmem:[#allocation7 + $0x1f8] ss:$28 sps:$4 sm:$0xff]   ;;  %v7490_v62 = vld [vmem:[#allocation7 + $0x624] ss:$28 sps:$4 sm:$0xff]  }
  0x70   :  { %v7475_v60 = vld [vmem:[#allocation7 + $0x234] ss:$28 sps:$4 sm:$0xff]   ;;  %v7481_v1 = vld [vmem:[#allocation7 + $0x26c] ss:$28 sps:$4 sm:$0xff]   ;;  %v7488_v2 = vld [vmem:[#allocation7 + $0x620] ss:$28 sps:$4 sm:$0xff]  }
  0x71   :  { %6407 = vmatmul.mubr.msk.bf16.vlgmr.msra.gmra.mrb[8].mxu0 %vm234_vm0, %v84_v6  ;;  %6408 = vmatmul.mubr.msk.bf16.vlgmr.msra.gmra.mrb[8].mxu1 %vm234_vm0, %v84_v6  ;;  %v7473_v63 = vld [vmem:[#allocation7 + $0x230] ss:$28 sps:$4 sm:$0xff]   ;;  %v7496_v3 = vld [vmem:[#allocation7 + $0x65c] ss:$28 sps:$4 sm:$0xff]   ;;  %v7479_v4 = vld [vmem:[#allocation7 + $0x268] ss:$28 sps:$4 sm:$0xff]  }
  0x72   :  { %7282 = vmatpush3.bf16.msra.mxu0 %v7406_v17  ;;  %7283 = vmatprep.mubr.msk.bf16.mxu0 %vm8611_vm1, %v8610_v16  ;;  %v7487_v5 = vld [vmem:[#allocation7 + $0x2a4] ss:$28 sps:$4 sm:$0xff]   ;;  %v7493_v8 = vld [vmem:[#allocation7 + $0x2dc] ss:$28 sps:$4 sm:$0xff]   ;;  %v7499_v10 = vld [vmem:[#allocation7 + $0x314] ss:$28 sps:$4 sm:$0xff]  }
  0x73   :  { %5163 = vmatprep.subr.bf16.mxu0 %v7415_v18  ;;  %5205 = vmatpush1.bf16.msra.mxu1 %v7416_v19  ;;  %v7485_v7 = vld [vmem:[#allocation7 + $0x2a0] ss:$28 sps:$4 sm:$0xff]   ;;  %v7491_v9 = vld [vmem:[#allocation7 + $0x2d8] ss:$28 sps:$4 sm:$0xff]   ;;  %v7497_v12 = vld [vmem:[#allocation7 + $0x310] ss:$28 sps:$4 sm:$0xff]  }
  0x74   :  { %5206 = vmatprep.subr.bf16.mxu1 %v7424_v20  ;;  %v7502_v11 = vld [vmem:[#allocation7 + $0x694] ss:$28 sps:$4 sm:$0xff]   ;;  %v7505_v14 = vld [vmem:[#allocation7 + $0x34c] ss:$28 sps:$4 sm:$0xff]   ;;  %v7511_v19 = vld [vmem:[#allocation7 + $0x704] ss:$28 sps:$4 sm:$0xff]  }
  0x75   :  { %v7500_v13 = vld [vmem:[#allocation7 + $0x690] ss:$28 sps:$4 sm:$0xff]   ;;  %v7503_v17 = vld [vmem:[#allocation7 + $0x348] ss:$28 sps:$4 sm:$0xff]  }
  0x76   :  { %v7508_v15 = vld [vmem:[#allocation7 + $0x6cc] ss:$28 sps:$4 sm:$0xff]   ;;  %v7514_v20 = vld [vmem:[#allocation7 + $0x1504] ss:$28 sps:$4 sm:$0xff]  }
  0x77   :  { %5207 = vmatpush1.bf16.msra.mxu1 %v7422_v21  ;;  %v7506_v18 = vld [vmem:[#allocation7 + $0x6c8] ss:$28 sps:$4 sm:$0xff]   ;;  %v103_v21 = vlaneseq }
  0x78   :  { %5208 = vmatprep.subr.bf16.mxu1 %v7430_v22 }
  0x79   :  { %7284 = vmatmul.mubr.msk.bf16.vlgmr.msra.gmra.mrb[12].mxu0 %vm234_vm0, %v84_v6  ;;  %v7494_v6 = vld [vmem:[#allocation7 + $0x658] ss:$28 sps:$4 sm:$0xff]   ;;  %v8719_v22 = vshrl.u32 %v103_v21, 7  ;;  %v7538_v21 = vld [vmem:[#allocation7 + $0x15e4] ss:$28 sps:$4 sm:$0xff]  }
  0x7a   :  { %5164 = vmatpush1.bf16.msra.mxu0 %v7413_v23 }
  0x7b   :  { %5165 = vmatprep.subr.bf16.mxu0 %v7421_v24  ;;  %5209 = vmatpush1.bf16.msra.mxu1 %v7428_v25  ;;  %v8722_v23 = vsub.s32 0, %v8719_v22  ;;  %v8725_v24 = vsub.s32 2, %v8719_v22  ;;  %v8727_v25 = vld [vmem:[#allocation6] sm:$0xff] }
  0x7c   :  { %5210 = vmatprep.subr.bf16.mxu1 %v7436_v26  ;;  %v8730_v26 = vsub.s32 1, %v8719_v22 }
  0x7e   :  { %5166 = vmatpush1.bf16.msra.mxu0 %v7419_v27  ;;  %v8733_v27 = vsub.s32 3, %v8719_v22 }
  0x7f   :  { %5167 = vmatprep.subr.bf16.mxu0 %v7427_v28  ;;  %5211 = vmatpush1.bf16.msra.mxu1 %v7434_v29  ;;  %v106_v28 = vrot.slane %v8727_v25, %v8722_v23  ;;  %v114_v29 = vrot.slane %v8727_v25, %v8725_v24 }
  0x80   :  { %5212 = vmatprep.subr.bf16.mxu1 %v7442_v30  ;;  %v110_v30 = vrot.slane %v8727_v25, %v8730_v26 }
  0x82   :  { %5168 = vmatpush1.bf16.msra.mxu0 %v7425_v31  ;;  %v118_v31 = vrot.slane %v8727_v25, %v8733_v27 }
  0x83   :  { %5169 = vmatprep.subr.bf16.mxu0 %v7433_v32  ;;  %5213 = vmatpush1.bf16.msra.mxu1 %v7440_v33 }
  0x84   :  { %5214 = vmatprep.subr.bf16.mxu1 %v7448_v34 }
  0x86   :  { %5170 = vmatpush1.bf16.msra.mxu0 %v7431_v35 }
  0x87   :  { %5171 = vmatprep.subr.bf16.mxu0 %v7439_v36  ;;  %5215 = vmatpush1.bf16.msra.mxu1 %v7446_v37 }
  0x88   :  { %5216 = vmatprep.subr.bf16.mxu1 %v7454_v38 }
  0x8a   :  { %5172 = vmatpush1.bf16.msra.mxu0 %v7437_v39 }
  0x8b   :  { %5173 = vmatprep.subr.bf16.mxu0 %v7445_v40  ;;  %5217 = vmatpush1.bf16.msra.mxu1 %v7452_v41 }
  0x8c   :  { %5218 = vmatprep.subr.bf16.mxu1 %v7460_v43 }
  0x8e   :  { %5174 = vmatpush1.bf16.msra.mxu0 %v7443_v42  ;;  %v125_v42 = vsub.s32 5, %v8719_v22 }
  0x8f   :  { %5175 = vmatprep.subr.bf16.mxu0 %v7451_v44  ;;  %5219 = vmatpush1.bf16.msra.mxu1 %v7458_v45 }
  0x90   :  { %5220 = vmatprep.subr.bf16.mxu1 %v7466_v46 }
  0x92   :  { %5176 = vmatpush1.bf16.msra.mxu0 %v7449_v47 }
  0x93   :  { %5177 = vmatprep.subr.bf16.mxu0 %v7457_v48  ;;  %5221 = vmatpush1.bf16.msra.mxu1 %v7464_v49  ;;  %v7509_v49 = vld [vmem:[#allocation7 + $0x700] ss:$28 sps:$4 sm:$0xff]  }
  0x94   :  { %5222 = vmatprep.subr.bf16.mxu1 %v7472_v50  ;;  %v7512_v50 = vld [vmem:[#allocation7 + $0x1500] ss:$28 sps:$4 sm:$0xff]  }
  0x96   :  { %5178 = vmatpush1.bf16.msra.mxu0 %v7455_v51 }
  0x97   :  { %5179 = vmatprep.subr.bf16.mxu0 %v7463_v52  ;;  %5223 = vmatpush1.bf16.msra.mxu1 %v7470_v53  ;;  %v7517_v52 = vld [vmem:[#allocation7 + $0x73c] ss:$28 sps:$4 sm:$0xff]  }
  0x98   :  { %5224 = vmatprep.subr.bf16.mxu1 %v7478_v54  ;;  %v7520_v53 = vld [vmem:[#allocation7 + $0x153c] ss:$28 sps:$4 sm:$0xff]  }
  0x9a   :  { %5180 = vmatpush1.bf16.msra.mxu0 %v7461_v55 }
  0x9b   :  { %5181 = vmatprep.subr.bf16.mxu0 %v7469_v56  ;;  %5225 = vmatpush1.bf16.msra.mxu1 %v7476_v57  ;;  %v126_v56 = vrot.slane %v8727_v25, %v125_v42 }
  0x9c   :  { %5226 = vmatprep.subr.bf16.mxu1 %v7484_v58 }
  0x9e   :  { %5182 = vmatpush1.bf16.msra.mxu0 %v7467_v59 }
  0x9f   :  { %5183 = vmatprep.subr.bf16.mxu0 %v7475_v60  ;;  %5227 = vmatpush1.bf16.msra.mxu1 %v7482_v61  ;;  %v7515_v60 = vld [vmem:[#allocation7 + $0x738] ss:$28 sps:$4 sm:$0xff]  }
  0xa0   :  { %5228 = vmatprep.subr.bf16.mxu1 %v7490_v62  ;;  %v7518_v61 = vld [vmem:[#allocation7 + $0x1538] ss:$28 sps:$4 sm:$0xff]  }
  0xa2   :  { %5184 = vmatpush1.bf16.msra.mxu0 %v7473_v63 }
  0xa3   :  { %5185 = vmatprep.subr.bf16.mxu0 %v7481_v1  ;;  %5229 = vmatpush1.bf16.msra.mxu1 %v7488_v2 }
  0xa4   :  { %5230 = vmatprep.subr.bf16.mxu1 %v7496_v3 }
  0xa6   :  { %5186 = vmatpush1.bf16.msra.mxu0 %v7479_v4  ;;  %v7523_v4 = vld [vmem:[#allocation7 + $0x774] ss:$28 sps:$4 sm:$0xff]  }
  0xa7   :  { %5187 = vmatprep.subr.bf16.mxu0 %v7487_v5  ;;  %5231 = vmatpush1.bf16.msra.mxu1 %v7494_v6  ;;  %v7526_v5 = vld [vmem:[#allocation7 + $0x1574] ss:$28 sps:$4 sm:$0xff]  }
  0xa8   :  { %5232 = vmatprep.subr.bf16.mxu1 %v7502_v11 }
  0xaa   :  { %5188 = vmatpush1.bf16.msra.mxu0 %v7485_v7 }
  0xab   :  { %5189 = vmatprep.subr.bf16.mxu0 %v7493_v8  ;;  %5233 = vmatpush1.bf16.msra.mxu1 %v7500_v13  ;;  %v7521_v8 = vld [vmem:[#allocation7 + $0x770] ss:$28 sps:$4 sm:$0xff]  }
  0xac   :  { %5234 = vmatprep.subr.bf16.mxu1 %v7508_v15  ;;  %v7532_v13 = vld [vmem:[#allocation7 + $0x15ac] ss:$28 sps:$4 sm:$0xff]  }
  0xad   :  { %v7530_v15 = vld [vmem:[#allocation7 + $0x15a8] ss:$28 sps:$4 sm:$0xff]  }
  0xae   :  { %5190 = vmatpush1.bf16.msra.mxu0 %v7491_v9 }
  0xaf   :  { %5191 = vmatprep.subr.bf16.mxu0 %v7499_v10  ;;  %5235 = vmatpush1.bf16.msra.mxu1 %v7506_v18  ;;  %v7524_v10 = vld [vmem:[#allocation7 + $0x1570] ss:$28 sps:$4 sm:$0xff]  }
  0xb0   :  { %5245 = vmatprep.subr.bf16.mxu1 %v7511_v19 }
  0xb2   :  { %5192 = vmatpush1.bf16.msra.mxu0 %v7497_v12  ;;  %v7529_v12 = vld [vmem:[#allocation7 + $0x7ac] ss:$28 sps:$4 sm:$0xff]  }
  0xb3   :  { %5193 = vmatprep.subr.bf16.mxu0 %v7505_v14  ;;  %v7527_v14 = vld [vmem:[#allocation7 + $0x7a8] ss:$28 sps:$4 sm:$0xff]  }
  0xb6   :  { %5194 = vmatpush1.bf16.msra.mxu0 %v7503_v17 }
  0xb7   :  { %5409 = vmatprep.subr.bf16.mxu0 %v7514_v20  ;;  %v7535_v20 = vld [vmem:[#allocation7 + $0x7e4] ss:$28 sps:$4 sm:$0xff]  }
 0x134   :  { %v272_v32 = vpop.f32.mrb[0].mxu0  ;;  %v313_v33 = vpop.f32.mrb[0].mxu1 }
 0x135   :  { %v273_v34 = vadd.f32 %v272_v32, %v106_v28  ;;  %v314_v35 = vadd.f32 %v313_v33, %v114_v29  ;;  %v274_v36 = vpop.f32.mrb[1].mxu0  ;;  %v315_v37 = vpop.f32.mrb[1].mxu1  ;;  %v7533_v29 = vld [vmem:[#allocation7 + $0x7e0] ss:$28 sps:$4 sm:$0xff]  }
 0x136   :  { %v275_v38 = vadd.f32 %v274_v36, %v110_v30  ;;  %v316_v39 = vadd.f32 %v315_v37, %v118_v31  ;;  %v276_v40 = vpop.f32.mrb[2].mxu0  ;;  %v317_v41 = vpop.f32.mrb[2].mxu1  ;;  %v7536_v30 = vld [vmem:[#allocation7 + $0x15e0] ss:$28 sps:$4 sm:$0xff]   ;;  %v8774_v31 = vsub.s32 4, %v8719_v22 }
 0x137   :  { %v524_v43 = vmax.f32 %v273_v34, 0.0  ;;  %v526_v44 = vmax.f32 %v314_v35, 0.0  ;;  %v277_v45 = vpop.f32.mrb[3].mxu0  ;;  %v318_v46 = vpop.f32.mrb[3].mxu1  ;;  %v8776_v32 = vld [vmem:[#allocation6 + $0x8] sm:$0x1f] }
 0x138   :  { %v525_v47 = vmax.f32 %v275_v38, 0.0  ;;  %v527_v48 = vmax.f32 %v316_v39, 0.0  ;;  %v7541_v33 = vld [vmem:[#allocation7 + $0x81c] ss:$28 sps:$4 sm:$0xff]   ;;  %v7547_v39 = vld [vmem:[#allocation7 + $0x854] ss:$28 sps:$4 sm:$0xff]   ;;  %v154_v40 = vrot.slane %v8776_v32, %v8774_v31 }
 0x139   :  { %v8744_v51 = vpack.c.bf16 %v524_v43, %v524_v43  ;;  %v8753_v57 = vpack.c.bf16 %v526_v44, %v526_v44  ;;  %v7544_v34 = vld [vmem:[#allocation7 + $0x161c] ss:$28 sps:$4 sm:$0xff]   ;;  %v7550_v44 = vld [vmem:[#allocation7 + $0x1654] ss:$28 sps:$4 sm:$0xff]  }
 0x13a   :  { %v8746_v54 = vpack.c.bf16 %v525_v47, %v525_v47  ;;  %v8748_v55 = vpack.c.bf16 %v527_v48, %v527_v48  ;;  %v7539_v35 = vld [vmem:[#allocation7 + $0x818] ss:$28 sps:$4 sm:$0xff]   ;;  %v7545_v47 = vld [vmem:[#allocation7 + $0x850] ss:$28 sps:$4 sm:$0xff]  }
 0x13b   :  { %v7542_v36 = vld [vmem:[#allocation7 + $0x1618] ss:$28 sps:$4 sm:$0xff]  }
 0x13c   :  { %5195 = vmatprep.mubr.bf16.mxu0 %v8746_v54  ;;  %5236 = vmatprep.mubr.bf16.mxu1 %v8748_v55  ;;  %v8757_v58 = vpop.f32.mrb[4].mxu0  ;;  %v8759_v59 = vpop.f32.mrb[4].mxu1 }
 0x13d   :  { %5196 = vmatmul.mubr.bf16.vlgmr.msra.gmra.mrb[16].mxu0 %v8744_v51  ;;  %5237 = vmatmul.mubr.bf16.vlgmr.msra.gmra.mrb[12].mxu1 %v8753_v57  ;;  %v356_v62 = vpop.f32.mrb[5].mxu0  ;;  %v8763_v63 = vpop.f32.mrb[5].mxu1 }
 0x13e   :  { %5246 = vmatpush1.bf16.msra.mxu1 %v7509_v49  ;;  %5410 = vmatpush1.bf16.msra.mxu0 %v7512_v50  ;;  %v357_v1 = vadd.f32 %v356_v62, %v126_v56  ;;  %v358_v2 = vpop.f32.mrb[6].mxu0  ;;  %v399_v3 = vpop.f32.mrb[6].mxu1  ;;  %v7548_v49 = vld [vmem:[#allocation7 + $0x1650] ss:$28 sps:$4 sm:$0xff]  }
 0x13f   :  { %5247 = vmatprep.subr.bf16.mxu1 %v7517_v52  ;;  %5411 = vmatprep.subr.bf16.mxu0 %v7520_v53  ;;  %v359_v6 = vpop.f32.mrb[7].mxu0  ;;  %v400_v7 = vpop.f32.mrb[7].mxu1  ;;  %v7553_v53 = vld [vmem:[#allocation7 + $0x88c] ss:$28 sps:$4 sm:$0xff]   ;;  %v7557_v3 = vld [vmem:[#allocation7 + $0x8c0] ss:$28 sps:$4 sm:$0xff]  }
 0x140   :  { %v529_v9 = vmax.f32 %v357_v1, 0.0  ;;  %5441 = vmatprep.mubr.bf16.mxu0 %v8609_v0  ;;  %v7556_v56 = vld [vmem:[#allocation7 + $0x168c] ss:$28 sps:$4 sm:$0xff]   ;;  %v7559_v1 = vld [vmem:[#allocation7 + $0x8c4] ss:$28 sps:$4 sm:$0xff]  }
 0x141   :  { %v7562_v2 = vld [vmem:[#allocation7 + $0xc] ss:$28 sps:$4 sm:$0xff]   ;;  %v7565_v6 = vld [vmem:[#allocation7 + $0x8fc] ss:$28 sps:$4 sm:$0xff]  }
 0x142   :  { %5248 = vmatpush1.bf16.msra.mxu1 %v7515_v60  ;;  %5412 = vmatpush1.bf16.msra.mxu0 %v7518_v61  ;;  %v8766_v11 = vpack.c.bf16 %v529_v9, %v529_v9  ;;  %v7551_v60 = vld [vmem:[#allocation7 + $0x888] ss:$28 sps:$4 sm:$0xff]   ;;  %v7563_v7 = vld [vmem:[#allocation7 + $0x8f8] ss:$28 sps:$4 sm:$0xff]   ;;  %v7566_v9 = vld [vmem:[#allocation7 + $0x40] ss:$28 sps:$4 sm:$0xff]  }
 0x143   :  { %5249 = vmatprep.subr.bf16.mxu1 %v7523_v4  ;;  %5413 = vmatprep.subr.bf16.mxu0 %v7526_v5  ;;  %v7554_v61 = vld [vmem:[#allocation7 + $0x1688] ss:$28 sps:$4 sm:$0xff]  }
 0x144   :  { %v8768_v17 = vpop.f32.mrb[8].mxu0  ;;  %5277 = vmatprep.mubr.bf16.mxu1 %v8766_v11  ;;  %v8778_v38 = vpop.f32.mrb[8].mxu1  ;;  %v7560_v4 = vld [vmem:[#allocation7 + $0x8] ss:$28 sps:$4 sm:$0xff]  }
 0x145   :  { %v8771_v18 = vpop.f32.mrb[9].mxu0  ;;  %v8782_v46 = vpop.f32.mrb[9].mxu1 }
 0x146   :  { %5250 = vmatpush1.bf16.msra.mxu1 %v7521_v8  ;;  %5414 = vmatpush1.bf16.msra.mxu0 %v7524_v10  ;;  %v440_v19 = vpop.f32.mrb[10].mxu0  ;;  %v481_v48 = vpop.f32.mrb[10].mxu1  ;;  %v7568_v8 = vld [vmem:[#allocation7 + $0x44] ss:$28 sps:$4 sm:$0xff]   ;;  %v7571_v10 = vld [vmem:[#allocation7 + $0x934] ss:$28 sps:$4 sm:$0xff]  }
 0x147   :  { %5251 = vmatprep.subr.bf16.mxu1 %v7529_v12  ;;  %5415 = vmatprep.subr.bf16.mxu0 %v7532_v13  ;;  %v441_v28 = vpop.f32.mrb[11].mxu0  ;;  %v482_v52 = vpop.f32.mrb[11].mxu1  ;;  %v7574_v12 = vld [vmem:[#allocation7 + $0x7c] ss:$28 sps:$4 sm:$0xff]   ;;  %v7569_v13 = vld [vmem:[#allocation7 + $0x930] ss:$28 sps:$4 sm:$0xff]  }
 0x148   :  { %v7580_v19 = vld [vmem:[#allocation7 + $0xb4] ss:$28 sps:$4 sm:$0xff]   ;;  %v7583_v28 = vld [vmem:[#allocation7 + $0x9a4] ss:$28 sps:$4 sm:$0xff]  }
 0x149   :  { %v7599_v52 = vld [vmem:[#allocation7 + $0xa48] ss:$28 sps:$4 sm:$0xff]  }
 0x14a   :  { %5252 = vmatpush1.bf16.msra.mxu1 %v7527_v14  ;;  %5416 = vmatpush1.bf16.msra.mxu0 %v7530_v15  ;;  %v7572_v14 = vld [vmem:[#allocation7 + $0x78] ss:$28 sps:$4 sm:$0xff]   ;;  %v7577_v15 = vld [vmem:[#allocation7 + $0x96c] ss:$28 sps:$4 sm:$0xff]  }
 0x14b   :  { %5253 = vmatprep.subr.bf16.mxu1 %v7535_v20  ;;  %5417 = vmatprep.subr.bf16.mxu0 %v7538_v21  ;;  %v7575_v20 = vld [vmem:[#allocation7 + $0x968] ss:$28 sps:$4 sm:$0xff]   ;;  %v7578_v21 = vld [vmem:[#allocation7 + $0xb0] ss:$28 sps:$4 sm:$0xff]  }
 0x14c   :  { %v518_v37 = vpop.f32.mrb[12].mxu0 }
 0x14d   :  { %v7285_v41 = vpop.f32.mrb[13].mxu0  ;;  %v519_v50 = vadd.f32 %v518_v37, %v154_v40  ;;  %v7590_v37 = vld [vmem:[#allocation7 + $0x120] ss:$28 sps:$4 sm:$0xff]   ;;  %v122_v40 = vrot.slane %v8727_v25, %v8774_v31 }
 0x14e   :  { %5254 = vmatpush1.bf16.msra.mxu1 %v7533_v29  ;;  %5418 = vmatpush1.bf16.msra.mxu0 %v7536_v30  ;;  %v521_v43 = vpop.f32.mrb[14].mxu0  ;;  %v7586_v29 = vld [vmem:[#allocation7 + $0xec] ss:$28 sps:$4 sm:$0xff]   ;;  %v7581_v30 = vld [vmem:[#allocation7 + $0x9a0] ss:$28 sps:$4 sm:$0xff]  }
 0x14f   :  { %5255 = vmatprep.subr.bf16.mxu1 %v7541_v33  ;;  %5419 = vmatprep.subr.bf16.mxu0 %v7544_v34  ;;  %v7286_v45 = vpop.f32.mrb[15].mxu0  ;;  %v536_v62 = vmax.f32 %v519_v50, 0.0  ;;  %v7584_v33 = vld [vmem:[#allocation7 + $0xe8] ss:$28 sps:$4 sm:$0xff]   ;;  %v7589_v34 = vld [vmem:[#allocation7 + $0x9dc] ss:$28 sps:$4 sm:$0xff]   ;;  %v355_v48 = vadd.f32 %v8757_v58, %v122_v40 }
 0x150   :  { %v7595_v41 = vld [vmem:[#allocation7 + $0xa14] ss:$28 sps:$4 sm:$0xff]   ;;  %v7598_v43 = vld [vmem:[#allocation7 + $0x15c] ss:$28 sps:$4 sm:$0xff]   ;;  %v7616_v58 = vld [vmem:[#allocation7 + $0x204] ss:$28 sps:$4 sm:$0xff]  }
 0x151   :  { %v8784_v5 = vpack.c.bf16 %v536_v62, %v536_v62  ;;  %v7596_v45 = vld [vmem:[#allocation7 + $0x158] ss:$28 sps:$4 sm:$0xff]   ;;  %v7610_v62 = vld [vmem:[#allocation7 + $0x1cc] ss:$28 sps:$4 sm:$0xff]  }
 0x152   :  { %5256 = vmatpush1.bf16.msra.mxu1 %v7539_v35  ;;  %5420 = vmatpush1.bf16.msra.mxu0 %v7542_v36  ;;  %v7592_v35 = vld [vmem:[#allocation7 + $0x124] ss:$28 sps:$4 sm:$0xff]   ;;  %v7587_v36 = vld [vmem:[#allocation7 + $0x9d8] ss:$28 sps:$4 sm:$0xff]  }
 0x153   :  { %5257 = vmatprep.subr.bf16.mxu1 %v7547_v39  ;;  %5421 = vmatprep.subr.bf16.mxu0 %v7550_v44  ;;  %v133_v39 = vsub.s32 7, %v8719_v22  ;;  %v7593_v44 = vld [vmem:[#allocation7 + $0xa10] ss:$28 sps:$4 sm:$0xff]   ;;  %v7644_v40 = vld [vmem:[#allocation7 + $0x318] ss:$28 sps:$4 sm:$0xff]  }
 0x154   :  { %v7604_v50 = vld [vmem:[#allocation7 + $0x194] ss:$28 sps:$4 sm:$0xff]  }
 0x156   :  { %5258 = vmatpush1.bf16.msra.mxu1 %v7545_v47  ;;  %5422 = vmatpush1.bf16.msra.mxu0 %v7548_v49  ;;  %v134_v47 = vrot.slane %v8727_v25, %v133_v39  ;;  %v7601_v49 = vld [vmem:[#allocation7 + $0xa4c] ss:$28 sps:$4 sm:$0xff]   ;;  %v7605_v25 = vld [vmem:[#allocation7 + $0xa80] ss:$28 sps:$4 sm:$0xff]  }
 0x157   :  { %5259 = vmatprep.subr.bf16.mxu1 %v7553_v53  ;;  %5423 = vmatprep.subr.bf16.mxu0 %v7556_v56  ;;  %v7602_v53 = vld [vmem:[#allocation7 + $0x190] ss:$28 sps:$4 sm:$0xff]  }
 0x158   :  { %v398_v56 = vadd.f32 %v8763_v63, %v134_v47  ;;  %v7611_v63 = vld [vmem:[#allocation7 + $0xab8] ss:$28 sps:$4 sm:$0xff]   ;;  %v7641_v39 = vld [vmem:[#allocation7 + $0xbd0] ss:$28 sps:$4 sm:$0xff]   ;;  %v7655_v47 = vld [vmem:[#allocation7 + $0xc44] ss:$28 sps:$4 sm:$0xff]  }
 0x15a   :  { %5260 = vmatpush1.bf16.msra.mxu1 %v7551_v60  ;;  %5424 = vmatpush1.bf16.msra.mxu0 %v7554_v61  ;;  %v528_v60 = vmax.f32 %v355_v48, 0.0  ;;  %v7607_v61 = vld [vmem:[#allocation7 + $0xa84] ss:$28 sps:$4 sm:$0xff]   ;;  %v7658_v48 = vld [vmem:[#allocation7 + $0x38c] ss:$28 sps:$4 sm:$0xff]  }
 0x15b   :  { %5261 = vmatprep.subr.bf16.mxu1 %v7559_v1  ;;  %5450 = vmatprep.subr.bf16.mxu0 %v7562_v2  ;;  %v7608_v1 = vld [vmem:[#allocation7 + $0x1c8] ss:$28 sps:$4 sm:$0xff]   ;;  %v531_v2 = vmax.f32 %v398_v56, 0.0 }
 0x15c   :  { %v7664_v56 = vld [vmem:[#allocation7 + $0x3c4] ss:$28 sps:$4 sm:$0xff]  }
 0x15d   :  { %5442 = vmatmul.mubr.bf16.vlgmr.msra.gmra.mrb[20].mxu0 %v8784_v5 }
 0x15e   :  { %5262 = vmatpush1.bf16.msra.mxu1 %v7557_v3  ;;  %5451 = vmatpush1.bf16.msra.mxu0 %v7560_v4  ;;  %v7613_v3 = vld [vmem:[#allocation7 + $0xabc] ss:$28 sps:$4 sm:$0xff]   ;;  %v8794_v4 = vpack.c.bf16 %v528_v60, %v528_v60 }
 0x15f   :  { %5482 = vmatprep.mubr.bf16.mxu0 %v8746_v54  ;;  %5263 = vmatprep.subr.bf16.mxu1 %v7565_v6  ;;  %v8796_v6 = vpack.c.bf16 %v531_v2, %v531_v2  ;;  %v7662_v60 = vld [vmem:[#allocation7 + $0x3c0] ss:$28 sps:$4 sm:$0xff]   ;;  %v7673_v2 = vld [vmem:[#allocation7 + $0xcec] ss:$28 sps:$4 sm:$0xff]  }
 0x160   :  { %5452 = vmatprep.subr.bf16.mxu0 %v7568_v8  ;;  %v7619_v8 = vld [vmem:[#allocation7 + $0xaf4] ss:$28 sps:$4 sm:$0xff]  }
 0x162   :  { %5264 = vmatpush1.bf16.msra.mxu1 %v7563_v7  ;;  %5453 = vmatpush1.bf16.msra.mxu0 %v7566_v9  ;;  %v7614_v7 = vld [vmem:[#allocation7 + $0x200] ss:$28 sps:$4 sm:$0xff]  }
 0x163   :  { %5265 = vmatprep.subr.bf16.mxu1 %v7571_v10  ;;  %5454 = vmatprep.subr.bf16.mxu0 %v7574_v12  ;;  %v7622_v9 = vld [vmem:[#allocation7 + $0x23c] ss:$28 sps:$4 sm:$0xff]   ;;  %v7617_v10 = vld [vmem:[#allocation7 + $0xaf0] ss:$28 sps:$4 sm:$0xff]  }
 0x164   :  { %v7620_v12 = vld [vmem:[#allocation7 + $0x238] ss:$28 sps:$4 sm:$0xff]  }
 0x166   :  { %5266 = vmatpush1.bf16.msra.mxu1 %v7569_v13  ;;  %5455 = vmatpush1.bf16.msra.mxu0 %v7572_v14  ;;  %v7625_v13 = vld [vmem:[#allocation7 + $0xb2c] ss:$28 sps:$4 sm:$0xff]   ;;  %v7628_v14 = vld [vmem:[#allocation7 + $0x274] ss:$28 sps:$4 sm:$0xff]  }
 0x167   :  { %5267 = vmatprep.subr.bf16.mxu1 %v7577_v15  ;;  %5456 = vmatprep.subr.bf16.mxu0 %v7580_v19  ;;  %v7623_v15 = vld [vmem:[#allocation7 + $0xb28] ss:$28 sps:$4 sm:$0xff]   ;;  %v7626_v19 = vld [vmem:[#allocation7 + $0x270] ss:$28 sps:$4 sm:$0xff]  }
 0x16a   :  { %5268 = vmatpush1.bf16.msra.mxu1 %v7575_v20  ;;  %5457 = vmatpush1.bf16.msra.mxu0 %v7578_v21  ;;  %v7631_v20 = vld [vmem:[#allocation7 + $0xb64] ss:$28 sps:$4 sm:$0xff]   ;;  %v7634_v21 = vld [vmem:[#allocation7 + $0x2ac] ss:$28 sps:$4 sm:$0xff]  }
 0x16b   :  { %5269 = vmatprep.subr.bf16.mxu1 %v7583_v28  ;;  %5458 = vmatprep.subr.bf16.mxu0 %v7586_v29  ;;  %v7629_v28 = vld [vmem:[#allocation7 + $0xb60] ss:$28 sps:$4 sm:$0xff]   ;;  %v7632_v29 = vld [vmem:[#allocation7 + $0x2a8] ss:$28 sps:$4 sm:$0xff]  }
 0x16e   :  { %5270 = vmatpush1.bf16.msra.mxu1 %v7581_v30  ;;  %5459 = vmatpush1.bf16.msra.mxu0 %v7584_v33  ;;  %v7637_v30 = vld [vmem:[#allocation7 + $0xb9c] ss:$28 sps:$4 sm:$0xff]   ;;  %v7640_v33 = vld [vmem:[#allocation7 + $0x2e4] ss:$28 sps:$4 sm:$0xff]  }
 0x16f   :  { %5271 = vmatprep.subr.bf16.mxu1 %v7589_v34  ;;  %5460 = vmatprep.subr.bf16.mxu0 %v7592_v35  ;;  %v7635_v34 = vld [vmem:[#allocation7 + $0xb98] ss:$28 sps:$4 sm:$0xff]   ;;  %v7638_v35 = vld [vmem:[#allocation7 + $0x2e0] ss:$28 sps:$4 sm:$0xff]  }
 0x172   :  { %5272 = vmatpush1.bf16.msra.mxu1 %v7587_v36  ;;  %5461 = vmatpush1.bf16.msra.mxu0 %v7590_v37  ;;  %v7643_v36 = vld [vmem:[#allocation7 + $0xbd4] ss:$28 sps:$4 sm:$0xff]   ;;  %v7646_v37 = vld [vmem:[#allocation7 + $0x31c] ss:$28 sps:$4 sm:$0xff]  }
 0x173   :  { %5273 = vmatprep.subr.bf16.mxu1 %v7595_v41  ;;  %5462 = vmatprep.subr.bf16.mxu0 %v7598_v43  ;;  %v7649_v41 = vld [vmem:[#allocation7 + $0xc0c] ss:$28 sps:$4 sm:$0xff]   ;;  %v7652_v43 = vld [vmem:[#allocation7 + $0x354] ss:$28 sps:$4 sm:$0xff]  }
 0x176   :  { %5274 = vmatpush1.bf16.msra.mxu1 %v7593_v44  ;;  %5463 = vmatpush1.bf16.msra.mxu0 %v7596_v45  ;;  %v7647_v44 = vld [vmem:[#allocation7 + $0xc08] ss:$28 sps:$4 sm:$0xff]   ;;  %v7650_v45 = vld [vmem:[#allocation7 + $0x350] ss:$28 sps:$4 sm:$0xff]  }
 0x177   :  { %5275 = vmatprep.subr.bf16.mxu1 %v7601_v49  ;;  %5464 = vmatprep.subr.bf16.mxu0 %v7604_v50  ;;  %v7653_v49 = vld [vmem:[#allocation7 + $0xc40] ss:$28 sps:$4 sm:$0xff]   ;;  %v7656_v50 = vld [vmem:[#allocation7 + $0x388] ss:$28 sps:$4 sm:$0xff]  }
 0x17a   :  { %5276 = vmatpush1.bf16.msra.mxu1 %v7599_v52  ;;  %5465 = vmatpush1.bf16.msra.mxu0 %v7602_v53  ;;  %v7661_v52 = vld [vmem:[#allocation7 + $0xc7c] ss:$28 sps:$4 sm:$0xff]  }
 0x17b   :  { %5286 = vmatprep.subr.bf16.mxu1 %v7607_v61  ;;  %5466 = vmatprep.subr.bf16.mxu0 %v7610_v62  ;;  %v7659_v53 = vld [vmem:[#allocation7 + $0xc78] ss:$28 sps:$4 sm:$0xff]  }
 0x17c   :  { %v7667_v61 = vld [vmem:[#allocation7 + $0xcb4] ss:$28 sps:$4 sm:$0xff]   ;;  %v7670_v62 = vld [vmem:[#allocation7 + $0x3fc] ss:$28 sps:$4 sm:$0xff]  }
 0x17d   :  { %5278 = vmatmul.mubr.bf16.vlgmr.msra.gmra.mrb[12].mxu1 %v8794_v4 }
 0x17e   :  { %5287 = vmatpush1.bf16.msra.mxu1 %v7605_v25  ;;  %5467 = vmatpush1.bf16.msra.mxu0 %v7608_v1  ;;  %v7665_v25 = vld [vmem:[#allocation7 + $0xcb0] ss:$28 sps:$4 sm:$0xff]   ;;  %v7668_v1 = vld [vmem:[#allocation7 + $0x3f8] ss:$28 sps:$4 sm:$0xff]  }
 0x17f   :  { %5288 = vmatprep.subr.bf16.mxu1 %v7613_v3  ;;  %5468 = vmatprep.subr.bf16.mxu0 %v7616_v58  ;;  %v7676_v3 = vld [vmem:[#allocation7 + $0x434] ss:$28 sps:$4 sm:$0xff]   ;;  %v7671_v58 = vld [vmem:[#allocation7 + $0xce8] ss:$28 sps:$4 sm:$0xff]  }
 0x180   :  { %5318 = vmatprep.mubr.bf16.mxu1 %v8796_v6 }
 0x182   :  { %5289 = vmatpush1.bf16.msra.mxu1 %v7611_v63  ;;  %5469 = vmatpush1.bf16.msra.mxu0 %v7614_v7  ;;  %v7674_v63 = vld [vmem:[#allocation7 + $0x430] ss:$28 sps:$4 sm:$0xff]   ;;  %v7679_v7 = vld [vmem:[#allocation7 + $0xd24] ss:$28 sps:$4 sm:$0xff]  }
 0x183   :  { %5290 = vmatprep.subr.bf16.mxu1 %v7619_v8  ;;  %5470 = vmatprep.subr.bf16.mxu0 %v7622_v9  ;;  %v7682_v8 = vld [vmem:[#allocation7 + $0x46c] ss:$28 sps:$4 sm:$0xff]   ;;  %v7677_v9 = vld [vmem:[#allocation7 + $0xd20] ss:$28 sps:$4 sm:$0xff]  }
 0x186   :  { %5291 = vmatpush1.bf16.msra.mxu1 %v7617_v10  ;;  %5471 = vmatpush1.bf16.msra.mxu0 %v7620_v12  ;;  %v7680_v10 = vld [vmem:[#allocation7 + $0x468] ss:$28 sps:$4 sm:$0xff]   ;;  %v129_v12 = vsub.s32 6, %v8719_v22 }
 0x187   :  { %5292 = vmatprep.subr.bf16.mxu1 %v7625_v13  ;;  %5472 = vmatprep.subr.bf16.mxu0 %v7628_v14  ;;  %v7685_v13 = vld [vmem:[#allocation7 + $0xd5c] ss:$28 sps:$4 sm:$0xff]   ;;  %v7688_v14 = vld [vmem:[#allocation7 + $0x4a4] ss:$28 sps:$4 sm:$0xff]  }
 0x18a   :  { %5293 = vmatpush1.bf16.msra.mxu1 %v7623_v15  ;;  %5473 = vmatpush1.bf16.msra.mxu0 %v7626_v19  ;;  %v7683_v15 = vld [vmem:[#allocation7 + $0xd58] ss:$28 sps:$4 sm:$0xff]   ;;  %v7686_v19 = vld [vmem:[#allocation7 + $0x4a0] ss:$28 sps:$4 sm:$0xff]  }
 0x18b   :  { %5294 = vmatprep.subr.bf16.mxu1 %v7631_v20  ;;  %5474 = vmatprep.subr.bf16.mxu0 %v7634_v21  ;;  %v8481_v20 = vld [vmem:[#allocation6] sm:$0xff] }
 0x18c   :  { %v130_v21 = vrot.slane %v8481_v20, %v129_v12  ;;  %v7742_v20 = vld [vmem:[#allocation7 + $0x69c] ss:$28 sps:$4 sm:$0xff]  }
 0x18e   :  { %5295 = vmatpush1.bf16.msra.mxu1 %v7629_v28  ;;  %5475 = vmatpush1.bf16.msra.mxu0 %v7632_v29  ;;  %v7691_v28 = vld [vmem:[#allocation7 + $0xd94] ss:$28 sps:$4 sm:$0xff]   ;;  %v7694_v29 = vld [vmem:[#allocation7 + $0x4dc] ss:$28 sps:$4 sm:$0xff]  }
 0x18f   :  { %5296 = vmatprep.subr.bf16.mxu1 %v7637_v30  ;;  %5476 = vmatprep.subr.bf16.mxu0 %v7640_v33  ;;  %v142_v30 = vrot.slane %v8776_v32, %v8730_v26  ;;  %v7689_v33 = vld [vmem:[#allocation7 + $0xd90] ss:$28 sps:$4 sm:$0xff]   ;;  %v7703_v32 = vld [vmem:[#allocation7 + $0xe04] ss:$28 sps:$4 sm:$0xff]  }
 0x192   :  { %5297 = vmatpush1.bf16.msra.mxu1 %v7635_v34  ;;  %5477 = vmatpush1.bf16.msra.mxu0 %v7638_v35  ;;  %v7692_v34 = vld [vmem:[#allocation7 + $0x4d8] ss:$28 sps:$4 sm:$0xff]   ;;  %v396_v35 = vadd.f32 %v8759_v59, %v130_v21 }
 0x193   :  { %5298 = vmatprep.subr.bf16.mxu1 %v7643_v36  ;;  %5478 = vmatprep.subr.bf16.mxu0 %v7646_v37  ;;  %v7697_v36 = vld [vmem:[#allocation7 + $0xdcc] ss:$28 sps:$4 sm:$0xff]   ;;  %v7700_v37 = vld [vmem:[#allocation7 + $0x514] ss:$28 sps:$4 sm:$0xff]  }
 0x194   :  { %v7740_v21 = vld [vmem:[#allocation7 + $0x698] ss:$28 sps:$4 sm:$0xff]  }
 0x196   :  { %5299 = vmatpush1.bf16.msra.mxu1 %v7641_v39  ;;  %5479 = vmatpush1.bf16.msra.mxu0 %v7644_v40  ;;  %v439_v39 = vadd.f32 %v8771_v18, %v142_v30  ;;  %v7695_v40 = vld [vmem:[#allocation7 + $0xdc8] ss:$28 sps:$4 sm:$0xff]   ;;  %v7748_v30 = vld [vmem:[#allocation7 + $0x6d4] ss:$28 sps:$4 sm:$0xff]  }
 0x197   :  { %5300 = vmatprep.subr.bf16.mxu1 %v7649_v41  ;;  %5480 = vmatprep.subr.bf16.mxu0 %v7652_v43  ;;  %v7698_v41 = vld [vmem:[#allocation7 + $0x510] ss:$28 sps:$4 sm:$0xff]   ;;  %v530_v43 = vmax.f32 %v396_v35, 0.0  ;;  %v7749_v35 = vld [vmem:[#allocation7 + $0xfc0] ss:$28 sps:$4 sm:$0xff]  }
 0x199   :  { %v8809_v59 = vpack.c.bf16 %v530_v43, %v530_v43  ;;  %v7758_v43 = vld [vmem:[#allocation7 + $0x740] ss:$28 sps:$4 sm:$0xff]  }
 0x19a   :  { %5301 = vmatpush1.bf16.msra.mxu1 %v7647_v44  ;;  %5481 = vmatpush1.bf16.msra.mxu0 %v7650_v45  ;;  %v7706_v44 = vld [vmem:[#allocation7 + $0x54c] ss:$28 sps:$4 sm:$0xff]   ;;  %v533_v45 = vmax.f32 %v439_v39, 0.0  ;;  %v7757_v39 = vld [vmem:[#allocation7 + $0xffc] ss:$28 sps:$4 sm:$0xff]  }
 0x19b   :  { %5302 = vmatprep.subr.bf16.mxu1 %v7655_v47  ;;  %5491 = vmatprep.subr.bf16.mxu0 %v7658_v48  ;;  %v7701_v47 = vld [vmem:[#allocation7 + $0xe00] ss:$28 sps:$4 sm:$0xff]   ;;  %v7704_v48 = vld [vmem:[#allocation7 + $0x548] ss:$28 sps:$4 sm:$0xff]  }
 0x19c   :  { %v8811_v18 = vpack.c.bf16 %v533_v45, %v533_v45  ;;  %v7766_v45 = vld [vmem:[#allocation7 + $0x77c] ss:$28 sps:$4 sm:$0xff]  }
 0x19d   :  { %5483 = vmatmul.mubr.bf16.vlgmr.msra.gmra.mrb[24].mxu0 %v8744_v51 }
 0x19e   :  { %5303 = vmatpush1.bf16.msra.mxu1 %v7653_v49  ;;  %5492 = vmatpush1.bf16.msra.mxu0 %v7656_v50  ;;  %v7709_v49 = vld [vmem:[#allocation7 + $0xe3c] ss:$28 sps:$4 sm:$0xff]   ;;  %v7712_v50 = vld [vmem:[#allocation7 + $0x584] ss:$28 sps:$4 sm:$0xff]  }
 0x19f   :  { %5523 = vmatprep.mubr.bf16.mxu0 %v8748_v55  ;;  %5304 = vmatprep.subr.bf16.mxu1 %v7661_v52  ;;  %v7707_v52 = vld [vmem:[#allocation7 + $0xe38] ss:$28 sps:$4 sm:$0xff]  }
 0x1a0   :  { %5493 = vmatprep.subr.bf16.mxu0 %v7664_v56  ;;  %v7715_v56 = vld [vmem:[#allocation7 + $0xe74] ss:$28 sps:$4 sm:$0xff]  }
 0x1a2   :  { %5305 = vmatpush1.bf16.msra.mxu1 %v7659_v53  ;;  %5494 = vmatpush1.bf16.msra.mxu0 %v7662_v60  ;;  %v7710_v53 = vld [vmem:[#allocation7 + $0x580] ss:$28 sps:$4 sm:$0xff]   ;;  %v7713_v60 = vld [vmem:[#allocation7 + $0xe70] ss:$28 sps:$4 sm:$0xff]  }
 0x1a3   :  { %5306 = vmatprep.subr.bf16.mxu1 %v7667_v61  ;;  %5495 = vmatprep.subr.bf16.mxu0 %v7670_v62  ;;  %v7718_v61 = vld [vmem:[#allocation7 + $0x5bc] ss:$28 sps:$4 sm:$0xff]  }
 0x1a4   :  { %v7716_v62 = vld [vmem:[#allocation7 + $0x5b8] ss:$28 sps:$4 sm:$0xff]  }
 0x1a6   :  { %5307 = vmatpush1.bf16.msra.mxu1 %v7665_v25  ;;  %5496 = vmatpush1.bf16.msra.mxu0 %v7668_v1  ;;  %v7721_v25 = vld [vmem:[#allocation7 + $0xeac] ss:$28 sps:$4 sm:$0xff]  }
 0x1a7   :  { %5308 = vmatprep.subr.bf16.mxu1 %v7673_v2  ;;  %5497 = vmatprep.subr.bf16.mxu0 %v7676_v3  ;;  %v7719_v1 = vld [vmem:[#allocation7 + $0xea8] ss:$28 sps:$4 sm:$0xff]   ;;  %v7724_v2 = vld [vmem:[#allocation7 + $0x5f4] ss:$28 sps:$4 sm:$0xff]  }
 0x1a8   :  { %v7722_v3 = vld [vmem:[#allocation7 + $0x5f0] ss:$28 sps:$4 sm:$0xff]  }
 0x1aa   :  { %5309 = vmatpush1.bf16.msra.mxu1 %v7671_v58  ;;  %5498 = vmatpush1.bf16.msra.mxu0 %v7674_v63  ;;  %v7727_v58 = vld [vmem:[#allocation7 + $0xee4] ss:$28 sps:$4 sm:$0xff]  }
 0x1ab   :  { %5310 = vmatprep.subr.bf16.mxu1 %v7679_v7  ;;  %5499 = vmatprep.subr.bf16.mxu0 %v7682_v8  ;;  %v7725_v63 = vld [vmem:[#allocation7 + $0xee0] ss:$28 sps:$4 sm:$0xff]   ;;  %v7730_v7 = vld [vmem:[#allocation7 + $0x62c] ss:$28 sps:$4 sm:$0xff]  }
 0x1ac   :  { %v7728_v8 = vld [vmem:[#allocation7 + $0x628] ss:$28 sps:$4 sm:$0xff]  }
 0x1ae   :  { %5311 = vmatpush1.bf16.msra.mxu1 %v7677_v9  ;;  %5500 = vmatpush1.bf16.msra.mxu0 %v7680_v10  ;;  %v7733_v9 = vld [vmem:[#allocation7 + $0xf1c] ss:$28 sps:$4 sm:$0xff]  }
 0x1af   :  { %5312 = vmatprep.subr.bf16.mxu1 %v7685_v13  ;;  %5501 = vmatprep.subr.bf16.mxu0 %v7688_v14  ;;  %v7731_v10 = vld [vmem:[#allocation7 + $0xf18] ss:$28 sps:$4 sm:$0xff]   ;;  %v7736_v13 = vld [vmem:[#allocation7 + $0x664] ss:$28 sps:$4 sm:$0xff]  }
 0x1b0   :  { %v7734_v14 = vld [vmem:[#allocation7 + $0x660] ss:$28 sps:$4 sm:$0xff]  }
 0x1b2   :  { %5313 = vmatpush1.bf16.msra.mxu1 %v7683_v15  ;;  %5502 = vmatpush1.bf16.msra.mxu0 %v7686_v19  ;;  %v7739_v15 = vld [vmem:[#allocation7 + $0xf54] ss:$28 sps:$4 sm:$0xff]  }
 0x1b3   :  { %5314 = vmatprep.subr.bf16.mxu1 %v7691_v28  ;;  %5503 = vmatprep.subr.bf16.mxu0 %v7694_v29  ;;  %v7737_v19 = vld [vmem:[#allocation7 + $0xf50] ss:$28 sps:$4 sm:$0xff]   ;;  %v7743_v29 = vld [vmem:[#allocation7 + $0xf88] ss:$28 sps:$4 sm:$0xff]  }
 0x1b4   :  { %v7745_v28 = vld [vmem:[#allocation7 + $0xf8c] ss:$28 sps:$4 sm:$0xff]  }
 0x1b6   :  { %5315 = vmatpush1.bf16.msra.mxu1 %v7689_v33  ;;  %5504 = vmatpush1.bf16.msra.mxu0 %v7692_v34  ;;  %v7746_v33 = vld [vmem:[#allocation7 + $0x6d0] ss:$28 sps:$4 sm:$0xff]   ;;  %v7751_v34 = vld [vmem:[#allocation7 + $0xfc4] ss:$28 sps:$4 sm:$0xff]  }
 0x1b7   :  { %5316 = vmatprep.subr.bf16.mxu1 %v7697_v36  ;;  %5505 = vmatprep.subr.bf16.mxu0 %v7700_v37  ;;  %v7754_v36 = vld [vmem:[#allocation7 + $0x70c] ss:$28 sps:$4 sm:$0xff]  }
 0x1b8   :  { %v7752_v37 = vld [vmem:[#allocation7 + $0x708] ss:$28 sps:$4 sm:$0xff]  }
 0x1ba   :  { %5317 = vmatpush1.bf16.msra.mxu1 %v7695_v40  ;;  %5506 = vmatpush1.bf16.msra.mxu0 %v7698_v41  ;;  %v7760_v40 = vld [vmem:[#allocation7 + $0x744] ss:$28 sps:$4 sm:$0xff]   ;;  %v7755_v41 = vld [vmem:[#allocation7 + $0xff8] ss:$28 sps:$4 sm:$0xff]  }
 0x1bb   :  { %5327 = vmatprep.subr.bf16.mxu1 %v7703_v32  ;;  %5507 = vmatprep.subr.bf16.mxu0 %v7706_v44  ;;  %v7763_v32 = vld [vmem:[#allocation7 + $0x1034] ss:$28 sps:$4 sm:$0xff]  }
 0x1bc   :  { %v7761_v44 = vld [vmem:[#allocation7 + $0x1030] ss:$28 sps:$4 sm:$0xff]  }
 0x1bd   :  { %5319 = vmatmul.mubr.bf16.vlgmr.msra.gmra.mrb[12].mxu1 %v8809_v59 }
 0x1be   :  { %5328 = vmatpush1.bf16.msra.mxu1 %v7701_v47  ;;  %5359 = vmatprep.mubr.bf16.mxu1 %v8811_v18  ;;  %v7764_v47 = vld [vmem:[#allocation7 + $0x778] ss:$28 sps:$4 sm:$0xff]  }
 0x1bf   :  { %5508 = vmatpush1.bf16.msra.mxu0 %v7704_v48  ;;  %5329 = vmatprep.subr.bf16.mxu1 %v7709_v49  ;;  %v7769_v48 = vld [vmem:[#allocation7 + $0x106c] ss:$28 sps:$4 sm:$0xff]  }
 0x1c0   :  { %5509 = vmatprep.subr.bf16.mxu0 %v7712_v50  ;;  %v7767_v49 = vld [vmem:[#allocation7 + $0x1068] ss:$28 sps:$4 sm:$0xff]   ;;  %v7772_v50 = vld [vmem:[#allocation7 + $0x7b4] ss:$28 sps:$4 sm:$0xff]  }
 0x1c2   :  { %5330 = vmatpush1.bf16.msra.mxu1 %v7707_v52  ;;  %v7770_v52 = vld [vmem:[#allocation7 + $0x7b0] ss:$28 sps:$4 sm:$0xff]  }
 0x1c3   :  { %5510 = vmatpush1.bf16.msra.mxu0 %v7710_v53  ;;  %5331 = vmatprep.subr.bf16.mxu1 %v7715_v56  ;;  %v7775_v53 = vld [vmem:[#allocation7 + $0x10a4] ss:$28 sps:$4 sm:$0xff]  }
 0x1c4   :  { %5511 = vmatprep.subr.bf16.mxu0 %v7718_v61  ;;  %v7773_v56 = vld [vmem:[#allocation7 + $0x10a0] ss:$28 sps:$4 sm:$0xff]   ;;  %v7776_v61 = vld [vmem:[#allocation7 + $0x7e8] ss:$28 sps:$4 sm:$0xff]  }
 0x1c6   :  { %5332 = vmatpush1.bf16.msra.mxu1 %v7713_v60  ;;  %v7778_v60 = vld [vmem:[#allocation7 + $0x7ec] ss:$28 sps:$4 sm:$0xff]  }
 0x1c7   :  { %5512 = vmatpush1.bf16.msra.mxu0 %v7716_v62  ;;  %5333 = vmatprep.subr.bf16.mxu1 %v7721_v25  ;;  %v7781_v62 = vld [vmem:[#allocation7 + $0x10dc] ss:$28 sps:$4 sm:$0xff]  }
 0x1c8   :  { %5513 = vmatprep.subr.bf16.mxu0 %v7724_v2  ;;  %v7779_v25 = vld [vmem:[#allocation7 + $0x10d8] ss:$28 sps:$4 sm:$0xff]  }
 0x1c9   :  { %v8817_v2 = vld [vmem:[#allocation6 + $0x8] sm:$0x1f] }
 0x1ca   :  { %5334 = vmatpush1.bf16.msra.mxu1 %v7719_v1  ;;  %v7784_v1 = vld [vmem:[#allocation7 + $0x824] ss:$28 sps:$4 sm:$0xff]  }
 0x1cb   :  { %5514 = vmatpush1.bf16.msra.mxu0 %v7722_v3  ;;  %5335 = vmatprep.subr.bf16.mxu1 %v7727_v58  ;;  %v138_v3 = vrot.slane %v8817_v2, %v8722_v23  ;;  %v7782_v58 = vld [vmem:[#allocation7 + $0x820] ss:$28 sps:$4 sm:$0xff]  }
 0x1cc   :  { %5515 = vmatprep.subr.bf16.mxu0 %v7730_v7  ;;  %v150_v7 = vrot.slane %v8817_v2, %v8733_v27 }
 0x1ce   :  { %5336 = vmatpush1.bf16.msra.mxu1 %v7725_v63  ;;  %v7787_v63 = vld [vmem:[#allocation7 + $0x1114] ss:$28 sps:$4 sm:$0xff]  }
 0x1cf   :  { %5516 = vmatpush1.bf16.msra.mxu0 %v7728_v8  ;;  %5337 = vmatprep.subr.bf16.mxu1 %v7733_v9  ;;  %v7785_v8 = vld [vmem:[#allocation7 + $0x1110] ss:$28 sps:$4 sm:$0xff]   ;;  %v7790_v9 = vld [vmem:[#allocation7 + $0x85c] ss:$28 sps:$4 sm:$0xff]  }
 0x1d0   :  { %5517 = vmatprep.subr.bf16.mxu0 %v7736_v13  ;;  %v7788_v13 = vld [vmem:[#allocation7 + $0x858] ss:$28 sps:$4 sm:$0xff]  }
 0x1d2   :  { %5338 = vmatpush1.bf16.msra.mxu1 %v7731_v10  ;;  %v437_v10 = vadd.f32 %v8768_v17, %v138_v3  ;;  %v7802_v17 = vld [vmem:[#allocation7 + $0x8cc] ss:$28 sps:$4 sm:$0xff]  }
 0x1d3   :  { %5518 = vmatpush1.bf16.msra.mxu0 %v7734_v14  ;;  %5339 = vmatprep.subr.bf16.mxu1 %v7739_v15  ;;  %v7793_v14 = vld [vmem:[#allocation7 + $0x114c] ss:$28 sps:$4 sm:$0xff]   ;;  %v480_v15 = vadd.f32 %v8782_v46, %v150_v7  ;;  %v7805_v46 = vld [vmem:[#allocation7 + $0x11bc] ss:$28 sps:$4 sm:$0xff]  }
 0x1d4   :  { %5519 = vmatprep.subr.bf16.mxu0 %v7742_v20  ;;  %v7796_v20 = vld [vmem:[#allocation7 + $0x894] ss:$28 sps:$4 sm:$0xff]  }
 0x1d6   :  { %5340 = vmatpush1.bf16.msra.mxu1 %v7737_v19  ;;  %v7791_v19 = vld [vmem:[#allocation7 + $0x1148] ss:$28 sps:$4 sm:$0xff]  }
 0x1d7   :  { %5520 = vmatpush1.bf16.msra.mxu0 %v7740_v21  ;;  %5341 = vmatprep.subr.bf16.mxu1 %v7745_v28  ;;  %v532_v21 = vmax.f32 %v437_v10, 0.0  ;;  %v7794_v28 = vld [vmem:[#allocation7 + $0x890] ss:$28 sps:$4 sm:$0xff]   ;;  %v7836_v10 = vld [vmem:[#allocation7 + $0xa18] ss:$28 sps:$4 sm:$0xff]  }
 0x1d8   :  { %5521 = vmatprep.subr.bf16.mxu0 %v7748_v30  ;;  %v535_v30 = vmax.f32 %v480_v15, 0.0  ;;  %v7839_v15 = vld [vmem:[#allocation7 + $0x1308] ss:$28 sps:$4 sm:$0xff]  }
 0x1da   :  { %5342 = vmatpush1.bf16.msra.mxu1 %v7743_v29  ;;  %v7799_v29 = vld [vmem:[#allocation7 + $0x1184] ss:$28 sps:$4 sm:$0xff]  }
 0x1db   :  { %5522 = vmatpush1.bf16.msra.mxu0 %v7746_v33  ;;  %5343 = vmatprep.subr.bf16.mxu1 %v7751_v34  ;;  %v7797_v33 = vld [vmem:[#allocation7 + $0x1180] ss:$28 sps:$4 sm:$0xff]   ;;  %v8825_v34 = vpack.c.bf16 %v532_v21, %v532_v21  ;;  %v7850_v21 = vld [vmem:[#allocation7 + $0xa8c] ss:$28 sps:$4 sm:$0xff]  }
 0x1dc   :  { %5532 = vmatprep.subr.bf16.mxu0 %v7754_v36  ;;  %v8827_v36 = vpack.c.bf16 %v535_v30, %v535_v30  ;;  %v7853_v30 = vld [vmem:[#allocation7 + $0x137c] ss:$28 sps:$4 sm:$0xff]  }
 0x1de   :  { %5524 = vmatmul.mubr.bf16.vlgmr.msra.gmra.mrb[24].mxu0 %v8753_v57  ;;  %5344 = vmatpush1.bf16.msra.mxu1 %v7749_v35  ;;  %v7800_v35 = vld [vmem:[#allocation7 + $0x8c8] ss:$28 sps:$4 sm:$0xff]  }
 0x1df   :  { %5533 = vmatpush1.bf16.msra.mxu0 %v7752_v37  ;;  %5564 = vmatprep.mubr.bf16.mxu0 %v8766_v11  ;;  %v7808_v37 = vld [vmem:[#allocation7 + $0x904] ss:$28 sps:$4 sm:$0xff]  }
 0x1e0   :  { %5345 = vmatprep.subr.bf16.mxu1 %v7757_v39  ;;  %5534 = vmatprep.subr.bf16.mxu0 %v7760_v40  ;;  %v7803_v39 = vld [vmem:[#allocation7 + $0x11b8] ss:$28 sps:$4 sm:$0xff]   ;;  %v7806_v40 = vld [vmem:[#allocation7 + $0x900] ss:$28 sps:$4 sm:$0xff]  }
 0x1e2   :  { %5346 = vmatpush1.bf16.msra.mxu1 %v7755_v41  ;;  %v7811_v41 = vld [vmem:[#allocation7 + $0x11f4] ss:$28 sps:$4 sm:$0xff]  }
 0x1e3   :  { %5535 = vmatpush1.bf16.msra.mxu0 %v7758_v43  ;;  %5347 = vmatprep.subr.bf16.mxu1 %v7763_v32  ;;  %v7814_v43 = vld [vmem:[#allocation7 + $0x93c] ss:$28 sps:$4 sm:$0xff]   ;;  %v7809_v32 = vld [vmem:[#allocation7 + $0x11f0] ss:$28 sps:$4 sm:$0xff]  }
 0x1e4   :  { %5536 = vmatprep.subr.bf16.mxu0 %v7766_v45  ;;  %v7817_v45 = vld [vmem:[#allocation7 + $0x122c] ss:$28 sps:$4 sm:$0xff]  }
 0x1e6   :  { %5348 = vmatpush1.bf16.msra.mxu1 %v7761_v44  ;;  %v7812_v44 = vld [vmem:[#allocation7 + $0x938] ss:$28 sps:$4 sm:$0xff]  }
 0x1e7   :  { %5537 = vmatpush1.bf16.msra.mxu0 %v7764_v47  ;;  %5349 = vmatprep.subr.bf16.mxu1 %v7769_v48  ;;  %v7820_v47 = vld [vmem:[#allocation7 + $0x974] ss:$28 sps:$4 sm:$0xff]   ;;  %v7815_v48 = vld [vmem:[#allocation7 + $0x1228] ss:$28 sps:$4 sm:$0xff]  }
 0x1e8   :  { %5538 = vmatprep.subr.bf16.mxu0 %v7772_v50  ;;  %v7823_v50 = vld [vmem:[#allocation7 + $0x1264] ss:$28 sps:$4 sm:$0xff]  }
 0x1ea   :  { %5350 = vmatpush1.bf16.msra.mxu1 %v7767_v49  ;;  %v7818_v49 = vld [vmem:[#allocation7 + $0x970] ss:$28 sps:$4 sm:$0xff]  }
 0x1eb   :  { %5539 = vmatpush1.bf16.msra.mxu0 %v7770_v52  ;;  %5351 = vmatprep.subr.bf16.mxu1 %v7775_v53  ;;  %v7826_v52 = vld [vmem:[#allocation7 + $0x9ac] ss:$28 sps:$4 sm:$0xff]   ;;  %v7821_v53 = vld [vmem:[#allocation7 + $0x1260] ss:$28 sps:$4 sm:$0xff]  }
 0x1ec   :  { %5540 = vmatprep.subr.bf16.mxu0 %v7778_v60  ;;  %v7829_v60 = vld [vmem:[#allocation7 + $0x129c] ss:$28 sps:$4 sm:$0xff]  }
 0x1ee   :  { %5352 = vmatpush1.bf16.msra.mxu1 %v7773_v56  ;;  %v7824_v56 = vld [vmem:[#allocation7 + $0x9a8] ss:$28 sps:$4 sm:$0xff]  }
 0x1ef   :  { %5541 = vmatpush1.bf16.msra.mxu0 %v7776_v61  ;;  %5353 = vmatprep.subr.bf16.mxu1 %v7781_v62  ;;  %v7832_v61 = vld [vmem:[#allocation7 + $0x9e4] ss:$28 sps:$4 sm:$0xff]   ;;  %v7827_v62 = vld [vmem:[#allocation7 + $0x1298] ss:$28 sps:$4 sm:$0xff]  }
 0x1f0   :  { %5542 = vmatprep.subr.bf16.mxu0 %v7784_v1  ;;  %v7835_v1 = vld [vmem:[#allocation7 + $0x12d4] ss:$28 sps:$4 sm:$0xff]  }
 0x1f2   :  { %5354 = vmatpush1.bf16.msra.mxu1 %v7779_v25  ;;  %v7830_v25 = vld [vmem:[#allocation7 + $0x9e0] ss:$28 sps:$4 sm:$0xff]  }
 0x1f3   :  { %5543 = vmatpush1.bf16.msra.mxu0 %v7782_v58  ;;  %5355 = vmatprep.subr.bf16.mxu1 %v7787_v63  ;;  %v7838_v58 = vld [vmem:[#allocation7 + $0xa1c] ss:$28 sps:$4 sm:$0xff]  }
 0x1f4   :  { %5544 = vmatprep.subr.bf16.mxu0 %v7790_v9 }
 0x1f6   :  { %5356 = vmatpush1.bf16.msra.mxu1 %v7785_v8  ;;  %v7833_v8 = vld [vmem:[#allocation7 + $0x12d0] ss:$28 sps:$4 sm:$0xff]  }
 0x1f7   :  { %5545 = vmatpush1.bf16.msra.mxu0 %v7788_v13  ;;  %5357 = vmatprep.subr.bf16.mxu1 %v7793_v14  ;;  %v7841_v13 = vld [vmem:[#allocation7 + $0x130c] ss:$28 sps:$4 sm:$0xff]   ;;  %v7844_v14 = vld [vmem:[#allocation7 + $0xa54] ss:$28 sps:$4 sm:$0xff]  }
 0x1f8   :  { %5546 = vmatprep.subr.bf16.mxu0 %v7796_v20  ;;  %v7847_v20 = vld [vmem:[#allocation7 + $0x1344] ss:$28 sps:$4 sm:$0xff]  }
 0x1fa   :  { %5358 = vmatpush1.bf16.msra.mxu1 %v7791_v19  ;;  %v7842_v19 = vld [vmem:[#allocation7 + $0xa50] ss:$28 sps:$4 sm:$0xff]  }
 0x1fb   :  { %5547 = vmatpush1.bf16.msra.mxu0 %v7794_v28  ;;  %5368 = vmatprep.subr.bf16.mxu1 %v7799_v29  ;;  %v7845_v28 = vld [vmem:[#allocation7 + $0x1340] ss:$28 sps:$4 sm:$0xff]   ;;  %v7848_v29 = vld [vmem:[#allocation7 + $0xa88] ss:$28 sps:$4 sm:$0xff]  }
 0x1fc   :  { %5548 = vmatprep.subr.bf16.mxu0 %v7802_v17  ;;  %v7851_v17 = vld [vmem:[#allocation7 + $0x1378] ss:$28 sps:$4 sm:$0xff]  }
 0x1fd   :  { %5360 = vmatmul.mubr.bf16.vlgmr.msra.gmra.mrb[12].mxu1 %v8825_v34 }
 0x1fe   :  { %5369 = vmatpush1.bf16.msra.mxu1 %v7797_v33  ;;  %5400 = vmatprep.mubr.bf16.mxu1 %v8827_v36  ;;  %v7856_v33 = vld [vmem:[#allocation7 + $0xac4] ss:$28 sps:$4 sm:$0xff]  }
 0x1ff   :  { %5549 = vmatpush1.bf16.msra.mxu0 %v7800_v35  ;;  %5370 = vmatprep.subr.bf16.mxu1 %v7805_v46  ;;  %v7854_v35 = vld [vmem:[#allocation7 + $0xac0] ss:$28 sps:$4 sm:$0xff]   ;;  %v7859_v46 = vld [vmem:[#allocation7 + $0x13b4] ss:$28 sps:$4 sm:$0xff]  }
 0x200   :  { %5550 = vmatprep.subr.bf16.mxu0 %v7808_v37  ;;  %v7862_v37 = vld [vmem:[#allocation7 + $0xafc] ss:$28 sps:$4 sm:$0xff]  }
 0x202   :  { %5371 = vmatpush1.bf16.msra.mxu1 %v7803_v39  ;;  %v7857_v39 = vld [vmem:[#allocation7 + $0x13b0] ss:$28 sps:$4 sm:$0xff]  }
 0x203   :  { %5551 = vmatpush1.bf16.msra.mxu0 %v7806_v40  ;;  %5372 = vmatprep.subr.bf16.mxu1 %v7811_v41  ;;  %v7860_v40 = vld [vmem:[#allocation7 + $0xaf8] ss:$28 sps:$4 sm:$0xff]   ;;  %v7865_v41 = vld [vmem:[#allocation7 + $0x13ec] ss:$28 sps:$4 sm:$0xff]  }
 0x204   :  { %5552 = vmatprep.subr.bf16.mxu0 %v7814_v43  ;;  %v7868_v43 = vld [vmem:[#allocation7 + $0xb34] ss:$28 sps:$4 sm:$0xff]  }
 0x206   :  { %5373 = vmatpush1.bf16.msra.mxu1 %v7809_v32  ;;  %v7863_v32 = vld [vmem:[#allocation7 + $0x13e8] ss:$28 sps:$4 sm:$0xff]  }
 0x207   :  { %5553 = vmatpush1.bf16.msra.mxu0 %v7812_v44  ;;  %5374 = vmatprep.subr.bf16.mxu1 %v7817_v45  ;;  %v7866_v44 = vld [vmem:[#allocation7 + $0xb30] ss:$28 sps:$4 sm:$0xff]   ;;  %v7871_v45 = vld [vmem:[#allocation7 + $0x1424] ss:$28 sps:$4 sm:$0xff]  }
 0x208   :  { %5554 = vmatprep.subr.bf16.mxu0 %v7820_v47  ;;  %v7874_v47 = vld [vmem:[#allocation7 + $0xb6c] ss:$28 sps:$4 sm:$0xff]  }
 0x20a   :  { %5375 = vmatpush1.bf16.msra.mxu1 %v7815_v48  ;;  %v7869_v48 = vld [vmem:[#allocation7 + $0x1420] ss:$28 sps:$4 sm:$0xff]  }
 0x20b   :  { %5555 = vmatpush1.bf16.msra.mxu0 %v7818_v49  ;;  %5376 = vmatprep.subr.bf16.mxu1 %v7823_v50  ;;  %v7872_v49 = vld [vmem:[#allocation7 + $0xb68] ss:$28 sps:$4 sm:$0xff]   ;;  %v7877_v50 = vld [vmem:[#allocation7 + $0x145c] ss:$28 sps:$4 sm:$0xff]  }
 0x20c   :  { %5556 = vmatprep.subr.bf16.mxu0 %v7826_v52  ;;  %v7880_v52 = vld [vmem:[#allocation7 + $0xba4] ss:$28 sps:$4 sm:$0xff]  }
 0x20e   :  { %5377 = vmatpush1.bf16.msra.mxu1 %v7821_v53  ;;  %v7875_v53 = vld [vmem:[#allocation7 + $0x1458] ss:$28 sps:$4 sm:$0xff]  }
 0x20f   :  { %5557 = vmatpush1.bf16.msra.mxu0 %v7824_v56  ;;  %5378 = vmatprep.subr.bf16.mxu1 %v7829_v60  ;;  %v146_v56 = vrot.slane %v8817_v2, %v8725_v24  ;;  %v7878_v60 = vld [vmem:[#allocation7 + $0xba0] ss:$28 sps:$4 sm:$0xff]   ;;  %v7889_v2 = vld [vmem:[#allocation7 + $0x14cc] ss:$28 sps:$4 sm:$0xff]  }
 0x210   :  { %v8831_v3 = vpop.f32.mrb[16].mxu0  ;;  %5558 = vmatprep.subr.bf16.mxu0 %v7832_v61  ;;  %v7883_v61 = vld [vmem:[#allocation7 + $0x1494] ss:$28 sps:$4 sm:$0xff]  }
 0x211   :  { %v8833_v63 = vpop.f32.mrb[17].mxu0 }
 0x212   :  { %5379 = vmatpush1.bf16.msra.mxu1 %v7827_v62  ;;  %v5201_v7 = vpop.f32.mrb[18].mxu0 }
 0x213   :  { %5559 = vmatpush1.bf16.msra.mxu0 %v7830_v25  ;;  %v5202_v9 = vpop.f32.mrb[19].mxu0  ;;  %5380 = vmatprep.subr.bf16.mxu1 %v7835_v1  ;;  %v7886_v25 = vld [vmem:[#allocation7 + $0xbdc] ss:$28 sps:$4 sm:$0xff]   ;;  %v7881_v7 = vld [vmem:[#allocation7 + $0x1490] ss:$28 sps:$4 sm:$0xff]  }
 0x214   :  { %5560 = vmatprep.subr.bf16.mxu0 %v7838_v58 }
 0x216   :  { %5381 = vmatpush1.bf16.msra.mxu1 %v7833_v8  ;;  %v478_v8 = vadd.f32 %v8778_v38, %v146_v56  ;;  %v7893_v38 = vld [vmem:[#allocation7 + $0xc48] ss:$28 sps:$4 sm:$0xff]   ;;  %v7923_v56 = vld [vmem:[#allocation7 + $0xd60] ss:$28 sps:$4 sm:$0xff]  }
 0x217   :  { %5561 = vmatpush1.bf16.msra.mxu0 %v7836_v10  ;;  %5382 = vmatprep.subr.bf16.mxu1 %v7841_v13  ;;  %v7884_v10 = vld [vmem:[#allocation7 + $0xbd8] ss:$28 sps:$4 sm:$0xff]  }
 0x218   :  { %5562 = vmatprep.subr.bf16.mxu0 %v7844_v14  ;;  %v7892_v13 = vld [vmem:[#allocation7 + $0xc14] ss:$28 sps:$4 sm:$0xff]   ;;  %v7887_v14 = vld [vmem:[#allocation7 + $0x14c8] ss:$28 sps:$4 sm:$0xff]  }
 0x21a   :  { %5383 = vmatpush1.bf16.msra.mxu1 %v7839_v15  ;;  %v534_v15 = vmax.f32 %v478_v8, 0.0  ;;  %v7937_v8 = vld [vmem:[#allocation7 + $0xdd4] ss:$28 sps:$4 sm:$0xff]  }
 0x21b   :  { %5563 = vmatpush1.bf16.msra.mxu0 %v7842_v19  ;;  %5384 = vmatprep.subr.bf16.mxu1 %v7847_v20  ;;  %v7890_v19 = vld [vmem:[#allocation7 + $0xc10] ss:$28 sps:$4 sm:$0xff]  }
 0x21c   :  { %5573 = vmatprep.subr.bf16.mxu0 %v7850_v21  ;;  %v7898_v20 = vld [vmem:[#allocation7 + $0x14] ss:$28 sps:$4 sm:$0xff]   ;;  %v7895_v21 = vld [vmem:[#allocation7 + $0xc4c] ss:$28 sps:$4 sm:$0xff]  }
 0x21e   :  { %5565 = vmatmul.mubr.bf16.vlgmr.msra.gmra.mrb[24].mxu0 %v8794_v4  ;;  %5385 = vmatpush1.bf16.msra.mxu1 %v7845_v28  ;;  %v7896_v28 = vld [vmem:[#allocation7 + $0x10] ss:$28 sps:$4 sm:$0xff]  }
 0x21f   :  { %5574 = vmatpush1.bf16.msra.mxu0 %v7848_v29  ;;  %5605 = vmatprep.mubr.bf16.mxu0 %v8796_v6  ;;  %v8844_v29 = vpack.c.bf16 %v534_v15, %v534_v15  ;;  %v7941_v15 = vld [vmem:[#allocation7 + $0xe08] ss:$28 sps:$4 sm:$0xff]  }
 0x220   :  { %5386 = vmatprep.subr.bf16.mxu1 %v7853_v30  ;;  %5575 = vmatprep.subr.bf16.mxu0 %v7856_v33  ;;  %v7904_v30 = vld [vmem:[#allocation7 + $0x4c] ss:$28 sps:$4 sm:$0xff]   ;;  %v7901_v33 = vld [vmem:[#allocation7 + $0xc84] ss:$28 sps:$4 sm:$0xff]  }
 0x222   :  { %5387 = vmatpush1.bf16.msra.mxu1 %v7851_v17  ;;  %v7902_v17 = vld [vmem:[#allocation7 + $0x48] ss:$28 sps:$4 sm:$0xff]  }
 0x223   :  { %5576 = vmatpush1.bf16.msra.mxu0 %v7854_v35  ;;  %5388 = vmatprep.subr.bf16.mxu1 %v7859_v46  ;;  %v7899_v35 = vld [vmem:[#allocation7 + $0xc80] ss:$28 sps:$4 sm:$0xff]  }
 0x224   :  { %5577 = vmatprep.subr.bf16.mxu0 %v7862_v37  ;;  %v7910_v46 = vld [vmem:[#allocation7 + $0x84] ss:$28 sps:$4 sm:$0xff]   ;;  %v7907_v37 = vld [vmem:[#allocation7 + $0xcbc] ss:$28 sps:$4 sm:$0xff]  }
 0x226   :  { %5389 = vmatpush1.bf16.msra.mxu1 %v7857_v39  ;;  %v7908_v39 = vld [vmem:[#allocation7 + $0x80] ss:$28 sps:$4 sm:$0xff]  }
 0x227   :  { %5578 = vmatpush1.bf16.msra.mxu0 %v7860_v40  ;;  %5390 = vmatprep.subr.bf16.mxu1 %v7865_v41  ;;  %v7905_v40 = vld [vmem:[#allocation7 + $0xcb8] ss:$28 sps:$4 sm:$0xff]  }
 0x228   :  { %5579 = vmatprep.subr.bf16.mxu0 %v7868_v43  ;;  %v7916_v41 = vld [vmem:[#allocation7 + $0xbc] ss:$28 sps:$4 sm:$0xff]   ;;  %v7913_v43 = vld [vmem:[#allocation7 + $0xcf4] ss:$28 sps:$4 sm:$0xff]  }
 0x22a   :  { %5391 = vmatpush1.bf16.msra.mxu1 %v7863_v32  ;;  %v7914_v32 = vld [vmem:[#allocation7 + $0xb8] ss:$28 sps:$4 sm:$0xff]  }
 0x22b   :  { %5580 = vmatpush1.bf16.msra.mxu0 %v7866_v44  ;;  %5392 = vmatprep.subr.bf16.mxu1 %v7871_v45  ;;  %v7911_v44 = vld [vmem:[#allocation7 + $0xcf0] ss:$28 sps:$4 sm:$0xff]  }
 0x22c   :  { %5581 = vmatprep.subr.bf16.mxu0 %v7874_v47  ;;  %v7922_v45 = vld [vmem:[#allocation7 + $0xf4] ss:$28 sps:$4 sm:$0xff]   ;;  %v7919_v47 = vld [vmem:[#allocation7 + $0xd2c] ss:$28 sps:$4 sm:$0xff]  }
 0x22e   :  { %5393 = vmatpush1.bf16.msra.mxu1 %v7869_v48  ;;  %v7920_v48 = vld [vmem:[#allocation7 + $0xf0] ss:$28 sps:$4 sm:$0xff]  }
 0x22f   :  { %5582 = vmatpush1.bf16.msra.mxu0 %v7872_v49  ;;  %5394 = vmatprep.subr.bf16.mxu1 %v7877_v50  ;;  %v7917_v49 = vld [vmem:[#allocation7 + $0xd28] ss:$28 sps:$4 sm:$0xff]  }
 0x230   :  { %v8839_v62 = vpop.f32.mrb[20].mxu0  ;;  %5583 = vmatprep.subr.bf16.mxu0 %v7880_v52  ;;  %v7928_v50 = vld [vmem:[#allocation7 + $0x12c] ss:$28 sps:$4 sm:$0xff]   ;;  %v7925_v52 = vld [vmem:[#allocation7 + $0xd64] ss:$28 sps:$4 sm:$0xff]  }
 0x231   :  { %v8841_v1 = vpop.f32.mrb[21].mxu0 }
 0x232   :  { %5395 = vmatpush1.bf16.msra.mxu1 %v7875_v53  ;;  %v5447_v58 = vpop.f32.mrb[22].mxu0  ;;  %v7926_v53 = vld [vmem:[#allocation7 + $0x128] ss:$28 sps:$4 sm:$0xff]  }
 0x233   :  { %5584 = vmatpush1.bf16.msra.mxu0 %v7878_v60  ;;  %v5448_v9 = vpop.f32.mrb[23].mxu0  ;;  %5396 = vmatprep.subr.bf16.mxu1 %v7883_v61  ;;  %v7934_v60 = vld [vmem:[#allocation7 + $0x164] ss:$28 sps:$4 sm:$0xff]   ;;  %v7931_v61 = vld [vmem:[#allocation7 + $0xd9c] ss:$28 sps:$4 sm:$0xff]  }
 0x234   :  { %5585 = vmatprep.subr.bf16.mxu0 %v7886_v25  ;;  %v7932_v25 = vld [vmem:[#allocation7 + $0x160] ss:$28 sps:$4 sm:$0xff]   ;;  %v7929_v58 = vld [vmem:[#allocation7 + $0xd98] ss:$28 sps:$4 sm:$0xff]  }
 0x235   :  { %v7938_v9 = vld [vmem:[#allocation7 + $0x198] ss:$28 sps:$4 sm:$0xff]  }
 0x236   :  { %5397 = vmatpush1.bf16.msra.mxu1 %v7881_v7  ;;  %v7940_v7 = vld [vmem:[#allocation7 + $0x19c] ss:$28 sps:$4 sm:$0xff]  }
 0x237   :  { %5586 = vmatpush1.bf16.msra.mxu0 %v7884_v10  ;;  %5398 = vmatprep.subr.bf16.mxu1 %v7889_v2  ;;  %v7935_v10 = vld [vmem:[#allocation7 + $0xdd0] ss:$28 sps:$4 sm:$0xff]  }
 0x238   :  { %5587 = vmatprep.subr.bf16.mxu0 %v7892_v13  ;;  %v7946_v2 = vld [vmem:[#allocation7 + $0x1d4] ss:$28 sps:$4 sm:$0xff]   ;;  %v7943_v13 = vld [vmem:[#allocation7 + $0xe0c] ss:$28 sps:$4 sm:$0xff]  }
 0x23a   :  { %5399 = vmatpush1.bf16.msra.mxu1 %v7887_v14  ;;  %v7944_v14 = vld [vmem:[#allocation7 + $0x1d0] ss:$28 sps:$4 sm:$0xff]  }
 0x23b   :  { %5588 = vmatpush1.bf16.msra.mxu0 %v7890_v19  ;;  %5737 = vmatprep.subr.bf16.mxu1 %v7898_v20  ;;  %v7949_v19 = vld [vmem:[#allocation7 + $0xe44] ss:$28 sps:$4 sm:$0xff]   ;;  %v7952_v20 = vld [vmem:[#allocation7 + $0x20c] ss:$28 sps:$4 sm:$0xff]  }
 0x23c   :  { %5589 = vmatprep.subr.bf16.mxu0 %v7895_v21  ;;  %v7950_v21 = vld [vmem:[#allocation7 + $0x208] ss:$28 sps:$4 sm:$0xff]  }
 0x23d   :  { %5401 = vmatmul.mubr.bf16.vlgmr.msra.gmra.mrb[12].mxu1 %v8844_v29 }
 0x23e   :  { %5738 = vmatpush1.bf16.msra.mxu1 %v7896_v28  ;;  %5769 = vmatprep.mubr.bf16.mxu1 %v8746_v54  ;;  %v7947_v28 = vld [vmem:[#allocation7 + $0xe40] ss:$28 sps:$4 sm:$0xff]  }
 0x23f   :  { %5590 = vmatpush1.bf16.msra.mxu0 %v7893_v38  ;;  %5739 = vmatprep.subr.bf16.mxu1 %v7904_v30  ;;  %v7958_v38 = vld [vmem:[#allocation7 + $0x244] ss:$28 sps:$4 sm:$0xff]   ;;  %v7955_v30 = vld [vmem:[#allocation7 + $0xe7c] ss:$28 sps:$4 sm:$0xff]  }
 0x240   :  { %5591 = vmatprep.subr.bf16.mxu0 %v7901_v33  ;;  %v7956_v33 = vld [vmem:[#allocation7 + $0x240] ss:$28 sps:$4 sm:$0xff]  }
 0x242   :  { %5740 = vmatpush1.bf16.msra.mxu1 %v7902_v17  ;;  %v7953_v17 = vld [vmem:[#allocation7 + $0xe78] ss:$28 sps:$4 sm:$0xff]  }
 0x243   :  { %5592 = vmatpush1.bf16.msra.mxu0 %v7899_v35  ;;  %5741 = vmatprep.subr.bf16.mxu1 %v7910_v46  ;;  %v7964_v35 = vld [vmem:[#allocation7 + $0x27c] ss:$28 sps:$4 sm:$0xff]   ;;  %v7961_v46 = vld [vmem:[#allocation7 + $0xeb4] ss:$28 sps:$4 sm:$0xff]  }
 0x244   :  { %5593 = vmatprep.subr.bf16.mxu0 %v7907_v37  ;;  %v7962_v37 = vld [vmem:[#allocation7 + $0x278] ss:$28 sps:$4 sm:$0xff]  }
 0x246   :  { %5742 = vmatpush1.bf16.msra.mxu1 %v7908_v39  ;;  %v7959_v39 = vld [vmem:[#allocation7 + $0xeb0] ss:$28 sps:$4 sm:$0xff]  }
 0x247   :  { %5594 = vmatpush1.bf16.msra.mxu0 %v7905_v40  ;;  %5743 = vmatprep.subr.bf16.mxu1 %v7916_v41  ;;  %v7970_v40 = vld [vmem:[#allocation7 + $0x2b4] ss:$28 sps:$4 sm:$0xff]   ;;  %v7967_v41 = vld [vmem:[#allocation7 + $0xeec] ss:$28 sps:$4 sm:$0xff]  }
 0x248   :  { %5595 = vmatprep.subr.bf16.mxu0 %v7913_v43  ;;  %v7968_v43 = vld [vmem:[#allocation7 + $0x2b0] ss:$28 sps:$4 sm:$0xff]  }
 0x24a   :  { %5744 = vmatpush1.bf16.msra.mxu1 %v7914_v32  ;;  %v7965_v32 = vld [vmem:[#allocation7 + $0xee8] ss:$28 sps:$4 sm:$0xff]  }
 0x24b   :  { %5596 = vmatpush1.bf16.msra.mxu0 %v7911_v44  ;;  %5745 = vmatprep.subr.bf16.mxu1 %v7922_v45  ;;  %v7976_v44 = vld [vmem:[#allocation7 + $0x2ec] ss:$28 sps:$4 sm:$0xff]   ;;  %v7973_v45 = vld [vmem:[#allocation7 + $0xf24] ss:$28 sps:$4 sm:$0xff]  }
 0x24c   :  { %5597 = vmatprep.subr.bf16.mxu0 %v7919_v47  ;;  %v7974_v47 = vld [vmem:[#allocation7 + $0x2e8] ss:$28 sps:$4 sm:$0xff]  }
 0x24e   :  { %5746 = vmatpush1.bf16.msra.mxu1 %v7920_v48  ;;  %v7971_v48 = vld [vmem:[#allocation7 + $0xf20] ss:$28 sps:$4 sm:$0xff]  }
 0x24f   :  { %5598 = vmatpush1.bf16.msra.mxu0 %v7917_v49  ;;  %5747 = vmatprep.subr.bf16.mxu1 %v7928_v50  ;;  %v7982_v49 = vld [vmem:[#allocation7 + $0x324] ss:$28 sps:$4 sm:$0xff]   ;;  %v7979_v50 = vld [vmem:[#allocation7 + $0xf5c] ss:$28 sps:$4 sm:$0xff]  }
 0x250   :  { %5599 = vmatprep.subr.bf16.mxu0 %v7925_v52  ;;  %v7980_v52 = vld [vmem:[#allocation7 + $0x320] ss:$28 sps:$4 sm:$0xff]  }
 0x252   :  { %5748 = vmatpush1.bf16.msra.mxu1 %v7926_v53  ;;  %v7977_v53 = vld [vmem:[#allocation7 + $0xf58] ss:$28 sps:$4 sm:$0xff]  }
 0x253   :  { %5600 = vmatpush1.bf16.msra.mxu0 %v7923_v56  ;;  %5749 = vmatprep.subr.bf16.mxu1 %v7934_v60  ;;  %v7988_v56 = vld [vmem:[#allocation7 + $0x35c] ss:$28 sps:$4 sm:$0xff]   ;;  %v7985_v60 = vld [vmem:[#allocation7 + $0xf94] ss:$28 sps:$4 sm:$0xff]  }
 0x254   :  { %5601 = vmatprep.subr.bf16.mxu0 %v7931_v61  ;;  %v7986_v61 = vld [vmem:[#allocation7 + $0x358] ss:$28 sps:$4 sm:$0xff]  }
 0x256   :  { %5750 = vmatpush1.bf16.msra.mxu1 %v7932_v25  ;;  %v7983_v25 = vld [vmem:[#allocation7 + $0xf90] ss:$28 sps:$4 sm:$0xff]  }
 0x257   :  { %5602 = vmatpush1.bf16.msra.mxu0 %v7929_v58  ;;  %5751 = vmatprep.subr.bf16.mxu1 %v7940_v7  ;;  %v7994_v58 = vld [vmem:[#allocation7 + $0x394] ss:$28 sps:$4 sm:$0xff]   ;;  %v7991_v7 = vld [vmem:[#allocation7 + $0xfcc] ss:$28 sps:$4 sm:$0xff]  }
 0x258   :  { %5603 = vmatprep.subr.bf16.mxu0 %v7937_v8  ;;  %v7992_v8 = vld [vmem:[#allocation7 + $0x390] ss:$28 sps:$4 sm:$0xff]  }
 0x25a   :  { %5752 = vmatpush1.bf16.msra.mxu1 %v7938_v9  ;;  %v7989_v9 = vld [vmem:[#allocation7 + $0xfc8] ss:$28 sps:$4 sm:$0xff]  }
 0x25b   :  { %5604 = vmatpush1.bf16.msra.mxu0 %v7935_v10  ;;  %5753 = vmatprep.subr.bf16.mxu1 %v7946_v2  ;;  %v8000_v10 = vld [vmem:[#allocation7 + $0x3cc] ss:$28 sps:$4 sm:$0xff]   ;;  %v7997_v2 = vld [vmem:[#allocation7 + $0x1004] ss:$28 sps:$4 sm:$0xff]  }
 0x25c   :  { %5614 = vmatprep.subr.bf16.mxu0 %v7943_v13  ;;  %v7998_v13 = vld [vmem:[#allocation7 + $0x3c8] ss:$28 sps:$4 sm:$0xff]  }
 0x25e   :  { %5606 = vmatmul.mubr.bf16.vlgmr.msra.gmra.mrb[24].mxu0 %v8809_v59  ;;  %5754 = vmatpush1.bf16.msra.mxu1 %v7944_v14  ;;  %v7995_v14 = vld [vmem:[#allocation7 + $0x1000] ss:$28 sps:$4 sm:$0xff]  }
 0x25f   :  { %5615 = vmatpush1.bf16.msra.mxu0 %v7941_v15  ;;  %5646 = vmatprep.mubr.bf16.mxu0 %v8811_v18  ;;  %v8006_v15 = vld [vmem:[#allocation7 + $0x404] ss:$28 sps:$4 sm:$0xff]  }
 0x260   :  { %5616 = vmatprep.subr.bf16.mxu0 %v7949_v19  ;;  %5755 = vmatprep.subr.bf16.mxu1 %v7952_v20  ;;  %v8003_v19 = vld [vmem:[#allocation7 + $0x103c] ss:$28 sps:$4 sm:$0xff]  }
 0x261   :  { %v8004_v20 = vld [vmem:[#allocation7 + $0x400] ss:$28 sps:$4 sm:$0xff]  }
 0x262   :  { %5756 = vmatpush1.bf16.msra.mxu1 %v7950_v21  ;;  %v8001_v21 = vld [vmem:[#allocation7 + $0x1038] ss:$28 sps:$4 sm:$0xff]  }
 0x263   :  { %5617 = vmatpush1.bf16.msra.mxu0 %v7947_v28  ;;  %5757 = vmatprep.subr.bf16.mxu1 %v7958_v38  ;;  %v8012_v28 = vld [vmem:[#allocation7 + $0x43c] ss:$28 sps:$4 sm:$0xff]   ;;  %v8009_v38 = vld [vmem:[#allocation7 + $0x1074] ss:$28 sps:$4 sm:$0xff]  }
 0x264   :  { %5618 = vmatprep.subr.bf16.mxu0 %v7955_v30  ;;  %v8010_v30 = vld [vmem:[#allocation7 + $0x438] ss:$28 sps:$4 sm:$0xff]  }
 0x266   :  { %5758 = vmatpush1.bf16.msra.mxu1 %v7956_v33  ;;  %v8007_v33 = vld [vmem:[#allocation7 + $0x1070] ss:$28 sps:$4 sm:$0xff]  }
 0x267   :  { %5619 = vmatpush1.bf16.msra.mxu0 %v7953_v17  ;;  %5759 = vmatprep.subr.bf16.mxu1 %v7964_v35  ;;  %v8018_v17 = vld [vmem:[#allocation7 + $0x474] ss:$28 sps:$4 sm:$0xff]   ;;  %v8015_v35 = vld [vmem:[#allocation7 + $0x10ac] ss:$28 sps:$4 sm:$0xff]  }
 0x268   :  { %5620 = vmatprep.subr.bf16.mxu0 %v7961_v46  ;;  %v8016_v46 = vld [vmem:[#allocation7 + $0x470] ss:$28 sps:$4 sm:$0xff]  }
 0x26a   :  { %5760 = vmatpush1.bf16.msra.mxu1 %v7962_v37  ;;  %v8013_v37 = vld [vmem:[#allocation7 + $0x10a8] ss:$28 sps:$4 sm:$0xff]  }
 0x26b   :  { %5621 = vmatpush1.bf16.msra.mxu0 %v7959_v39  ;;  %5761 = vmatprep.subr.bf16.mxu1 %v7970_v40  ;;  %v8024_v39 = vld [vmem:[#allocation7 + $0x4ac] ss:$28 sps:$4 sm:$0xff]   ;;  %v8021_v40 = vld [vmem:[#allocation7 + $0x10e4] ss:$28 sps:$4 sm:$0xff]  }
 0x26c   :  { %5622 = vmatprep.subr.bf16.mxu0 %v7967_v41  ;;  %v8022_v41 = vld [vmem:[#allocation7 + $0x4a8] ss:$28 sps:$4 sm:$0xff]  }
 0x26e   :  { %5762 = vmatpush1.bf16.msra.mxu1 %v7968_v43  ;;  %v8019_v43 = vld [vmem:[#allocation7 + $0x10e0] ss:$28 sps:$4 sm:$0xff]  }
 0x26f   :  { %5623 = vmatpush1.bf16.msra.mxu0 %v7965_v32  ;;  %5763 = vmatprep.subr.bf16.mxu1 %v7976_v44  ;;  %v8030_v32 = vld [vmem:[#allocation7 + $0x4e4] ss:$28 sps:$4 sm:$0xff]   ;;  %v8027_v44 = vld [vmem:[#allocation7 + $0x111c] ss:$28 sps:$4 sm:$0xff]  }
 0x270   :  { %5624 = vmatprep.subr.bf16.mxu0 %v7973_v45  ;;  %v8028_v45 = vld [vmem:[#allocation7 + $0x4e0] ss:$28 sps:$4 sm:$0xff]  }
 0x272   :  { %5764 = vmatpush1.bf16.msra.mxu1 %v7974_v47  ;;  %v8025_v47 = vld [vmem:[#allocation7 + $0x1118] ss:$28 sps:$4 sm:$0xff]  }
 0x273   :  { %5625 = vmatpush1.bf16.msra.mxu0 %v7971_v48  ;;  %5765 = vmatprep.subr.bf16.mxu1 %v7982_v49  ;;  %v8036_v48 = vld [vmem:[#allocation7 + $0x51c] ss:$28 sps:$4 sm:$0xff]   ;;  %v8033_v49 = vld [vmem:[#allocation7 + $0x1154] ss:$28 sps:$4 sm:$0xff]  }
 0x274   :  { %5626 = vmatprep.subr.bf16.mxu0 %v7979_v50  ;;  %v8034_v50 = vld [vmem:[#allocation7 + $0x518] ss:$28 sps:$4 sm:$0xff]  }
 0x276   :  { %5766 = vmatpush1.bf16.msra.mxu1 %v7980_v52  ;;  %v8031_v52 = vld [vmem:[#allocation7 + $0x1150] ss:$28 sps:$4 sm:$0xff]  }
 0x277   :  { %5627 = vmatpush1.bf16.msra.mxu0 %v7977_v53  ;;  %5767 = vmatprep.subr.bf16.mxu1 %v7988_v56  ;;  %v8042_v53 = vld [vmem:[#allocation7 + $0x554] ss:$28 sps:$4 sm:$0xff]   ;;  %v8039_v56 = vld [vmem:[#allocation7 + $0x118c] ss:$28 sps:$4 sm:$0xff]  }
 0x278   :  { %5628 = vmatprep.subr.bf16.mxu0 %v7985_v60  ;;  %v8040_v60 = vld [vmem:[#allocation7 + $0x550] ss:$28 sps:$4 sm:$0xff]  }
 0x27a   :  { %5768 = vmatpush1.bf16.msra.mxu1 %v7986_v61  ;;  %v8037_v61 = vld [vmem:[#allocation7 + $0x1188] ss:$28 sps:$4 sm:$0xff]  }
 0x27b   :  { %5629 = vmatpush1.bf16.msra.mxu0 %v7983_v25  ;;  %5778 = vmatprep.subr.bf16.mxu1 %v7994_v58  ;;  %v8045_v25 = vld [vmem:[#allocation7 + $0x11c4] ss:$28 sps:$4 sm:$0xff]   ;;  %v8048_v58 = vld [vmem:[#allocation7 + $0x58c] ss:$28 sps:$4 sm:$0xff]  }
 0x27c   :  { %5630 = vmatprep.subr.bf16.mxu0 %v7991_v7  ;;  %v8046_v7 = vld [vmem:[#allocation7 + $0x588] ss:$28 sps:$4 sm:$0xff]  }
 0x27d   :  { %5770 = vmatmul.mubr.bf16.vlgmr.msra.gmra.mrb[16].mxu1 %v8744_v51 }
 0x27e   :  { %5779 = vmatpush1.bf16.msra.mxu1 %v7992_v8  ;;  %5810 = vmatprep.mubr.bf16.mxu1 %v8748_v55  ;;  %v8043_v8 = vld [vmem:[#allocation7 + $0x11c0] ss:$28 sps:$4 sm:$0xff]  }
 0x27f   :  { %5631 = vmatpush1.bf16.msra.mxu0 %v7989_v9  ;;  %5780 = vmatprep.subr.bf16.mxu1 %v8000_v10  ;;  %v8054_v9 = vld [vmem:[#allocation7 + $0x5c4] ss:$28 sps:$4 sm:$0xff]   ;;  %v8051_v10 = vld [vmem:[#allocation7 + $0x11fc] ss:$28 sps:$4 sm:$0xff]  }
 0x280   :  { %5632 = vmatprep.subr.bf16.mxu0 %v7997_v2  ;;  %v8052_v2 = vld [vmem:[#allocation7 + $0x5c0] ss:$28 sps:$4 sm:$0xff]  }
 0x282   :  { %5781 = vmatpush1.bf16.msra.mxu1 %v7998_v13  ;;  %v8049_v13 = vld [vmem:[#allocation7 + $0x11f8] ss:$28 sps:$4 sm:$0xff]  }
 0x283   :  { %5633 = vmatpush1.bf16.msra.mxu0 %v7995_v14  ;;  %5782 = vmatprep.subr.bf16.mxu1 %v8006_v15  ;;  %v8060_v14 = vld [vmem:[#allocation7 + $0x5fc] ss:$28 sps:$4 sm:$0xff]   ;;  %v8057_v15 = vld [vmem:[#allocation7 + $0x1234] ss:$28 sps:$4 sm:$0xff]  }
 0x284   :  { %5634 = vmatprep.subr.bf16.mxu0 %v8003_v19  ;;  %v8058_v19 = vld [vmem:[#allocation7 + $0x5f8] ss:$28 sps:$4 sm:$0xff]  }
 0x286   :  { %5783 = vmatpush1.bf16.msra.mxu1 %v8004_v20  ;;  %v8055_v20 = vld [vmem:[#allocation7 + $0x1230] ss:$28 sps:$4 sm:$0xff]  }
 0x287   :  { %5635 = vmatpush1.bf16.msra.mxu0 %v8001_v21  ;;  %5784 = vmatprep.subr.bf16.mxu1 %v8012_v28  ;;  %v8066_v21 = vld [vmem:[#allocation7 + $0x634] ss:$28 sps:$4 sm:$0xff]   ;;  %v8063_v28 = vld [vmem:[#allocation7 + $0x126c] ss:$28 sps:$4 sm:$0xff]  }
 0x288   :  { %5636 = vmatprep.subr.bf16.mxu0 %v8009_v38  ;;  %v8064_v38 = vld [vmem:[#allocation7 + $0x630] ss:$28 sps:$4 sm:$0xff]  }
 0x28a   :  { %5785 = vmatpush1.bf16.msra.mxu1 %v8010_v30  ;;  %v8061_v30 = vld [vmem:[#allocation7 + $0x1268] ss:$28 sps:$4 sm:$0xff]  }
 0x28b   :  { %5637 = vmatpush1.bf16.msra.mxu0 %v8007_v33  ;;  %5786 = vmatprep.subr.bf16.mxu1 %v8018_v17  ;;  %v8072_v33 = vld [vmem:[#allocation7 + $0x66c] ss:$28 sps:$4 sm:$0xff]   ;;  %v8069_v17 = vld [vmem:[#allocation7 + $0x12a4] ss:$28 sps:$4 sm:$0xff]  }
 0x28c   :  { %5638 = vmatprep.subr.bf16.mxu0 %v8015_v35  ;;  %v8070_v35 = vld [vmem:[#allocation7 + $0x668] ss:$28 sps:$4 sm:$0xff]  }
 0x28e   :  { %5787 = vmatpush1.bf16.msra.mxu1 %v8016_v46  ;;  %v8067_v46 = vld [vmem:[#allocation7 + $0x12a0] ss:$28 sps:$4 sm:$0xff]  }
 0x28f   :  { %5639 = vmatpush1.bf16.msra.mxu0 %v8013_v37  ;;  %5788 = vmatprep.subr.bf16.mxu1 %v8024_v39  ;;  %v8078_v37 = vld [vmem:[#allocation7 + $0x6a4] ss:$28 sps:$4 sm:$0xff]   ;;  %v8075_v39 = vld [vmem:[#allocation7 + $0x12dc] ss:$28 sps:$4 sm:$0xff]  }
 0x290   :  { %5640 = vmatprep.subr.bf16.mxu0 %v8021_v40  ;;  %v8076_v40 = vld [vmem:[#allocation7 + $0x6a0] ss:$28 sps:$4 sm:$0xff]  }
 0x292   :  { %5789 = vmatpush1.bf16.msra.mxu1 %v8022_v41  ;;  %v8073_v41 = vld [vmem:[#allocation7 + $0x12d8] ss:$28 sps:$4 sm:$0xff]  }
 0x293   :  { %5641 = vmatpush1.bf16.msra.mxu0 %v8019_v43  ;;  %5790 = vmatprep.subr.bf16.mxu1 %v8030_v32  ;;  %v8084_v43 = vld [vmem:[#allocation7 + $0x6dc] ss:$28 sps:$4 sm:$0xff]   ;;  %v8081_v32 = vld [vmem:[#allocation7 + $0x1314] ss:$28 sps:$4 sm:$0xff]  }
 0x294   :  { %5642 = vmatprep.subr.bf16.mxu0 %v8027_v44  ;;  %v8082_v44 = vld [vmem:[#allocation7 + $0x6d8] ss:$28 sps:$4 sm:$0xff]  }
 0x296   :  { %5791 = vmatpush1.bf16.msra.mxu1 %v8028_v45  ;;  %v8079_v45 = vld [vmem:[#allocation7 + $0x1310] ss:$28 sps:$4 sm:$0xff]  }
 0x297   :  { %5643 = vmatpush1.bf16.msra.mxu0 %v8025_v47  ;;  %5792 = vmatprep.subr.bf16.mxu1 %v8036_v48  ;;  %v8090_v47 = vld [vmem:[#allocation7 + $0x714] ss:$28 sps:$4 sm:$0xff]   ;;  %v8087_v48 = vld [vmem:[#allocation7 + $0x134c] ss:$28 sps:$4 sm:$0xff]  }
 0x298   :  { %5644 = vmatprep.subr.bf16.mxu0 %v8033_v49  ;;  %v8088_v49 = vld [vmem:[#allocation7 + $0x710] ss:$28 sps:$4 sm:$0xff]  }
 0x29a   :  { %5793 = vmatpush1.bf16.msra.mxu1 %v8034_v50  ;;  %v8085_v50 = vld [vmem:[#allocation7 + $0x1348] ss:$28 sps:$4 sm:$0xff]  }
 0x29b   :  { %5645 = vmatpush1.bf16.msra.mxu0 %v8031_v52  ;;  %5794 = vmatprep.subr.bf16.mxu1 %v8042_v53  ;;  %v8096_v52 = vld [vmem:[#allocation7 + $0x74c] ss:$28 sps:$4 sm:$0xff]   ;;  %v8093_v53 = vld [vmem:[#allocation7 + $0x1384] ss:$28 sps:$4 sm:$0xff]  }
 0x29c   :  { %5655 = vmatprep.subr.bf16.mxu0 %v8039_v56  ;;  %v8094_v56 = vld [vmem:[#allocation7 + $0x748] ss:$28 sps:$4 sm:$0xff]  }
 0x29e   :  { %5647 = vmatmul.mubr.bf16.vlgmr.msra.gmra.mrb[24].mxu0 %v8825_v34  ;;  %5795 = vmatpush1.bf16.msra.mxu1 %v8040_v60  ;;  %v8091_v60 = vld [vmem:[#allocation7 + $0x1380] ss:$28 sps:$4 sm:$0xff]  }
 0x29f   :  { %5656 = vmatpush1.bf16.msra.mxu0 %v8037_v61  ;;  %5687 = vmatprep.mubr.bf16.mxu0 %v8827_v36  ;;  %v8102_v61 = vld [vmem:[#allocation7 + $0x784] ss:$28 sps:$4 sm:$0xff]  }
 0x2a0   :  { %5657 = vmatprep.subr.bf16.mxu0 %v8045_v25  ;;  %5796 = vmatprep.subr.bf16.mxu1 %v8048_v58  ;;  %v8099_v25 = vld [vmem:[#allocation7 + $0x13bc] ss:$28 sps:$4 sm:$0xff]  }
 0x2a1   :  { %v8100_v58 = vld [vmem:[#allocation7 + $0x780] ss:$28 sps:$4 sm:$0xff]  }
 0x2a2   :  { %5797 = vmatpush1.bf16.msra.mxu1 %v8046_v7  ;;  %v8097_v7 = vld [vmem:[#allocation7 + $0x13b8] ss:$28 sps:$4 sm:$0xff]  }
 0x2a3   :  { %5658 = vmatpush1.bf16.msra.mxu0 %v8043_v8  ;;  %5798 = vmatprep.subr.bf16.mxu1 %v8054_v9  ;;  %v8108_v8 = vld [vmem:[#allocation7 + $0x7bc] ss:$28 sps:$4 sm:$0xff]   ;;  %v8105_v9 = vld [vmem:[#allocation7 + $0x13f4] ss:$28 sps:$4 sm:$0xff]  }
 0x2a4   :  { %5659 = vmatprep.subr.bf16.mxu0 %v8051_v10  ;;  %v8106_v10 = vld [vmem:[#allocation7 + $0x7b8] ss:$28 sps:$4 sm:$0xff]  }
 0x2a6   :  { %5799 = vmatpush1.bf16.msra.mxu1 %v8052_v2  ;;  %v8103_v2 = vld [vmem:[#allocation7 + $0x13f0] ss:$28 sps:$4 sm:$0xff]  }
 0x2a7   :  { %5660 = vmatpush1.bf16.msra.mxu0 %v8049_v13  ;;  %5800 = vmatprep.subr.bf16.mxu1 %v8060_v14  ;;  %v8114_v13 = vld [vmem:[#allocation7 + $0x7f4] ss:$28 sps:$4 sm:$0xff]   ;;  %v8111_v14 = vld [vmem:[#allocation7 + $0x142c] ss:$28 sps:$4 sm:$0xff]  }
 0x2a8   :  { %5661 = vmatprep.subr.bf16.mxu0 %v8057_v15  ;;  %v8112_v15 = vld [vmem:[#allocation7 + $0x7f0] ss:$28 sps:$4 sm:$0xff]  }
 0x2aa   :  { %5801 = vmatpush1.bf16.msra.mxu1 %v8058_v19  ;;  %v8109_v19 = vld [vmem:[#allocation7 + $0x1428] ss:$28 sps:$4 sm:$0xff]  }
 0x2ab   :  { %5662 = vmatpush1.bf16.msra.mxu0 %v8055_v20  ;;  %5802 = vmatprep.subr.bf16.mxu1 %v8066_v21  ;;  %v8120_v20 = vld [vmem:[#allocation7 + $0x82c] ss:$28 sps:$4 sm:$0xff]   ;;  %v8117_v21 = vld [vmem:[#allocation7 + $0x1464] ss:$28 sps:$4 sm:$0xff]  }
 0x2ac   :  { %5663 = vmatprep.subr.bf16.mxu0 %v8063_v28  ;;  %v8118_v28 = vld [vmem:[#allocation7 + $0x828] ss:$28 sps:$4 sm:$0xff]  }
 0x2ae   :  { %5803 = vmatpush1.bf16.msra.mxu1 %v8064_v38  ;;  %v8115_v38 = vld [vmem:[#allocation7 + $0x1460] ss:$28 sps:$4 sm:$0xff]  }
 0x2af   :  { %5664 = vmatpush1.bf16.msra.mxu0 %v8061_v30  ;;  %5804 = vmatprep.subr.bf16.mxu1 %v8072_v33  ;;  %v8126_v30 = vld [vmem:[#allocation7 + $0x864] ss:$28 sps:$4 sm:$0xff]   ;;  %v8123_v33 = vld [vmem:[#allocation7 + $0x149c] ss:$28 sps:$4 sm:$0xff]  }
 0x2b0   :  { %5665 = vmatprep.subr.bf16.mxu0 %v8069_v17  ;;  %v8124_v17 = vld [vmem:[#allocation7 + $0x860] ss:$28 sps:$4 sm:$0xff]  }
 0x2b2   :  { %5805 = vmatpush1.bf16.msra.mxu1 %v8070_v35  ;;  %v8121_v35 = vld [vmem:[#allocation7 + $0x1498] ss:$28 sps:$4 sm:$0xff]  }
 0x2b3   :  { %5666 = vmatpush1.bf16.msra.mxu0 %v8067_v46  ;;  %5806 = vmatprep.subr.bf16.mxu1 %v8078_v37  ;;  %v8132_v46 = vld [vmem:[#allocation7 + $0x89c] ss:$28 sps:$4 sm:$0xff]   ;;  %v8129_v37 = vld [vmem:[#allocation7 + $0x14d4] ss:$28 sps:$4 sm:$0xff]  }
 0x2b4   :  { %5667 = vmatprep.subr.bf16.mxu0 %v8075_v39  ;;  %v8130_v39 = vld [vmem:[#allocation7 + $0x898] ss:$28 sps:$4 sm:$0xff]  }
 0x2b6   :  { %5807 = vmatpush1.bf16.msra.mxu1 %v8076_v40  ;;  %v8127_v40 = vld [vmem:[#allocation7 + $0x14d0] ss:$28 sps:$4 sm:$0xff]  }
 0x2b7   :  { %5668 = vmatpush1.bf16.msra.mxu0 %v8073_v41  ;;  %5808 = vmatprep.subr.bf16.mxu1 %v8084_v43  ;;  %v8138_v41 = vld [vmem:[#allocation7 + $0x8d4] ss:$28 sps:$4 sm:$0xff]   ;;  %v8135_v43 = vld [vmem:[#allocation7 + $0x150c] ss:$28 sps:$4 sm:$0xff]  }
 0x2b8   :  { %5669 = vmatprep.subr.bf16.mxu0 %v8081_v32  ;;  %v8136_v32 = vld [vmem:[#allocation7 + $0x8d0] ss:$28 sps:$4 sm:$0xff]  }
 0x2ba   :  { %5809 = vmatpush1.bf16.msra.mxu1 %v8082_v44  ;;  %v8133_v44 = vld [vmem:[#allocation7 + $0x1508] ss:$28 sps:$4 sm:$0xff]  }
 0x2bb   :  { %5670 = vmatpush1.bf16.msra.mxu0 %v8079_v45  ;;  %5819 = vmatprep.subr.bf16.mxu1 %v8090_v47  ;;  %v8144_v45 = vld [vmem:[#allocation7 + $0x90c] ss:$28 sps:$4 sm:$0xff]   ;;  %v8141_v47 = vld [vmem:[#allocation7 + $0x1544] ss:$28 sps:$4 sm:$0xff]  }
 0x2bc   :  { %5671 = vmatprep.subr.bf16.mxu0 %v8087_v48  ;;  %v8142_v48 = vld [vmem:[#allocation7 + $0x908] ss:$28 sps:$4 sm:$0xff]  }
 0x2bd   :  { %5811 = vmatmul.mubr.bf16.vlgmr.msra.gmra.mrb[16].mxu1 %v8753_v57 }
 0x2be   :  { %5820 = vmatpush1.bf16.msra.mxu1 %v8088_v49  ;;  %5851 = vmatprep.mubr.bf16.mxu1 %v8766_v11  ;;  %v8139_v49 = vld [vmem:[#allocation7 + $0x1540] ss:$28 sps:$4 sm:$0xff]  }
 0x2bf   :  { %5672 = vmatpush1.bf16.msra.mxu0 %v8085_v50  ;;  %5821 = vmatprep.subr.bf16.mxu1 %v8096_v52  ;;  %v8150_v50 = vld [vmem:[#allocation7 + $0x944] ss:$28 sps:$4 sm:$0xff]   ;;  %v8147_v52 = vld [vmem:[#allocation7 + $0x157c] ss:$28 sps:$4 sm:$0xff]  }
 0x2c0   :  { %5673 = vmatprep.subr.bf16.mxu0 %v8093_v53  ;;  %v8148_v53 = vld [vmem:[#allocation7 + $0x940] ss:$28 sps:$4 sm:$0xff]  }
 0x2c2   :  { %5822 = vmatpush1.bf16.msra.mxu1 %v8094_v56  ;;  %v8145_v56 = vld [vmem:[#allocation7 + $0x1578] ss:$28 sps:$4 sm:$0xff]  }
 0x2c3   :  { %5674 = vmatpush1.bf16.msra.mxu0 %v8091_v60  ;;  %5823 = vmatprep.subr.bf16.mxu1 %v8102_v61  ;;  %v8156_v60 = vld [vmem:[#allocation7 + $0x97c] ss:$28 sps:$4 sm:$0xff]   ;;  %v8153_v61 = vld [vmem:[#allocation7 + $0x15b4] ss:$28 sps:$4 sm:$0xff]  }
 0x2c4   :  { %5675 = vmatprep.subr.bf16.mxu0 %v8099_v25  ;;  %v8154_v25 = vld [vmem:[#allocation7 + $0x978] ss:$28 sps:$4 sm:$0xff]  }
 0x2c6   :  { %5824 = vmatpush1.bf16.msra.mxu1 %v8100_v58  ;;  %v8151_v58 = vld [vmem:[#allocation7 + $0x15b0] ss:$28 sps:$4 sm:$0xff]  }
 0x2c7   :  { %5676 = vmatpush1.bf16.msra.mxu0 %v8097_v7  ;;  %5825 = vmatprep.subr.bf16.mxu1 %v8108_v8  ;;  %v8162_v7 = vld [vmem:[#allocation7 + $0x9b4] ss:$28 sps:$4 sm:$0xff]   ;;  %v8159_v8 = vld [vmem:[#allocation7 + $0x15ec] ss:$28 sps:$4 sm:$0xff]  }
 0x2c8   :  { %5677 = vmatprep.subr.bf16.mxu0 %v8105_v9  ;;  %v8160_v9 = vld [vmem:[#allocation7 + $0x9b0] ss:$28 sps:$4 sm:$0xff]  }
 0x2ca   :  { %5826 = vmatpush1.bf16.msra.mxu1 %v8106_v10  ;;  %v8157_v10 = vld [vmem:[#allocation7 + $0x15e8] ss:$28 sps:$4 sm:$0xff]  }
 0x2cb   :  { %5678 = vmatpush1.bf16.msra.mxu0 %v8103_v2  ;;  %5827 = vmatprep.subr.bf16.mxu1 %v8114_v13  ;;  %v8168_v2 = vld [vmem:[#allocation7 + $0x9ec] ss:$28 sps:$4 sm:$0xff]   ;;  %v8165_v13 = vld [vmem:[#allocation7 + $0x1624] ss:$28 sps:$4 sm:$0xff]  }
 0x2cc   :  { %5679 = vmatprep.subr.bf16.mxu0 %v8111_v14  ;;  %v8166_v14 = vld [vmem:[#allocation7 + $0x9e8] ss:$28 sps:$4 sm:$0xff]  }
 0x2ce   :  { %5828 = vmatpush1.bf16.msra.mxu1 %v8112_v15  ;;  %v8163_v15 = vld [vmem:[#allocation7 + $0x1620] ss:$28 sps:$4 sm:$0xff]  }
 0x2cf   :  { %5680 = vmatpush1.bf16.msra.mxu0 %v8109_v19  ;;  %5829 = vmatprep.subr.bf16.mxu1 %v8120_v20  ;;  %v8174_v19 = vld [vmem:[#allocation7 + $0xa24] ss:$28 sps:$4 sm:$0xff]   ;;  %v8171_v20 = vld [vmem:[#allocation7 + $0x165c] ss:$28 sps:$4 sm:$0xff]  }
 0x2d0   :  { %5681 = vmatprep.subr.bf16.mxu0 %v8117_v21  ;;  %v8172_v21 = vld [vmem:[#allocation7 + $0xa20] ss:$28 sps:$4 sm:$0xff]  }
 0x2d2   :  { %5830 = vmatpush1.bf16.msra.mxu1 %v8118_v28  ;;  %v8169_v28 = vld [vmem:[#allocation7 + $0x1658] ss:$28 sps:$4 sm:$0xff]  }
 0x2d3   :  { %5682 = vmatpush1.bf16.msra.mxu0 %v8115_v38  ;;  %5831 = vmatprep.subr.bf16.mxu1 %v8126_v30  ;;  %v8180_v38 = vld [vmem:[#allocation7 + $0xa5c] ss:$28 sps:$4 sm:$0xff]   ;;  %v8177_v30 = vld [vmem:[#allocation7 + $0x1694] ss:$28 sps:$4 sm:$0xff]  }
 0x2d4   :  { %5683 = vmatprep.subr.bf16.mxu0 %v8123_v33  ;;  %v8178_v33 = vld [vmem:[#allocation7 + $0xa58] ss:$28 sps:$4 sm:$0xff]  }
 0x2d6   :  { %5832 = vmatpush1.bf16.msra.mxu1 %v8124_v17  ;;  %v8175_v17 = vld [vmem:[#allocation7 + $0x1690] ss:$28 sps:$4 sm:$0xff]  }
 0x2d7   :  { %5684 = vmatpush1.bf16.msra.mxu0 %v8121_v35  ;;  %5833 = vmatprep.subr.bf16.mxu1 %v8132_v46  ;;  %v8183_v35 = vld [vmem:[#allocation7 + $0xa94] ss:$28 sps:$4 sm:$0xff]  }
 0x2d8   :  { %5685 = vmatprep.subr.bf16.mxu0 %v8129_v37  ;;  %v8184_v46 = vld [vmem:[#allocation7 + $0x1d8] ss:$28 sps:$4 sm:$0xff]   ;;  %v8181_v37 = vld [vmem:[#allocation7 + $0xa90] ss:$28 sps:$4 sm:$0xff]  }
 0x2da   :  { %5834 = vmatpush1.bf16.msra.mxu1 %v8130_v39  ;;  %v8185_v39 = vld [vmem:[#allocation7 + $0x18] ss:$28 sps:$4 sm:$0xff]  }
 0x2db   :  { %5686 = vmatpush1.bf16.msra.mxu0 %v8127_v40  ;;  %5835 = vmatprep.subr.bf16.mxu1 %v8138_v41  ;;  %v8188_v40 = vld [vmem:[#allocation7 + $0xacc] ss:$28 sps:$4 sm:$0xff]  }
 0x2dc   :  { %5696 = vmatprep.subr.bf16.mxu0 %v8135_v43  ;;  %v8189_v41 = vld [vmem:[#allocation7 + $0x210] ss:$28 sps:$4 sm:$0xff]   ;;  %v8186_v43 = vld [vmem:[#allocation7 + $0xac8] ss:$28 sps:$4 sm:$0xff]  }
 0x2de   :  { %5688 = vmatmul.mubr.bf16.vlgmr.msra.gmra.mrb[24].mxu0 %v8844_v29  ;;  %5836 = vmatpush1.bf16.msra.mxu1 %v8136_v32  ;;  %v8190_v32 = vld [vmem:[#allocation7 + $0x50] ss:$28 sps:$4 sm:$0xff]  }
 0x2df   :  { %5697 = vmatpush1.bf16.msra.mxu0 %v8133_v44  ;;  %5837 = vmatprep.subr.bf16.mxu1 %v8144_v45  ;;  %v8193_v44 = vld [vmem:[#allocation7 + $0xb04] ss:$28 sps:$4 sm:$0xff]  }
 0x2e0   :  { %5698 = vmatprep.subr.bf16.mxu0 %v8141_v47  ;;  %5728 = vmatprep.mubr.bf16.mxu0 %v8609_v0  ;;  %v8194_v45 = vld [vmem:[#allocation7 + $0x248] ss:$28 sps:$4 sm:$0xff]   ;;  %v8191_v47 = vld [vmem:[#allocation7 + $0xb00] ss:$28 sps:$4 sm:$0xff]  }
 0x2e2   :  { %5838 = vmatpush1.bf16.msra.mxu1 %v8142_v48  ;;  %v8195_v48 = vld [vmem:[#allocation7 + $0x88] ss:$28 sps:$4 sm:$0xff]  }
 0x2e3   :  { %5699 = vmatpush1.bf16.msra.mxu0 %v8139_v49  ;;  %5839 = vmatprep.subr.bf16.mxu1 %v8150_v50  ;;  %v8198_v49 = vld [vmem:[#allocation7 + $0xb3c] ss:$28 sps:$4 sm:$0xff]  }
 0x2e4   :  { %5700 = vmatprep.subr.bf16.mxu0 %v8147_v52  ;;  %v8199_v50 = vld [vmem:[#allocation7 + $0x280] ss:$28 sps:$4 sm:$0xff]   ;;  %v8196_v52 = vld [vmem:[#allocation7 + $0xb38] ss:$28 sps:$4 sm:$0xff]  }
 0x2e6   :  { %5840 = vmatpush1.bf16.msra.mxu1 %v8148_v53  ;;  %v8200_v53 = vld [vmem:[#allocation7 + $0xc0] ss:$28 sps:$4 sm:$0xff]  }
 0x2e7   :  { %5701 = vmatpush1.bf16.msra.mxu0 %v8145_v56  ;;  %5841 = vmatprep.subr.bf16.mxu1 %v8156_v60  ;;  %v8203_v56 = vld [vmem:[#allocation7 + $0xb74] ss:$28 sps:$4 sm:$0xff]   ;;  %v8862_v60 = vld [vmem:[#allocation9] sm:$0xff] }
 0x2e8   :  { %5702 = vmatprep.subr.bf16.mxu0 %v8153_v61  ;;  %v8201_v61 = vld [vmem:[#allocation7 + $0xb70] ss:$28 sps:$4 sm:$0xff]  }
 0x2ea   :  { %5842 = vmatpush1.bf16.msra.mxu1 %v8154_v25  ;;  %v1387_v25 = vrot.slane %v8862_v60, %v8722_v23 }
 0x2eb   :  { %5703 = vmatpush1.bf16.msra.mxu0 %v8151_v58  ;;  %5843 = vmatprep.subr.bf16.mxu1 %v8162_v7  ;;  %v8205_v58 = vld [vmem:[#allocation7 + $0xf8] ss:$28 sps:$4 sm:$0xff]   ;;  %v8208_v7 = vld [vmem:[#allocation7 + $0xbac] ss:$28 sps:$4 sm:$0xff]  }
 0x2ec   :  { %5704 = vmatprep.subr.bf16.mxu0 %v8159_v8  ;;  %v1391_v8 = vrot.slane %v8862_v60, %v8730_v26  ;;  %v8211_v26 = vld [vmem:[#allocation7 + $0xbe0] ss:$28 sps:$4 sm:$0xff]  }
 0x2ee   :  { %5844 = vmatpush1.bf16.msra.mxu1 %v8160_v9  ;;  %v8209_v9 = vld [vmem:[#allocation7 + $0x2f0] ss:$28 sps:$4 sm:$0xff]  }
 0x2ef   :  { %5705 = vmatpush1.bf16.msra.mxu0 %v8157_v10  ;;  %5845 = vmatprep.subr.bf16.mxu1 %v8168_v2  ;;  %v8206_v10 = vld [vmem:[#allocation7 + $0xba8] ss:$28 sps:$4 sm:$0xff]   ;;  %v5198_v2 = vadd.f32 %v8831_v3, %v1387_v25 }
 0x2f0   :  { %5706 = vmatprep.subr.bf16.mxu0 %v8165_v13  ;;  %v8210_v13 = vld [vmem:[#allocation7 + $0x130] ss:$28 sps:$4 sm:$0xff]   ;;  %v8215_v3 = vld [vmem:[#allocation7 + $0x168] ss:$28 sps:$4 sm:$0xff]  }
 0x2f2   :  { %5846 = vmatpush1.bf16.msra.mxu1 %v8166_v14  ;;  %v8213_v14 = vld [vmem:[#allocation7 + $0xbe4] ss:$28 sps:$4 sm:$0xff]  }
 0x2f3   :  { %5707 = vmatpush1.bf16.msra.mxu0 %v8163_v15  ;;  %5847 = vmatprep.subr.bf16.mxu1 %v8174_v19  ;;  %v5200_v15 = vadd.f32 %v8833_v63, %v1391_v8  ;;  %v8214_v19 = vld [vmem:[#allocation7 + $0x328] ss:$28 sps:$4 sm:$0xff]   ;;  %v8219_v63 = vld [vmem:[#allocation7 + $0x360] ss:$28 sps:$4 sm:$0xff]  }
 0x2f4   :  { %5708 = vmatprep.subr.bf16.mxu0 %v8171_v20  ;;  %v8240_v8 = vld [vmem:[#allocation7 + $0x440] ss:$28 sps:$4 sm:$0xff]  }
 0x2f6   :  { %5848 = vmatpush1.bf16.msra.mxu1 %v8172_v21 }
 0x2f7   :  { %5709 = vmatpush1.bf16.msra.mxu0 %v8169_v28  ;;  %5849 = vmatprep.subr.bf16.mxu1 %v8180_v38 }
 0x2f8   :  { %5710 = vmatprep.subr.bf16.mxu0 %v8177_v30 }
 0x2fa   :  { %5850 = vmatpush1.bf16.msra.mxu1 %v8178_v33 }
 0x2fb   :  { %5711 = vmatpush1.bf16.msra.mxu0 %v8175_v17  ;;  %5860 = vmatprep.subr.bf16.mxu1 %v8183_v35  ;;  %v8218_v17 = vld [vmem:[#allocation7 + $0xc1c] ss:$28 sps:$4 sm:$0xff]  }
 0x2fc   :  { %7140 = vmatprep.subr.bf16.mxu0 %v8184_v46 }
 0x2fd   :  { %5852 = vmatmul.mubr.bf16.vlgmr.msra.gmra.mrb[16].mxu1 %v8794_v4 }
 0x2fe   :  { %5729 = vmatmul.mubr.bf16.vlgmr.msra.gmra.mrb[24].mxu0 %v8784_v5  ;;  %5861 = vmatpush1.bf16.msra.mxu1 %v8181_v37 }
 0x2ff   :  { %5892 = vmatprep.mubr.bf16.mxu1 %v8796_v6  ;;  %7141 = vmatpush3.bf16.msra.mxu0 %v8185_v39  ;;  %v8216_v39 = vld [vmem:[#allocation7 + $0xc18] ss:$28 sps:$4 sm:$0xff]  }
 0x300   :  { %6056 = vmatprep.mubr.bf16.mxu0 %v8746_v54  ;;  %5862 = vmatprep.subr.bf16.mxu1 %v8188_v40  ;;  %v8204_v54 = vld [vmem:[#allocation7 + $0x2b8] ss:$28 sps:$4 sm:$0xff]  }
 0x301   :  { %7142 = vmatprep.subr.bf16.mxu0 %v8189_v41  ;;  %v8220_v41 = vld [vmem:[#allocation7 + $0x1a0] ss:$28 sps:$4 sm:$0xff]  }
 0x302   :  { %5863 = vmatpush1.bf16.msra.mxu1 %v8186_v43  ;;  %v8223_v43 = vld [vmem:[#allocation7 + $0xc54] ss:$28 sps:$4 sm:$0xff]  }
 0x303   :  { %7143 = vmatpush3.bf16.msra.mxu0 %v8190_v32  ;;  %5864 = vmatprep.subr.bf16.mxu1 %v8193_v44  ;;  %v8221_v44 = vld [vmem:[#allocation7 + $0xc50] ss:$28 sps:$4 sm:$0xff]  }
 0x304   :  { %7144 = vmatprep.subr.bf16.mxu0 %v8194_v45  ;;  %v8228_v45 = vld [vmem:[#allocation7 + $0xc8c] ss:$28 sps:$4 sm:$0xff]  }
 0x306   :  { %5865 = vmatpush1.bf16.msra.mxu1 %v8191_v47  ;;  %v8229_v47 = vld [vmem:[#allocation7 + $0x590] ss:$28 sps:$4 sm:$0xff]  }
 0x307   :  { %7145 = vmatpush3.bf16.msra.mxu0 %v8195_v48  ;;  %5866 = vmatprep.subr.bf16.mxu1 %v8198_v49  ;;  %v8226_v48 = vld [vmem:[#allocation7 + $0xc88] ss:$28 sps:$4 sm:$0xff]   ;;  %v8230_v49 = vld [vmem:[#allocation7 + $0x3d0] ss:$28 sps:$4 sm:$0xff]  }
 0x308   :  { %7146 = vmatprep.subr.bf16.mxu0 %v8199_v50  ;;  %v8233_v50 = vld [vmem:[#allocation7 + $0xcc4] ss:$28 sps:$4 sm:$0xff]  }
 0x30a   :  { %5867 = vmatpush1.bf16.msra.mxu1 %v8196_v52  ;;  %v8234_v52 = vld [vmem:[#allocation7 + $0x5c8] ss:$28 sps:$4 sm:$0xff]  }
 0x30b   :  { %7147 = vmatpush3.bf16.msra.mxu0 %v8200_v53  ;;  %5868 = vmatprep.subr.bf16.mxu1 %v8203_v56  ;;  %v8231_v53 = vld [vmem:[#allocation7 + $0xcc0] ss:$28 sps:$4 sm:$0xff]  }
 0x30c   :  { %7148 = vmatprep.subr.bf16.mxu0 %v8204_v54  ;;  %v8235_v54 = vld [vmem:[#allocation7 + $0x408] ss:$28 sps:$4 sm:$0xff]  }
 0x30e   :  { %5869 = vmatpush1.bf16.msra.mxu1 %v8201_v61  ;;  %v8238_v61 = vld [vmem:[#allocation7 + $0xcfc] ss:$28 sps:$4 sm:$0xff]  }
 0x30f   :  { %7149 = vmatpush3.bf16.msra.mxu0 %v8205_v58  ;;  %5870 = vmatprep.subr.bf16.mxu1 %v8208_v7 }
 0x310   :  { %v5402_v23 = vpop.f32.mrb[12].mxu1  ;;  %7150 = vmatprep.subr.bf16.mxu0 %v8209_v9  ;;  %v8243_v9 = vld [vmem:[#allocation7 + $0xd34] ss:$28 sps:$4 sm:$0xff]  }
 0x311   :  { %v7308_v20 = vadd.f32 %v5402_v23, %v5198_v2  ;;  %v5404_v21 = vpop.f32.mrb[13].mxu1  ;;  %v8241_v2 = vld [vmem:[#allocation7 + $0xd30] ss:$28 sps:$4 sm:$0xff]   ;;  %v8246_v23 = vld [vmem:[#allocation7 + $0xd68] ss:$28 sps:$4 sm:$0xff]  }
 0x312   :  { %v7311_v28 = vadd.f32 %v5404_v21, %v5200_v15  ;;  %v5406_v38 = vpop.f32.mrb[14].mxu1  ;;  %5871 = vmatpush1.bf16.msra.mxu1 %v8206_v10  ;;  %v8244_v10 = vld [vmem:[#allocation7 + $0x638] ss:$28 sps:$4 sm:$0xff]   ;;  %v8249_v15 = vld [vmem:[#allocation7 + $0x670] ss:$28 sps:$4 sm:$0xff]  }
 0x313   :  { %v7309_v30 = vadd.f32 %v7308_v20, %v8839_v62  ;;  %7151 = vmatpush3.bf16.msra.mxu0 %v8210_v13  ;;  %v5407_v33 = vpop.f32.mrb[15].mxu1  ;;  %5872 = vmatprep.subr.bf16.mxu1 %v8213_v14  ;;  %v8224_v62 = vld [vmem:[#allocation7 + $0x558] ss:$28 sps:$4 sm:$0xff]   ;;  %v8248_v14 = vld [vmem:[#allocation7 + $0xd6c] ss:$28 sps:$4 sm:$0xff]  }
 0x314   :  { %v7312_v35 = vadd.f32 %v7311_v28, %v8841_v1  ;;  %7152 = vmatprep.subr.bf16.mxu0 %v8214_v19  ;;  %v8225_v1 = vld [vmem:[#allocation7 + $0x398] ss:$28 sps:$4 sm:$0xff]   ;;  %v8250_v19 = vld [vmem:[#allocation7 + $0x4b0] ss:$28 sps:$4 sm:$0xff]   ;;  %v8253_v20 = vld [vmem:[#allocation7 + $0xda4] ss:$28 sps:$4 sm:$0xff]  }
 0x315   :  { %v6304_v46 = vsub.f32 0.0, %v7309_v30  ;;  %v8245_v13 = vld [vmem:[#allocation7 + $0x478] ss:$28 sps:$4 sm:$0xff]   ;;  %v8254_v28 = vld [vmem:[#allocation7 + $0x6a8] ss:$28 sps:$4 sm:$0xff]  }
 0x316   :  { %v6305_v37 = vsub.f32 0.0, %v7312_v35  ;;  %5873 = vmatpush1.bf16.msra.mxu1 %v8211_v26  ;;  %v8251_v30 = vld [vmem:[#allocation7 + $0xda0] ss:$28 sps:$4 sm:$0xff]   ;;  %v8255_v33 = vld [vmem:[#allocation7 + $0x4e8] ss:$28 sps:$4 sm:$0xff]  }
 0x317   :  { %v6311_v40 = vmul.f32 1.442695, %v6304_v46  ;;  %7153 = vmatpush3.bf16.msra.mxu0 %v8215_v3  ;;  %5874 = vmatprep.subr.bf16.mxu1 %v8218_v17  ;;  %v8258_v3 = vld [vmem:[#allocation7 + $0xddc] ss:$28 sps:$4 sm:$0xff]   ;;  %v8263_v46 = vld [vmem:[#allocation7 + $0xe14] ss:$28 sps:$4 sm:$0xff]  }
 0x318   :  { %v6313_v32 = vmul.f32 1.442695, %v6305_v37  ;;  %7154 = vmatprep.subr.bf16.mxu0 %v8219_v63  ;;  %v8259_v17 = vld [vmem:[#allocation7 + $0x6e0] ss:$28 sps:$4 sm:$0xff]   ;;  %v8256_v35 = vld [vmem:[#allocation7 + $0xdd8] ss:$28 sps:$4 sm:$0xff]  }
 0x319   :  { %8453 = vpow2.f32 %v6311_v40  ;;  %v8260_v63 = vld [vmem:[#allocation7 + $0x520] ss:$28 sps:$4 sm:$0xff]   ;;  %v8264_v37 = vld [vmem:[#allocation7 + $0x8d8] ss:$28 sps:$4 sm:$0xff]  }
 0x31a   :  { %8455 = vpow2.f32 %v6313_v32  ;;  %5875 = vmatpush1.bf16.msra.mxu1 %v8216_v39  ;;  %v8261_v39 = vld [vmem:[#allocation7 + $0xe10] ss:$28 sps:$4 sm:$0xff]   ;;  %v8265_v40 = vld [vmem:[#allocation7 + $0x718] ss:$28 sps:$4 sm:$0xff]   ;;  %v8266_v32 = vld [vmem:[#allocation7 + $0xe48] ss:$28 sps:$4 sm:$0xff]  }
 0x31b   :  { %7155 = vmatpush3.bf16.msra.mxu0 %v8220_v41  ;;  %5876 = vmatprep.subr.bf16.mxu1 %v8223_v43  ;;  %v8268_v41 = vld [vmem:[#allocation7 + $0xe4c] ss:$28 sps:$4 sm:$0xff]  }
 0x31c   :  { %7162 = vmatprep.subr.bf16.mxu0 %v8224_v62  ;;  %v8269_v43 = vld [vmem:[#allocation7 + $0x910] ss:$28 sps:$4 sm:$0xff]  }
 0x31d   :  { %v8270_v62 = vld [vmem:[#allocation7 + $0x750] ss:$28 sps:$4 sm:$0xff]  }
 0x31e   :  { %6057 = vmatmul.mubr.bf16.vlgmr.msra.gmra.mrb[28].mxu0 %v8744_v51  ;;  %5877 = vmatpush1.bf16.msra.mxu1 %v8221_v44  ;;  %v8239_v51 = vld [vmem:[#allocation7 + $0x600] ss:$28 sps:$4 sm:$0xff]  }
 0x31f   :  { %7163 = vmatpush3.bf16.msra.mxu0 %v8225_v1  ;;  %6096 = vmatprep.mubr.bf16.mxu0 %v8748_v55  ;;  %v8236_v55 = vld [vmem:[#allocation7 + $0xcf8] ss:$28 sps:$4 sm:$0xff]   ;;  %v8273_v44 = vld [vmem:[#allocation7 + $0xe84] ss:$28 sps:$4 sm:$0xff]  }
 0x320   :  { %5878 = vmatprep.subr.bf16.mxu1 %v8228_v45  ;;  %7164 = vmatprep.subr.bf16.mxu0 %v8229_v47  ;;  %v8274_v1 = vld [vmem:[#allocation7 + $0x948] ss:$28 sps:$4 sm:$0xff]   ;;  %v8271_v45 = vld [vmem:[#allocation7 + $0xe80] ss:$28 sps:$4 sm:$0xff]  }
 0x321   :  { %v8275_v47 = vld [vmem:[#allocation7 + $0x788] ss:$28 sps:$4 sm:$0xff]  }
 0x322   :  { %5879 = vmatpush1.bf16.msra.mxu1 %v8226_v48  ;;  %v8278_v48 = vld [vmem:[#allocation7 + $0xebc] ss:$28 sps:$4 sm:$0xff]  }
 0x323   :  { %v8454_v56 = vpop.eup %8453  ;;  %7165 = vmatpush3.bf16.msra.mxu0 %v8230_v49  ;;  %5880 = vmatprep.subr.bf16.mxu1 %v8233_v50  ;;  %v8276_v49 = vld [vmem:[#allocation7 + $0xeb8] ss:$28 sps:$4 sm:$0xff]   ;;  %v8280_v50 = vld [vmem:[#allocation7 + $0x7c0] ss:$28 sps:$4 sm:$0xff]  }
 0x324   :  { %v8456_v25 = vpop.eup %8455  ;;  %v6325_v58 = vadd.f32 1.0, %v8454_v56  ;;  %7166 = vmatprep.subr.bf16.mxu0 %v8234_v52  ;;  %v8283_v52 = vld [vmem:[#allocation7 + $0xef4] ss:$28 sps:$4 sm:$0xff]  }
 0x325   :  { %v6326_v7 = vadd.f32 1.0, %v8456_v25  ;;  %v8285_v56 = vld [vmem:[#allocation7 + $0x7f8] ss:$28 sps:$4 sm:$0xff]   ;;  %v8286_v25 = vld [vmem:[#allocation7 + $0xf28] ss:$28 sps:$4 sm:$0xff]  }
 0x326   :  { %8457 = vrcp.f32 %v6325_v58  ;;  %5881 = vmatpush1.bf16.msra.mxu1 %v8231_v53  ;;  %v8284_v53 = vld [vmem:[#allocation7 + $0x9b8] ss:$28 sps:$4 sm:$0xff]   ;;  %v8290_v58 = vld [vmem:[#allocation7 + $0x830] ss:$28 sps:$4 sm:$0xff]  }
 0x327   :  { %8459 = vrcp.f32 %v6326_v7  ;;  %7167 = vmatpush3.bf16.msra.mxu0 %v8235_v54  ;;  %5882 = vmatprep.subr.bf16.mxu1 %v8238_v61  ;;  %v8288_v54 = vld [vmem:[#allocation7 + $0xf2c] ss:$28 sps:$4 sm:$0xff]  }
 0x328   :  { %7168 = vmatprep.subr.bf16.mxu0 %v8239_v51  ;;  %v8289_v61 = vld [vmem:[#allocation7 + $0x9f0] ss:$28 sps:$4 sm:$0xff]   ;;  %v8293_v51 = vld [vmem:[#allocation7 + $0xf64] ss:$28 sps:$4 sm:$0xff]  }
 0x329   :  { %v8294_v7 = vld [vmem:[#allocation7 + $0xa28] ss:$28 sps:$4 sm:$0xff]  }
 0x32a   :  { %5883 = vmatpush1.bf16.msra.mxu1 %v8236_v55  ;;  %v8291_v55 = vld [vmem:[#allocation7 + $0xf60] ss:$28 sps:$4 sm:$0xff]  }
 0x32b   :  { %7169 = vmatpush3.bf16.msra.mxu0 %v8240_v8  ;;  %5884 = vmatprep.subr.bf16.mxu1 %v8243_v9  ;;  %v8295_v8 = vld [vmem:[#allocation7 + $0x868] ss:$28 sps:$4 sm:$0xff]   ;;  %v8298_v9 = vld [vmem:[#allocation7 + $0xf9c] ss:$28 sps:$4 sm:$0xff]  }
 0x32c   :  { %7170 = vmatprep.subr.bf16.mxu0 %v8244_v10  ;;  %v8299_v10 = vld [vmem:[#allocation7 + $0xa60] ss:$28 sps:$4 sm:$0xff]  }
 0x32e   :  { %5885 = vmatpush1.bf16.msra.mxu1 %v8241_v2  ;;  %v8296_v2 = vld [vmem:[#allocation7 + $0xf98] ss:$28 sps:$4 sm:$0xff]  }
 0x32f   :  { %7171 = vmatpush3.bf16.msra.mxu0 %v8245_v13  ;;  %5886 = vmatprep.subr.bf16.mxu1 %v8248_v14  ;;  %v8300_v13 = vld [vmem:[#allocation7 + $0x8a0] ss:$28 sps:$4 sm:$0xff]   ;;  %v8303_v14 = vld [vmem:[#allocation7 + $0xfd4] ss:$28 sps:$4 sm:$0xff]  }
 0x330   :  { %v8874_v21 = vpop.eup %8457  ;;  %7172 = vmatprep.subr.bf16.mxu0 %v8249_v15  ;;  %v8304_v15 = vld [vmem:[#allocation7 + $0xc58] ss:$28 sps:$4 sm:$0xff]  }
 0x331   :  { %v8876_v38 = vpop.eup %8459 }
 0x332   :  { %v6346_v26 = vcombine.low %v8874_v21, %v8876_v38  ;;  %5887 = vmatpush1.bf16.msra.mxu1 %v8246_v23  ;;  %v8301_v23 = vld [vmem:[#allocation7 + $0xfd0] ss:$28 sps:$4 sm:$0xff]  }
 0x333   :  { %7173 = vmatpush3.bf16.msra.mxu0 %v8250_v19  ;;  %5888 = vmatprep.subr.bf16.mxu1 %v8253_v20  ;;  %v8305_v19 = vld [vmem:[#allocation7 + $0xa98] ss:$28 sps:$4 sm:$0xff]   ;;  %v8308_v20 = vld [vmem:[#allocation7 + $0x100c] ss:$28 sps:$4 sm:$0xff]  }
 0x334   :  { %7174 = vmatprep.subr.bf16.mxu0 %v8254_v28  ;;  %v8309_v28 = vld [vmem:[#allocation7 + $0xc90] ss:$28 sps:$4 sm:$0xff]  }
 0x336   :  { %5889 = vmatpush1.bf16.msra.mxu1 %v8251_v30  ;;  %v8306_v30 = vld [vmem:[#allocation7 + $0x1008] ss:$28 sps:$4 sm:$0xff]  }
 0x337   :  { %7175 = vmatpush3.bf16.msra.mxu0 %v8255_v33  ;;  %5890 = vmatprep.subr.bf16.mxu1 %v8258_v3  ;;  %v8310_v33 = vld [vmem:[#allocation7 + $0xad0] ss:$28 sps:$4 sm:$0xff]   ;;  %v8313_v3 = vld [vmem:[#allocation7 + $0x1044] ss:$28 sps:$4 sm:$0xff]  }
 0x338   :  { %7176 = vmatprep.subr.bf16.mxu0 %v8259_v17  ;;  %v8314_v17 = vld [vmem:[#allocation7 + $0xcc8] ss:$28 sps:$4 sm:$0xff]  }
 0x33a   :  { %5891 = vmatpush1.bf16.msra.mxu1 %v8256_v35  ;;  %v8311_v35 = vld [vmem:[#allocation7 + $0x1040] ss:$28 sps:$4 sm:$0xff]  }
 0x33b   :  { %7177 = vmatpush3.bf16.msra.mxu0 %v8260_v63  ;;  %5901 = vmatprep.subr.bf16.mxu1 %v8263_v46  ;;  %v8315_v63 = vld [vmem:[#allocation7 + $0xb08] ss:$28 sps:$4 sm:$0xff]   ;;  %v8318_v46 = vld [vmem:[#allocation7 + $0x107c] ss:$28 sps:$4 sm:$0xff]  }
 0x33c   :  { %7184 = vmatprep.subr.bf16.mxu0 %v8264_v37  ;;  %v8319_v37 = vld [vmem:[#allocation7 + $0xd00] ss:$28 sps:$4 sm:$0xff]  }
 0x33d   :  { %5893 = vmatmul.mubr.bf16.vlgmr.msra.gmra.mrb[16].mxu1 %v8809_v59 }
 0x33e   :  { %6097 = vmatmul.mubr.bf16.vlgmr.msra.gmra.mrb[32].mxu0 %v8753_v57  ;;  %5902 = vmatpush1.bf16.msra.mxu1 %v8261_v39  ;;  %v8279_v57 = vld [vmem:[#allocation7 + $0x980] ss:$28 sps:$4 sm:$0xff]  }
 0x33f   :  { %5933 = vmatprep.mubr.bf16.mxu1 %v8811_v18  ;;  %7185 = vmatpush3.bf16.msra.mxu0 %v8265_v40  ;;  %v8320_v39 = vld [vmem:[#allocation7 + $0xb40] ss:$28 sps:$4 sm:$0xff]   ;;  %v8323_v40 = vld [vmem:[#allocation7 + $0x10b4] ss:$28 sps:$4 sm:$0xff]  }
 0x340   :  { %6136 = vmatprep.mubr.bf16.mxu0 %v8766_v11  ;;  %5903 = vmatprep.subr.bf16.mxu1 %v8268_v41  ;;  %v8281_v11 = vld [vmem:[#allocation7 + $0xef0] ss:$28 sps:$4 sm:$0xff]  }
 0x341   :  { %7186 = vmatprep.subr.bf16.mxu0 %v8269_v43  ;;  %v8321_v41 = vld [vmem:[#allocation7 + $0x10b0] ss:$28 sps:$4 sm:$0xff]   ;;  %v8325_v43 = vld [vmem:[#allocation7 + $0xb78] ss:$28 sps:$4 sm:$0xff]  }
 0x342   :  { %5904 = vmatpush1.bf16.msra.mxu1 %v8266_v32  ;;  %v8328_v32 = vld [vmem:[#allocation7 + $0x10ec] ss:$28 sps:$4 sm:$0xff]  }
 0x343   :  { %7187 = vmatpush3.bf16.msra.mxu0 %v8270_v62  ;;  %5905 = vmatprep.subr.bf16.mxu1 %v8273_v44  ;;  %v8329_v62 = vld [vmem:[#allocation7 + $0xd70] ss:$28 sps:$4 sm:$0xff]   ;;  %v8326_v44 = vld [vmem:[#allocation7 + $0x10e8] ss:$28 sps:$4 sm:$0xff]  }
 0x344   :  { %7188 = vmatprep.subr.bf16.mxu0 %v8274_v1  ;;  %v8330_v1 = vld [vmem:[#allocation7 + $0xbb0] ss:$28 sps:$4 sm:$0xff]  }
 0x346   :  { %5906 = vmatpush1.bf16.msra.mxu1 %v8271_v45  ;;  %v8333_v45 = vld [vmem:[#allocation7 + $0x1124] ss:$28 sps:$4 sm:$0xff]  }
 0x347   :  { %7189 = vmatpush3.bf16.msra.mxu0 %v8275_v47  ;;  %5907 = vmatprep.subr.bf16.mxu1 %v8278_v48  ;;  %v8334_v47 = vld [vmem:[#allocation7 + $0xda8] ss:$28 sps:$4 sm:$0xff]   ;;  %v8331_v48 = vld [vmem:[#allocation7 + $0x1120] ss:$28 sps:$4 sm:$0xff]  }
 0x348   :  { %7190 = vmatprep.subr.bf16.mxu0 %v8279_v57  ;;  %v8335_v57 = vld [vmem:[#allocation7 + $0xbe8] ss:$28 sps:$4 sm:$0xff]  }
 0x34a   :  { %5908 = vmatpush1.bf16.msra.mxu1 %v8276_v49  ;;  %v8338_v49 = vld [vmem:[#allocation7 + $0x115c] ss:$28 sps:$4 sm:$0xff]  }
 0x34b   :  { %7191 = vmatpush3.bf16.msra.mxu0 %v8280_v50  ;;  %5909 = vmatprep.subr.bf16.mxu1 %v8283_v52  ;;  %v8339_v50 = vld [vmem:[#allocation7 + $0xde0] ss:$28 sps:$4 sm:$0xff]   ;;  %v8336_v52 = vld [vmem:[#allocation7 + $0x1158] ss:$28 sps:$4 sm:$0xff]  }
 0x34c   :  { %7192 = vmatprep.subr.bf16.mxu0 %v8284_v53  ;;  %v8340_v53 = vld [vmem:[#allocation7 + $0xc20] ss:$28 sps:$4 sm:$0xff]  }
 0x34e   :  { %5910 = vmatpush1.bf16.msra.mxu1 %v8281_v11  ;;  %v8343_v11 = vld [vmem:[#allocation7 + $0x1194] ss:$28 sps:$4 sm:$0xff]  }
 0x34f   :  { %7193 = vmatpush3.bf16.msra.mxu0 %v8285_v56  ;;  %5911 = vmatprep.subr.bf16.mxu1 %v8288_v54  ;;  %v8344_v56 = vld [vmem:[#allocation7 + $0xfd8] ss:$28 sps:$4 sm:$0xff]   ;;  %v8341_v54 = vld [vmem:[#allocation7 + $0x1190] ss:$28 sps:$4 sm:$0xff]  }
 0x350   :  { %7194 = vmatprep.subr.bf16.mxu0 %v8289_v61  ;;  %v8345_v61 = vld [vmem:[#allocation7 + $0xe18] ss:$28 sps:$4 sm:$0xff]  }
 0x352   :  { %5912 = vmatpush1.bf16.msra.mxu1 %v8286_v25  ;;  %v8348_v25 = vld [vmem:[#allocation7 + $0x11cc] ss:$28 sps:$4 sm:$0xff]  }
 0x353   :  { %7195 = vmatpush3.bf16.msra.mxu0 %v8290_v58  ;;  %5913 = vmatprep.subr.bf16.mxu1 %v8293_v51  ;;  %v8349_v58 = vld [vmem:[#allocation7 + $0x1010] ss:$28 sps:$4 sm:$0xff]   ;;  %v8346_v51 = vld [vmem:[#allocation7 + $0x11c8] ss:$28 sps:$4 sm:$0xff]  }
 0x354   :  { %7196 = vmatprep.subr.bf16.mxu0 %v8294_v7  ;;  %v8350_v7 = vld [vmem:[#allocation7 + $0xe50] ss:$28 sps:$4 sm:$0xff]  }
 0x356   :  { %5914 = vmatpush1.bf16.msra.mxu1 %v8291_v55  ;;  %v8353_v55 = vld [vmem:[#allocation7 + $0x1204] ss:$28 sps:$4 sm:$0xff]  }
 0x357   :  { %7197 = vmatpush3.bf16.msra.mxu0 %v8295_v8  ;;  %5915 = vmatprep.subr.bf16.mxu1 %v8298_v9  ;;  %v8354_v8 = vld [vmem:[#allocation7 + $0x1048] ss:$28 sps:$4 sm:$0xff]   ;;  %v8351_v9 = vld [vmem:[#allocation7 + $0x1200] ss:$28 sps:$4 sm:$0xff]  }
 0x358   :  { %7198 = vmatprep.subr.bf16.mxu0 %v8299_v10  ;;  %v8355_v10 = vld [vmem:[#allocation7 + $0xe88] ss:$28 sps:$4 sm:$0xff]  }
 0x35a   :  { %5916 = vmatpush1.bf16.msra.mxu1 %v8296_v2  ;;  %v8358_v2 = vld [vmem:[#allocation7 + $0x123c] ss:$28 sps:$4 sm:$0xff]  }
 0x35b   :  { %7199 = vmatpush3.bf16.msra.mxu0 %v8300_v13  ;;  %5917 = vmatprep.subr.bf16.mxu1 %v8303_v14  ;;  %v8356_v13 = vld [vmem:[#allocation7 + $0x1238] ss:$28 sps:$4 sm:$0xff]   ;;  %v8360_v14 = vld [vmem:[#allocation7 + $0xec0] ss:$28 sps:$4 sm:$0xff]  }
 0x35c   :  { %7206 = vmatprep.subr.bf16.mxu0 %v8304_v15  ;;  %v8363_v15 = vld [vmem:[#allocation7 + $0x1274] ss:$28 sps:$4 sm:$0xff]  }
 0x35e   :  { %6137 = vmatmul.mubr.bf16.vlgmr.msra.gmra.mrb[36].mxu0 %v8794_v4  ;;  %5918 = vmatpush1.bf16.msra.mxu1 %v8301_v23  ;;  %v8316_v4 = vld [vmem:[#allocation7 + $0x1078] ss:$28 sps:$4 sm:$0xff]  }
 0x35f   :  { %7207 = vmatpush3.bf16.msra.mxu0 %v8305_v19  ;;  %6176 = vmatprep.mubr.bf16.mxu0 %v8796_v6  ;;  %v8324_v6 = vld [vmem:[#allocation7 + $0xd38] ss:$28 sps:$4 sm:$0xff]  }
 0x360   :  { %5919 = vmatprep.subr.bf16.mxu1 %v8308_v20  ;;  %7208 = vmatprep.subr.bf16.mxu0 %v8309_v28  ;;  %v8364_v23 = vld [vmem:[#allocation7 + $0x10b8] ss:$28 sps:$4 sm:$0xff]   ;;  %v8368_v20 = vld [vmem:[#allocation7 + $0x12ac] ss:$28 sps:$4 sm:$0xff]  }
 0x361   :  { %v8365_v19 = vld [vmem:[#allocation7 + $0xef8] ss:$28 sps:$4 sm:$0xff]   ;;  %v8369_v28 = vld [vmem:[#allocation7 + $0x10f0] ss:$28 sps:$4 sm:$0xff]  }
 0x362   :  { %5920 = vmatpush1.bf16.msra.mxu1 %v8306_v30  ;;  %v8366_v30 = vld [vmem:[#allocation7 + $0x12a8] ss:$28 sps:$4 sm:$0xff]  }
 0x363   :  { %7209 = vmatpush3.bf16.msra.mxu0 %v8310_v33  ;;  %5921 = vmatprep.subr.bf16.mxu1 %v8313_v3  ;;  %v8370_v33 = vld [vmem:[#allocation7 + $0xf30] ss:$28 sps:$4 sm:$0xff]   ;;  %v8373_v3 = vld [vmem:[#allocation7 + $0x12e4] ss:$28 sps:$4 sm:$0xff]  }
 0x364   :  { %7210 = vmatprep.subr.bf16.mxu0 %v8314_v17  ;;  %v8374_v17 = vld [vmem:[#allocation7 + $0x1128] ss:$28 sps:$4 sm:$0xff]  }
 0x366   :  { %5922 = vmatpush1.bf16.msra.mxu1 %v8311_v35  ;;  %v8371_v35 = vld [vmem:[#allocation7 + $0x12e0] ss:$28 sps:$4 sm:$0xff]  }
 0x367   :  { %7211 = vmatpush3.bf16.msra.mxu0 %v8315_v63  ;;  %5923 = vmatprep.subr.bf16.mxu1 %v8318_v46  ;;  %v8375_v63 = vld [vmem:[#allocation7 + $0xf68] ss:$28 sps:$4 sm:$0xff]   ;;  %v8378_v46 = vld [vmem:[#allocation7 + $0x131c] ss:$28 sps:$4 sm:$0xff]  }
 0x368   :  { %7212 = vmatprep.subr.bf16.mxu0 %v8319_v37  ;;  %v8379_v37 = vld [vmem:[#allocation7 + $0x1160] ss:$28 sps:$4 sm:$0xff]  }
 0x36a   :  { %5924 = vmatpush1.bf16.msra.mxu1 %v8316_v4  ;;  %v8376_v4 = vld [vmem:[#allocation7 + $0x1318] ss:$28 sps:$4 sm:$0xff]  }
 0x36b   :  { %7213 = vmatpush3.bf16.msra.mxu0 %v8320_v39  ;;  %5925 = vmatprep.subr.bf16.mxu1 %v8323_v40  ;;  %v8380_v39 = vld [vmem:[#allocation7 + $0xfa0] ss:$28 sps:$4 sm:$0xff]   ;;  %v8383_v40 = vld [vmem:[#allocation7 + $0x1354] ss:$28 sps:$4 sm:$0xff]  }
 0x36c   :  { %7214 = vmatprep.subr.bf16.mxu0 %v8324_v6  ;;  %v8384_v6 = vld [vmem:[#allocation7 + $0x1358] ss:$28 sps:$4 sm:$0xff]  }
 0x36e   :  { %5926 = vmatpush1.bf16.msra.mxu1 %v8321_v41  ;;  %v8381_v41 = vld [vmem:[#allocation7 + $0x1350] ss:$28 sps:$4 sm:$0xff]  }
 0x36f   :  { %7215 = vmatpush3.bf16.msra.mxu0 %v8325_v43  ;;  %5927 = vmatprep.subr.bf16.mxu1 %v8328_v32  ;;  %v8385_v43 = vld [vmem:[#allocation7 + $0x1198] ss:$28 sps:$4 sm:$0xff]   ;;  %v8388_v32 = vld [vmem:[#allocation7 + $0x138c] ss:$28 sps:$4 sm:$0xff]  }
 0x370   :  { %7216 = vmatprep.subr.bf16.mxu0 %v8329_v62  ;;  %v8389_v62 = vld [vmem:[#allocation7 + $0x1390] ss:$28 sps:$4 sm:$0xff]  }
 0x372   :  { %5928 = vmatpush1.bf16.msra.mxu1 %v8326_v44  ;;  %v8386_v44 = vld [vmem:[#allocation7 + $0x1388] ss:$28 sps:$4 sm:$0xff]  }
 0x373   :  { %7217 = vmatpush3.bf16.msra.mxu0 %v8330_v1  ;;  %5929 = vmatprep.subr.bf16.mxu1 %v8333_v45  ;;  %v8390_v1 = vld [vmem:[#allocation7 + $0x11d0] ss:$28 sps:$4 sm:$0xff]   ;;  %v8393_v45 = vld [vmem:[#allocation7 + $0x13c4] ss:$28 sps:$4 sm:$0xff]  }
 0x374   :  { %7218 = vmatprep.subr.bf16.mxu0 %v8334_v47  ;;  %v8394_v47 = vld [vmem:[#allocation7 + $0x13c8] ss:$28 sps:$4 sm:$0xff]  }
 0x376   :  { %5930 = vmatpush1.bf16.msra.mxu1 %v8331_v48  ;;  %v8391_v48 = vld [vmem:[#allocation7 + $0x13c0] ss:$28 sps:$4 sm:$0xff]  }
 0x377   :  { %7219 = vmatpush3.bf16.msra.mxu0 %v8335_v57  ;;  %5931 = vmatprep.subr.bf16.mxu1 %v8338_v49  ;;  %v8395_v57 = vld [vmem:[#allocation7 + $0x1208] ss:$28 sps:$4 sm:$0xff]   ;;  %v8398_v49 = vld [vmem:[#allocation7 + $0x13fc] ss:$28 sps:$4 sm:$0xff]  }
 0x378   :  { %7220 = vmatprep.subr.bf16.mxu0 %v8339_v50  ;;  %v8399_v50 = vld [vmem:[#allocation7 + $0x1400] ss:$28 sps:$4 sm:$0xff]  }
 0x37a   :  { %5932 = vmatpush1.bf16.msra.mxu1 %v8336_v52  ;;  %v8400_v52 = vld [vmem:[#allocation7 + $0x1240] ss:$28 sps:$4 sm:$0xff]  }
 0x37b   :  { %7221 = vmatpush3.bf16.msra.mxu0 %v8340_v53  ;;  %5942 = vmatprep.subr.bf16.mxu1 %v8343_v11  ;;  %v8403_v53 = vld [vmem:[#allocation7 + $0x1434] ss:$28 sps:$4 sm:$0xff]  }
 0x37c   :  { %7228 = vmatprep.subr.bf16.mxu0 %v8344_v56  ;;  %v8401_v11 = vld [vmem:[#allocation7 + $0x1430] ss:$28 sps:$4 sm:$0xff]   ;;  %v8405_v56 = vld [vmem:[#allocation7 + $0x1278] ss:$28 sps:$4 sm:$0xff]  }
 0x37d   :  { %5934 = vmatmul.mubr.bf16.vlgmr.msra.gmra.mrb[16].mxu1 %v8825_v34 }
 0x37e   :  { %6177 = vmatmul.mubr.bf16.vlgmr.msra.gmra.mrb[40].mxu0 %v8809_v59  ;;  %5943 = vmatpush1.bf16.msra.mxu1 %v8341_v54  ;;  %v8359_v59 = vld [vmem:[#allocation7 + $0x1080] ss:$28 sps:$4 sm:$0xff]   ;;  %v8408_v54 = vld [vmem:[#allocation7 + $0x146c] ss:$28 sps:$4 sm:$0xff]  }
 0x37f   :  { %5974 = vmatprep.mubr.bf16.mxu1 %v8827_v36  ;;  %7229 = vmatpush3.bf16.msra.mxu0 %v8345_v61  ;;  %v8409_v61 = vld [vmem:[#allocation7 + $0x1470] ss:$28 sps:$4 sm:$0xff]  }
 0x380   :  { %6216 = vmatprep.mubr.bf16.mxu0 %v8811_v18  ;;  %5944 = vmatprep.subr.bf16.mxu1 %v8348_v25  ;;  %v8361_v18 = vld [vmem:[#allocation7 + $0x1270] ss:$28 sps:$4 sm:$0xff]   ;;  %v8406_v25 = vld [vmem:[#allocation7 + $0x1468] ss:$28 sps:$4 sm:$0xff]  }
 0x381   :  { %7230 = vmatprep.subr.bf16.mxu0 %v8349_v58  ;;  %v8410_v58 = vld [vmem:[#allocation7 + $0x12b0] ss:$28 sps:$4 sm:$0xff]  }
 0x382   :  { %5945 = vmatpush1.bf16.msra.mxu1 %v8346_v51  ;;  %v8413_v51 = vld [vmem:[#allocation7 + $0x14a4] ss:$28 sps:$4 sm:$0xff]  }
 0x383   :  { %7231 = vmatpush3.bf16.msra.mxu0 %v8350_v7  ;;  %5946 = vmatprep.subr.bf16.mxu1 %v8353_v55  ;;  %v8414_v7 = vld [vmem:[#allocation7 + $0x14a8] ss:$28 sps:$4 sm:$0xff]   ;;  %v8411_v55 = vld [vmem:[#allocation7 + $0x14a0] ss:$28 sps:$4 sm:$0xff]  }
 0x384   :  { %7232 = vmatprep.subr.bf16.mxu0 %v8354_v8  ;;  %v8415_v8 = vld [vmem:[#allocation7 + $0x12e8] ss:$28 sps:$4 sm:$0xff]  }
 0x386   :  { %5947 = vmatpush1.bf16.msra.mxu1 %v8351_v9  ;;  %v8418_v9 = vld [vmem:[#allocation7 + $0x14dc] ss:$28 sps:$4 sm:$0xff]  }
 0x387   :  { %7233 = vmatpush3.bf16.msra.mxu0 %v8355_v10  ;;  %5948 = vmatprep.subr.bf16.mxu1 %v8358_v2  ;;  %v8419_v10 = vld [vmem:[#allocation7 + $0x14e0] ss:$28 sps:$4 sm:$0xff]   ;;  %v8416_v2 = vld [vmem:[#allocation7 + $0x14d8] ss:$28 sps:$4 sm:$0xff]  }
 0x388   :  { %7234 = vmatprep.subr.bf16.mxu0 %v8359_v59  ;;  %v8420_v59 = vld [vmem:[#allocation7 + $0x1320] ss:$28 sps:$4 sm:$0xff]  }
 0x38a   :  { %5949 = vmatpush1.bf16.msra.mxu1 %v8356_v13  ;;  %v8423_v13 = vld [vmem:[#allocation7 + $0x1514] ss:$28 sps:$4 sm:$0xff]  }
 0x38b   :  { %7235 = vmatpush3.bf16.msra.mxu0 %v8360_v14  ;;  %5950 = vmatprep.subr.bf16.mxu1 %v8363_v15  ;;  %v8421_v14 = vld [vmem:[#allocation7 + $0x1510] ss:$28 sps:$4 sm:$0xff]   ;;  %v8424_v15 = vld [vmem:[#allocation7 + $0x1518] ss:$28 sps:$4 sm:$0xff]  }
 0x38c   :  { %7236 = vmatprep.subr.bf16.mxu0 %v8364_v23  ;;  %v8427_v23 = vld [vmem:[#allocation7 + $0x154c] ss:$28 sps:$4 sm:$0xff]  }
 0x38e   :  { %5951 = vmatpush1.bf16.msra.mxu1 %v8361_v18  ;;  %v8425_v18 = vld [vmem:[#allocation7 + $0x1548] ss:$28 sps:$4 sm:$0xff]  }
 0x38f   :  { %7237 = vmatpush3.bf16.msra.mxu0 %v8365_v19  ;;  %5952 = vmatprep.subr.bf16.mxu1 %v8368_v20  ;;  %v8428_v19 = vld [vmem:[#allocation7 + $0x1550] ss:$28 sps:$4 sm:$0xff]   ;;  %v8431_v20 = vld [vmem:[#allocation7 + $0x1584] ss:$28 sps:$4 sm:$0xff]  }
 0x390   :  { %7238 = vmatprep.subr.bf16.mxu0 %v8369_v28  ;;  %v8429_v28 = vld [vmem:[#allocation7 + $0x1580] ss:$28 sps:$4 sm:$0xff]  }
 0x392   :  { %5953 = vmatpush1.bf16.msra.mxu1 %v8366_v30  ;;  %v8432_v30 = vld [vmem:[#allocation7 + $0x1588] ss:$28 sps:$4 sm:$0xff]  }
 0x393   :  { %7239 = vmatpush3.bf16.msra.mxu0 %v8370_v33  ;;  %5954 = vmatprep.subr.bf16.mxu1 %v8373_v3  ;;  %v8435_v33 = vld [vmem:[#allocation7 + $0x15bc] ss:$28 sps:$4 sm:$0xff]  }
 0x394   :  { %7240 = vmatprep.subr.bf16.mxu0 %v8374_v17  ;;  %v8436_v3 = vld [vmem:[#allocation7 + $0x15c0] ss:$28 sps:$4 sm:$0xff]   ;;  %v8439_v17 = vld [vmem:[#allocation7 + $0x15f4] ss:$28 sps:$4 sm:$0xff]  }
 0x396   :  { %5955 = vmatpush1.bf16.msra.mxu1 %v8371_v35  ;;  %v8440_v35 = vld [vmem:[#allocation7 + $0x15f8] ss:$28 sps:$4 sm:$0xff]  }
 0x397   :  { %7241 = vmatpush3.bf16.msra.mxu0 %v8375_v63  ;;  %5956 = vmatprep.subr.bf16.mxu1 %v8378_v46  ;;  %v8443_v63 = vld [vmem:[#allocation7 + $0x162c] ss:$28 sps:$4 sm:$0xff]   ;;  %v1395_v46 = vrot.slane %v8862_v60, %v8725_v24 }
 0x398   :  { %7242 = vmatprep.subr.bf16.mxu0 %v8379_v37  ;;  %v8441_v37 = vld [vmem:[#allocation7 + $0x1628] ss:$28 sps:$4 sm:$0xff]  }
 0x399   :  { %v8448_v24 = vld [vmem:[#allocation7 + $0x1668] ss:$28 sps:$4 sm:$0xff]  }
 0x39a   :  { %5957 = vmatpush1.bf16.msra.mxu1 %v8376_v4  ;;  %v1399_v4 = vrot.slane %v8862_v60, %v8733_v27 }
 0x39b   :  { %7243 = vmatpush3.bf16.msra.mxu0 %v8380_v39  ;;  %5958 = vmatprep.subr.bf16.mxu1 %v8383_v40  ;;  %v8444_v39 = vld [vmem:[#allocation7 + $0x1630] ss:$28 sps:$4 sm:$0xff]   ;;  %v8447_v40 = vld [vmem:[#allocation7 + $0x1664] ss:$28 sps:$4 sm:$0xff]  }
 0x39c   :  { %7250 = vmatprep.subr.bf16.mxu0 %v8384_v6 }
 0x39e   :  { %6217 = vmatmul.mubr.bf16.vlgmr.msra.gmra.mrb[44].mxu0 %v8825_v34  ;;  %5959 = vmatpush1.bf16.msra.mxu1 %v8381_v41  ;;  %v8396_v34 = vld [vmem:[#allocation7 + $0x13f8] ss:$28 sps:$4 sm:$0xff]  }
 0x39f   :  { %7251 = vmatpush3.bf16.msra.mxu0 %v8385_v43  ;;  %6256 = vmatprep.mubr.bf16.mxu0 %v8827_v36  ;;  %v8404_v36 = vld [vmem:[#allocation7 + $0x1438] ss:$28 sps:$4 sm:$0xff]  }
 0x3a0   :  { %5960 = vmatprep.subr.bf16.mxu1 %v8388_v32  ;;  %7252 = vmatprep.subr.bf16.mxu0 %v8389_v62  ;;  %v8445_v32 = vld [vmem:[#allocation7 + $0x1660] ss:$28 sps:$4 sm:$0xff]  }
 0x3a2   :  { %5961 = vmatpush1.bf16.msra.mxu1 %v8386_v44 }
 0x3a3   :  { %7253 = vmatpush3.bf16.msra.mxu0 %v8390_v1  ;;  %5962 = vmatprep.subr.bf16.mxu1 %v8393_v45  ;;  %v8451_v1 = vld [vmem:[#allocation7 + $0x169c] ss:$28 sps:$4 sm:$0xff]  }
 0x3a4   :  { %7254 = vmatprep.subr.bf16.mxu0 %v8394_v47 }
 0x3a6   :  { %5963 = vmatpush1.bf16.msra.mxu1 %v8391_v48 }
 0x3a7   :  { %7255 = vmatpush3.bf16.msra.mxu0 %v8395_v57  ;;  %5964 = vmatprep.subr.bf16.mxu1 %v8398_v49  ;;  %v8449_v57 = vld [vmem:[#allocation7 + $0x1698] ss:$28 sps:$4 sm:$0xff]  }
 0x3a8   :  { %7256 = vmatprep.subr.bf16.mxu0 %v8399_v50  ;;  %v8452_v50 = vld [vmem:[#allocation7 + $0x16a0] ss:$28 sps:$4 sm:$0xff]  }
 0x3aa   :  { %5965 = vmatpush1.bf16.msra.mxu1 %v8396_v34 }
 0x3ab   :  { %7257 = vmatpush3.bf16.msra.mxu0 %v8400_v52  ;;  %5966 = vmatprep.subr.bf16.mxu1 %v8403_v53 }
 0x3ac   :  { %7258 = vmatprep.subr.bf16.mxu0 %v8404_v36 }
 0x3ae   :  { %5967 = vmatpush1.bf16.msra.mxu1 %v8401_v11  ;;  %v8612_v11 = vmov 1983009808  }
 0x3af   :  { %7259 = vmatpush3.bf16.msra.mxu0 %v8405_v56  ;;  %5968 = vmatprep.subr.bf16.mxu1 %v8408_v54  ;;  %v6349_v56 = vunpack.c.l.s4 %v8612_v11 }
 0x3b0   :  { %7260 = vmatprep.subr.bf16.mxu0 %v8409_v61 }
 0x3b1   :  { %v6350_v54 = vunpack.c.0.s8 %v6349_v56 }
 0x3b2   :  { %5969 = vmatpush1.bf16.msra.mxu1 %v8406_v25 }
 0x3b3   :  { %7261 = vmatpush3.bf16.msra.mxu0 %v8410_v58  ;;  %5970 = vmatprep.subr.bf16.mxu1 %v8413_v51  ;;  %v8912_v25 = vsub.s32 %v6350_v54, %v8719_v22 }
 0x3b4   :  { %7262 = vmatprep.subr.bf16.mxu0 %v8414_v7 }
 0x3b6   :  { %5971 = vmatpush1.bf16.msra.mxu1 %v8411_v55 }
 0x3b7   :  { %7263 = vmatpush3.bf16.msra.mxu0 %v8415_v8  ;;  %5972 = vmatprep.subr.bf16.mxu1 %v8418_v9 }
 0x3b8   :  { %7264 = vmatprep.subr.bf16.mxu0 %v8419_v10 }
 0x3ba   :  { %5973 = vmatpush1.bf16.msra.mxu1 %v8416_v2 }
 0x3bb   :  { %7265 = vmatpush3.bf16.msra.mxu0 %v8420_v59  ;;  %5983 = vmatprep.subr.bf16.mxu1 %v8423_v13  ;;  %v1411_v59 = vrot.slane %v8862_v60, %v129_v12 }
 0x3bc   :  { %7287 = vmatprep.subr.bf16.mxu0 %v8610_v16 }
 0x3bd   :  { %5975 = vmatmul.mubr.bf16.vlgmr.msra.gmra.mrb[16].mxu1 %v8844_v29 }
 0x3be   :  { %6257 = vmatmul.mubr.bf16.vlgmr.msra.gmra.mrb[48].mxu0 %v8844_v29  ;;  %5984 = vmatpush1.bf16.msra.mxu1 %v8421_v14  ;;  %v8433_v29 = vld [vmem:[#allocation7 + $0x15b8] ss:$28 sps:$4 sm:$0xff]  }
 0x3bf   :  { %7288 = vmatpush3.bf16.msra.mxu0 %v8424_v15  ;;  %5985 = vmatprep.subr.bf16.mxu1 %v8427_v23 }
 0x3c0   :  { %7289 = vmatprep.subr.bf16.mxu0 %v8610_v16  ;;  %6015 = vmatprep.mubr.bf16.mxu1 %v8609_v0  ;;  %v8437_v0 = vld [vmem:[#allocation7 + $0x15f0] ss:$28 sps:$4 sm:$0xff]  }
 0x3c1   :  { %7303 = vmatprep.mubr.msk.bf16.mxu0 %vm8611_vm1, %v8610_v16 }
 0x3c2   :  { %5986 = vmatpush1.bf16.msra.mxu1 %v8425_v18 }
 0x3c3   :  { %7290 = vmatpush3.bf16.msra.mxu0 %v8428_v19  ;;  %5987 = vmatprep.subr.bf16.mxu1 %v8431_v20 }
 0x3c4   :  { %7291 = vmatprep.subr.bf16.mxu0 %v8610_v16 }
 0x3c6   :  { %5988 = vmatpush1.bf16.msra.mxu1 %v8429_v28 }
 0x3c7   :  { %7292 = vmatpush3.bf16.msra.mxu0 %v8432_v30  ;;  %5989 = vmatprep.subr.bf16.mxu1 %v8435_v33 }
 0x3c8   :  { %7293 = vmatprep.subr.bf16.mxu0 %v8610_v16 }
 0x3ca   :  { %5990 = vmatpush1.bf16.msra.mxu1 %v8433_v29 }
 0x3cb   :  { %7294 = vmatpush3.bf16.msra.mxu0 %v8436_v3  ;;  %5991 = vmatprep.subr.bf16.mxu1 %v8439_v17 }
 0x3cc   :  { %7295 = vmatprep.subr.bf16.mxu0 %v8610_v16 }
 0x3ce   :  { %5992 = vmatpush1.bf16.msra.mxu1 %v8437_v0 }
 0x3cf   :  { %7296 = vmatpush3.bf16.msra.mxu0 %v8440_v35  ;;  %5993 = vmatprep.subr.bf16.mxu1 %v8443_v63 }
 0x3d0   :  { %7297 = vmatprep.subr.bf16.mxu0 %v8610_v16 }
 0x3d1   :  { %v5730_v6 = vpop.f32.mrb[24].mxu0 }
 0x3d2   :  { %v7313_v41 = vadd.f32 %v5730_v6, %v1395_v46  ;;  %v5732_v43 = vpop.f32.mrb[25].mxu0  ;;  %5994 = vmatpush1.bf16.msra.mxu1 %v8441_v37 }
 0x3d3   :  { %v7314_v62 = vadd.f32 %v5732_v43, %v1399_v4  ;;  %v5734_v44 = vpop.f32.mrb[26].mxu0  ;;  %7298 = vmatpush3.bf16.msra.mxu0 %v8444_v39  ;;  %5995 = vmatprep.subr.bf16.mxu1 %v8447_v40 }
 0x3d4   :  { %v6306_v45 = vsub.f32 0.0, %v7313_v41  ;;  %v5735_v47 = vpop.f32.mrb[27].mxu0  ;;  %7299 = vmatprep.subr.bf16.mxu0 %v8610_v16  ;;  %v8483_v44 = vld [vmem:[#allocation9] sm:$0xff] }
 0x3d5   :  { %v6307_v27 = vsub.f32 0.0, %v7314_v62 }
 0x3d6   :  { %v6315_v48 = vmul.f32 1.442695, %v6306_v45  ;;  %5996 = vmatpush1.bf16.msra.mxu1 %v8445_v32 }
 0x3d7   :  { %v6317_v49 = vmul.f32 1.442695, %v6307_v27  ;;  %7300 = vmatpush3.bf16.msra.mxu0 %v8448_v24  ;;  %5997 = vmatprep.subr.bf16.mxu1 %v8451_v1  ;;  %v1403_v24 = vrot.slane %v8483_v44, %v8774_v31  ;;  %v1407_v1 = vrot.slane %v8483_v44, %v125_v42 }
 0x3d8   :  { %8461 = vpow2.f32 %v6315_v48  ;;  %7301 = vmatprep.subr.bf16.mxu0 %v8610_v16 }
 0x3d9   :  { %8463 = vpow2.f32 %v6317_v49 }
 0x3da   :  { %5998 = vmatpush1.bf16.msra.mxu1 %v8449_v57 }
 0x3db   :  { %7302 = vmatpush3.bf16.msra.mxu0 %v8452_v50 }
 0x3dd   :  { %6016 = vmatmul.mubr.bf16.vlgmr.msra.gmra.mrb[16].mxu1 %v8784_v5 }
 0x3de   :  { %7304 = vmatmul.mubr.bf16.vlgmr.msra.gmra.mrb[52].mxu0 %v8784_v5  ;;  %v6354_v5 = vrot.slane %v6346_v26, %v8912_v25 }
 0x3e2   :  { %v8462_v34 = vpop.eup %8461 }
 0x3e3   :  { %v8464_v52 = vpop.eup %8463  ;;  %v6327_v53 = vadd.f32 1.0, %v8462_v34 }
 0x3e4   :  { %v6328_v36 = vadd.f32 1.0, %v8464_v52 }
 0x3e5   :  { %8465 = vrcp.f32 %v6327_v53 }
 0x3e6   :  { %8467 = vrcp.f32 %v6328_v36 }
 0x3ef   :  { %v8466_v61 = vpop.eup %8465 }
 0x3f0   :  { %v8468_v16 = vpop.eup %8467 }
 0x3f1   :  { %v6347_v58 = vcombine.low %v8466_v61, %v8468_v16  ;;  %v7156_v51 = vpop.f32.mrb[28].mxu0 }
 0x3f2   :  { %v7157_v7 = vpop.f32.mrb[29].mxu0 }
 0x3f3   :  { %v6361_v55 = vrot.slane %v6347_v58, %v8912_v25  ;;  %v7158_v8 = vadd.f32 %v7157_v7, %v7156_v51  ;;  %v7159_v9 = vpop.f32.mrb[30].mxu0 }
 0x3f4   :  { %v7160_v10 = vpop.f32.mrb[31].mxu0 }
 0x3f5   :  { %v6362_v2 = vcombine.low %v6354_v5, %v6361_v55  ;;  %v6059_v15 = vadd.f32 %v7158_v8, %v1411_v59 }
 0x3f7   :  { %6381 = vst [vmem:[%s8938_s5] sm:$0xff] %v6362_v2 }
 0x411   :  { %v7178_v13 = vpop.f32.mrb[32].mxu0 }
 0x412   :  { %v7179_v14 = vpop.f32.mrb[33].mxu0 }
 0x413   :  { %v7180_v23 = vadd.f32 %v7179_v14, %v7178_v13  ;;  %v7181_v21 = vpop.f32.mrb[34].mxu0 }
 0x414   :  { %v7182_v38 = vpop.f32.mrb[35].mxu0 }
 0x415   :  { %v6099_v26 = vadd.f32 %v7180_v23, %v6059_v15 }
 0x431   :  { %v7200_v18 = vpop.f32.mrb[36].mxu0 }
 0x432   :  { %v7201_v19 = vpop.f32.mrb[37].mxu0 }
 0x433   :  { %v7202_v20 = vadd.f32 %v7201_v19, %v7200_v18  ;;  %v7203_v28 = vpop.f32.mrb[38].mxu0 }
 0x434   :  { %v7204_v30 = vpop.f32.mrb[39].mxu0 }
 0x435   :  { %v6139_v33 = vadd.f32 %v7202_v20, %v6099_v26 }
 0x451   :  { %v7222_v29 = vpop.f32.mrb[40].mxu0 }
 0x452   :  { %v7223_v3 = vpop.f32.mrb[41].mxu0 }
 0x453   :  { %v7224_v17 = vadd.f32 %v7223_v3, %v7222_v29  ;;  %v7225_v0 = vpop.f32.mrb[42].mxu0 }
 0x454   :  { %v7226_v35 = vpop.f32.mrb[43].mxu0 }
 0x455   :  { %v6179_v63 = vadd.f32 %v7224_v17, %v6139_v33 }
 0x471   :  { %v7244_v12 = vpop.f32.mrb[44].mxu0 }
 0x472   :  { %v7245_v60 = vpop.f32.mrb[45].mxu0 }
 0x473   :  { %v7246_v46 = vadd.f32 %v7245_v60, %v7244_v12  ;;  %v7247_v37 = vpop.f32.mrb[46].mxu0 }
 0x474   :  { %v7248_v4 = vpop.f32.mrb[47].mxu0 }
 0x475   :  { %v6219_v39 = vadd.f32 %v7246_v46, %v6179_v63 }
 0x491   :  { %v7266_v40 = vpop.f32.mrb[48].mxu0 }
 0x492   :  { %v7267_v6 = vpop.f32.mrb[49].mxu0 }
 0x493   :  { %v7268_v41 = vadd.f32 %v7267_v6, %v7266_v40  ;;  %v7269_v43 = vpop.f32.mrb[50].mxu0 }
 0x494   :  { %v7270_v32 = vpop.f32.mrb[51].mxu0 }
 0x495   :  { %v6259_v62 = vadd.f32 %v7268_v41, %v6219_v39 }
 0x4b0   :  { %v6017_v45 = vpop.f32.mrb[16].mxu1 }
 0x4b1   :  { %v7315_v47 = vadd.f32 %v6017_v45, %v1403_v24  ;;  %v6298_v27 = vpop.f32.mrb[52].mxu0  ;;  %v6019_v48 = vpop.f32.mrb[17].mxu1 }
 0x4b2   :  { %v6299_v57 = vadd.f32 %v6298_v27, %v6259_v62  ;;  %v7316_v49 = vadd.f32 %v6019_v48, %v1407_v1  ;;  %v7305_v50 = vpop.f32.mrb[53].mxu0  ;;  %v6021_v34 = vpop.f32.mrb[18].mxu1 }
 0x4b3   :  { %v6308_v52 = vsub.f32 0.0, %v7315_v47  ;;  %v6301_v53 = vpop.f32.mrb[54].mxu0  ;;  %v6022_v36 = vpop.f32.mrb[19].mxu1 }
 0x4b4   :  { %v6310_v11 = vsub.f32 0.0, %v6299_v57  ;;  %v6309_v56 = vsub.f32 0.0, %v7316_v49  ;;  %v7306_v54 = vpop.f32.mrb[55].mxu0 }
 0x4b5   :  { %v6319_v61 = vmul.f32 1.442695, %v6308_v52 }
 0x4b6   :  { %v6323_v16 = vmul.f32 1.442695, %v6310_v11  ;;  %v6321_v31 = vmul.f32 1.442695, %v6309_v56 }
 0x4b7   :  { %8469 = vpow2.f32 %v6319_v61 }
 0x4b8   :  { %8471 = vpow2.f32 %v6323_v16 }
 0x4b9   :  { %8473 = vpow2.f32 %v6321_v31 }
 0x4c1   :  { %v8470_v22 = vpop.eup %8469 }
 0x4c2   :  { %v8472_v42 = vpop.eup %8471  ;;  %v6329_v58 = vadd.f32 1.0, %v8470_v22 }
 0x4c3   :  { %v8474_v51 = vpop.eup %8473  ;;  %v6331_v7 = vadd.f32 1.0, %v8472_v42 }
 0x4c4   :  { %8475 = vrcp.f32 %v6329_v58  ;;  %v6330_v5 = vadd.f32 1.0, %v8474_v51 }
 0x4c5   :  { %8477 = vrcp.f32 %v6331_v7 }
 0x4c6   :  { %8479 = vrcp.f32 %v6330_v5 }
 0x4ce   :  { %v8476_v55 = vpop.eup %8475 }
 0x4cf   :  { %v8478_v8 = vpop.eup %8477 }
 0x4d0   :  { %v8480_v9 = vpop.eup %8479  ;;  %v6377_v2 = vrot.slane %v8478_v8, %v8912_v25 }
 0x4d1   :  { %v6363_v10 = vcombine.low %v8476_v55, %v8480_v9 }
 0x4d3   :  { %v6370_v59 = vrot.slane %v6363_v10, %v8912_v25 }
 0x4d5   :  { %v6378_v13 = vcombine.low %v6370_v59, %v6377_v2 }
 0x4d7   :  { %6382 = vst [vmem:[%s8938_s5 + $0x8] sm:$0x3f] %v6378_v13 }
 0x4d8   :  { %6387 = vsyncpa [#allocation3], 1 }
 0x4d9   :  { %6388 = vsyncpa [#allocation5], 1 }
 0x4da   :  { %6389 = vsyncpa [#allocation8], 1 }

</bundles_post_ra>
